<compile_context>
chip_gen: v7x
topology: tpu7x:2x2x1
jax: 0.10.0
libtpu: 0.0.40
codegen_flags: <defaults>
</compile_context>

<pallas_src>
import functools

import numpy as np
import jax
import jax.numpy as jnp
from jax import lax
from jax.experimental import pallas as pl
from jax.experimental.pallas import tpu as pltpu


_K1, _K2, _K3, _K4 = 7, 5, 3, 3             # conv kernel sizes (from the module)
_C1, _C2, _C3, _C4 = 128, 256, 512, 512     # conv output channels
_IQ_COLS = 24                                # 7 taps x (I, Q, valid) = 21 -> pad to 24
_IM2COL_MAX_CIN = 192   # below this, lane-concat im2col (fills v6e/v7x 256-deep K tile)


# ---------------------------------------------------------------------------
# In-kernel helpers
# ---------------------------------------------------------------------------

def _bias_relu_maxpool(acc, bias, Bt, L):
    """(Bt*L, Cout) f32 -> (Bt, L//2, Cout) f32: bias + ReLU + MaxPool1d(2)."""
    Cout = acc.shape[-1]
    y = jnp.maximum(acc + bias, 0.0)
    y = jnp.max(y.reshape(Bt * (L // 2), 2, Cout), axis=1)
    return y.reshape(Bt, L // 2, Cout)


def _pad_time(scr_ref, h, L, pad):
    """Zero-pad h (Bt, L, C) by `pad` time steps per side via a VMEM scratch.

    The interior is stored at sublane offset 8 and halo zeroing uses 8-aligned
    offsets only; only the returned window *load* is sublane-unaligned."""
    Bt, R, C = scr_ref.shape
    scr_ref[:, 0:8, :] = jnp.zeros((Bt, 8, C), scr_ref.dtype)
    tail = ((8 + L) // 8) * 8          # first 8-aligned row covering the right halo
    scr_ref[:, tail:, :] = jnp.zeros((Bt, R - tail, C), scr_ref.dtype)
    scr_ref[:, 8:8 + L, :] = h.astype(scr_ref.dtype)
    return scr_ref[:, 8 - pad:8 + L + pad, :]          # (Bt, L + 2*pad, C) bf16


def _conv_same(hp, w_ref, K):
    """'Same' Conv1d on a pre-padded window hp (Bt, L+K-1, Cin) bf16 with
    flattened weights w_ref (K*Cin, Cout) bf16 -> (Bt*L, Cout) f32.

    Cin < 256: one deep MXU contraction over the K lane-concatenated shifted
    views.  Cin >= 256: K accumulated per-tap dots (each tap already fills the
    MXU K tile; skipping the im2col slab cuts peak VMEM ~Kx)."""
    Bt, Lp, Cin = hp.shape
    L = Lp - (K - 1)
    if Cin < _IM2COL_MAX_CIN:
        cols = jnp.concatenate([hp[:, k:k + L, :] for k in range(K)], axis=-1)
        return jnp.dot(cols.reshape(Bt * L, K * Cin), w_ref[...],
                       preferred_element_type=jnp.float32)
    acc = jnp.dot(hp[:, 0:L, :].reshape(Bt * L, Cin), w_ref[0:Cin, :],
                  preferred_element_type=jnp.float32)
    for k in range(1, K):
        acc = acc + jnp.dot(hp[:, k:k + L, :].reshape(Bt * L, Cin),
                            w_ref[k * Cin:(k + 1) * Cin, :],
                            preferred_element_type=jnp.float32)
    return acc


# ---------------------------------------------------------------------------
# Fused whole-network kernel
# ---------------------------------------------------------------------------

def iq_cnn_fused_kernel(xc_ref,
                        w1_ref, b1_ref, w2_ref, b2_ref, w3_ref, b3_ref,
                        w4_ref, b4_ref,
                        wf1_ref, bf1_ref, wf2_ref, bf2_ref, wf3_ref, bf3_ref,
                        o_ref, scr2, scr3, scr4):
    Bt, L1, Ci = xc_ref.shape

    # conv1: I/Q mix + Conv1d(64,128,7) + folded BN as ONE shallow dot on the
    # wrapper-side (I, Q, valid)x7-tap im2col; + bias + ReLU + MaxPool1d(2).
    acc = jnp.dot(xc_ref[...].reshape(Bt * L1, Ci), w1_ref[...],
                  preferred_element_type=jnp.float32)
    h = _bias_relu_maxpool(acc, b1_ref[...], Bt, L1)          # (Bt, L1/2, 128) f32

    # conv2 + BN + ReLU + MaxPool1d(2)    (Cin=128 -> deep im2col contraction)
    L2 = L1 // 2
    hp = _pad_time(scr2, h, L2, _K2 // 2)
    acc = _conv_same(hp, w2_ref, _K2)
    h = _bias_relu_maxpool(acc, b2_ref[...], Bt, L2)          # (Bt, L1/4, 256)

    # conv3 + BN + ReLU + MaxPool1d(2)    (Cin=256 -> K accumulated dots)
    L3 = L2 // 2
    hp = _pad_time(scr3, h, L3, _K3 // 2)
    acc = _conv_same(hp, w3_ref, _K3)
    h = _bias_relu_maxpool(acc, b3_ref[...], Bt, L3)          # (Bt, L1/8, 512)

    # conv4 + BN + ReLU + AdaptiveAvgPool1d(1)
    L4 = L3 // 2
    hp = _pad_time(scr4, h, L4, _K4 // 2)
    acc = _conv_same(hp, w4_ref, _K4)
    y = jnp.maximum(acc + b4_ref[...], 0.0).reshape(Bt, L4, acc.shape[-1])
    feat = jnp.mean(y, axis=1)                                # (Bt, 512) f32

    # FC head (Dropout = identity at inference)
    h = jnp.maximum(jnp.dot(feat.astype(jnp.bfloat16), wf1_ref[...],
                            preferred_element_type=jnp.float32) + bf1_ref[...], 0.0)
    h = jnp.maximum(jnp.dot(h.astype(jnp.bfloat16), wf2_ref[...],
                            preferred_element_type=jnp.float32) + bf2_ref[...], 0.0)
    out = jnp.dot(h.astype(jnp.bfloat16), wf3_ref[...],
                  preferred_element_type=jnp.float32) + bf3_ref[...]
    o_ref[...] = out.reshape(Bt, 1, out.shape[-1]).astype(o_ref.dtype)


# ---------------------------------------------------------------------------
# Tiling / spec helpers
# ---------------------------------------------------------------------------

@functools.lru_cache(maxsize=None)
def _vmem_limit_bytes():
    """Per-generation scoped-VMEM budget (~3/4 of physical, capped at 112 MiB)."""
    cap = 64 << 20                               # conservative default (v7x physical)
    try:
        cap = int(pltpu.get_tpu_info().vmem_capacity_bytes)
    except Exception:
        pass
    return int(min(cap * 3 // 4, 112 << 20))


def _pick_block(B, L, block_b, vmem_bytes):
    """Samples per grid step; block_b*L rows feed the MXU M dimension."""
    if block_b is None:
        weights_bytes = 6 << 20                  # resident weights (+ fixed slack)
        per_sample = 2048 * L + (256 << 10)      # coarse peak activations/temps
        avail = max(vmem_bytes - weights_bytes, 1 << 20)
        target_rows = 4096 if vmem_bytes > (64 << 20) else 2048
        block_b = int(max(1, min(B, avail // per_sample,
                                 max(1, target_rows // max(L, 1)))))
        # Prefer an EVEN number of grid steps so the "parallel" batch axis
        # splits evenly over dual-TensorCore parts (v7x); keep block_b | B.
        while block_b > 1 and (B % block_b != 0 or (B // block_b) % 2 != 0):
            block_b -= 1
    assert B % block_b == 0, (B, block_b)
    return block_b, B // block_b


def _probe_kernel(x_ref, o_ref):
    o_ref[...] = x_ref[...] + 1.0


@functools.lru_cache(maxsize=None)
def _buffered_weights_supported():
    """Whether BlockSpec(pipeline_mode=pl.Buffered(1)) lowers on this install."""
    try:
        with jax.ensure_compile_time_eval():
            f = pl.pallas_call(
                _probe_kernel,
                out_shape=jax.ShapeDtypeStruct((16, 128), jnp.float32),
                grid=(2,),
                in_specs=[pl.BlockSpec((8, 128), lambda i: (0, 0),
                                       pipeline_mode=pl.Buffered(1))],
                out_specs=pl.BlockSpec((8, 128), lambda i: (i, 0)),
            )
            jax.block_until_ready(f(jnp.zeros((8, 128), jnp.float32)))
        return True
    except Exception:
        return False


def _rep(shape):
    """Whole-array, grid-invariant operand (stays VMEM resident); single
    buffered when the installed Pallas supports pipeline_mode."""
    n = len(shape)
    idx = lambda i: (0,) * n
    if _buffered_weights_supported():
        return pl.BlockSpec(shape, idx, pipeline_mode=pl.Buffered(1))
    return pl.BlockSpec(shape, idx)


# ---------------------------------------------------------------------------
# Wrapper
# ---------------------------------------------------------------------------

def iq_im2col(x, K=_K1):
    """(B, L, 2) raw I/Q -> (B, L, _IQ_COLS) bf16 im2col over (I, Q, valid) x K
    taps.  The 'valid' ones-channel carries the folded I/Q bias and is zero in
    the halo, reproducing Conv1d's zero padding of the mixed signal exactly."""
    B, L, _ = x.shape
    pad = K // 2
    x3 = jnp.concatenate([x, jnp.ones((B, L, 1), x.dtype)], axis=-1)
    x3 = jnp.pad(x3, ((0, 0), (pad, pad), (0, 0)))
    cols = jnp.concatenate([x3[:, k:k + L, :] for k in range(K)], axis=-1)
    cols = jnp.pad(cols, ((0, 0), (0, 0), (0, _IQ_COLS - 3 * K)))
    return cols.astype(jnp.bfloat16)


def iq_cnn_forward(x, p, num_classes=12, block_b=None):
    B, L, _ = x.shape
    assert L % 8 == 0, "need L divisible by 8 (three MaxPool1d(2) stages)"
    cols = iq_im2col(x)                                     # (B, L, 24) bf16, tiny

    vmem = _vmem_limit_bytes()
    block_b, grid = _pick_block(B, L, block_b, vmem)
    L2, L3, L4 = L // 2, L // 4, L // 8
    n_out = p["wf3"].shape[1]                               # 128 (lane-dense logits)

    w_args = (p["w1"], p["b1"], p["w2"], p["b2"], p["w3"], p["b3"],
              p["w4"], p["b4"], p["wf1"], p["bf1"], p["wf2"], p["bf2"],
              p["wf3"], p["bf3"])
    flops = 2 * B * (L * _IQ_COLS * _C1 + L2 * _K2 * _C1 * _C2
                     + L3 * _K3 * _C2 * _C3 + L4 * _K4 * _C3 * _C4
                     + _C4 * 256 + 256 * 128 + 128 * n_out)
    bytes_accessed = (cols.size * cols.dtype.itemsize + B * n_out * 4
                      + sum(a.size * a.dtype.itemsize for a in w_args))

    out = pl.pallas_call(
        iq_cnn_fused_kernel,
        out_shape=jax.ShapeDtypeStruct((B, 1, n_out), jnp.float32),
        grid=(grid,),
        in_specs=[pl.BlockSpec((block_b, L, _IQ_COLS), lambda i: (i, 0, 0))]
                + [_rep(a.shape) for a in w_args],
        out_specs=pl.BlockSpec((block_b, 1, n_out), lambda i: (i, 0, 0)),
        scratch_shapes=[
            pltpu.VMEM((block_b, 8 + L2 + _K2 // 2, _C1), jnp.bfloat16),
            pltpu.VMEM((block_b, 8 + L3 + _K3 // 2, _C2), jnp.bfloat16),
            pltpu.VMEM((block_b, 8 + L4 + _K4 // 2, _C3), jnp.bfloat16),
        ],
        compiler_params=pltpu.CompilerParams(
            dimension_semantics=("parallel",),
            vmem_limit_bytes=vmem),
        cost_estimate=pl.CostEstimate(flops=int(flops), transcendentals=0,
                                      bytes_accessed=int(bytes_accessed)),
    )(cols, *w_args)
    return out[:, 0, :num_classes]


# ---------------------------------------------------------------------------
# Parameters (deterministic synthetic init; BN + I/Q mix folded, eval mode)
# ---------------------------------------------------------------------------

def init_params(key, num_classes=12):
    ks = jax.random.split(key, 14)

    def rnd(k, shape, scale=0.1):
        return (scale * jax.random.normal(k, shape)).astype(jnp.float32)

    eps = 1e-5
    p = {}

    # I/Q mixing conv: torch Conv2d(1, 64, (1, 2)) -> per-channel (I, Q) weights.
    w_iq = rnd(ks[0], (2, 64))
    b_iq = rnd(ks[1], (64,))

    # conv1..conv4 as (K, Cin, Cout) with eval-mode BN scale folded in.
    cfg = [(64, _C1, _K1), (_C1, _C2, _K2), (_C2, _C3, _K3), (_C3, _C4, _K4)]
    ws, bs = [], []
    for i, (cin, cout, k) in enumerate(cfg):
        kw, kb, kg, kbeta = jax.random.split(ks[2 + i], 4)
        w = rnd(kw, (k, cin, cout), scale=0.05)
        b = rnd(kb, (cout,))
        gamma = 1.0 + rnd(kg, (cout,))
        beta = rnd(kbeta, (cout,))
        mean = jnp.zeros((cout,), jnp.float32)       # eval-mode running stats
        var = jnp.ones((cout,), jnp.float32)
        s = gamma / jnp.sqrt(var + eps)
        ws.append(w * s[None, None, :])
        bs.append(((b - mean) * s + beta).reshape(1, cout))

    # Fold the I/Q mix into conv1: per-tap rows over (I, Q, valid); the valid
    # ones-channel carries b_iq and is zeroed by the padding at boundaries.
    w1 = ws[0]                                        # (K1, 64, 128)
    w1_eff = jnp.stack([jnp.einsum("c,kco->ko", w_iq[0], w1),
                        jnp.einsum("c,kco->ko", w_iq[1], w1),
                        jnp.einsum("c,kco->ko", b_iq, w1)], axis=1)   # (K1, 3, 128)
    w1_flat = w1_eff.reshape(_K1 * 3, _C1)
    p["w1"] = jnp.pad(w1_flat, ((0, _IQ_COLS - _K1 * 3), (0, 0))).astype(jnp.bfloat16)
    p["b1"] = bs[0]
    for i in (1, 2, 3):
        cin, cout, k = cfg[i]
        p[f"w{i + 1}"] = ws[i].reshape(k * cin, cout).astype(jnp.bfloat16)
        p[f"b{i + 1}"] = bs[i]

    # FC head (Dropout = identity at inference); final Linear zero-padded to
    # 128 output lanes (lane-dense store), sliced back outside the kernel.
    p["wf1"] = rnd(ks[6], (_C4, 256), scale=0.05).astype(jnp.bfloat16)
    p["bf1"] = rnd(ks[7], (1, 256))
    p["wf2"] = rnd(ks[8], (256, 128), scale=0.05).astype(jnp.bfloat16)
    p["bf2"] = rnd(ks[9], (1, 128))
    wf3 = rnd(ks[10], (128, num_classes), scale=0.05)
    bf3 = rnd(ks[11], (1, num_classes))
    p["wf3"] = jnp.pad(wf3, ((0, 0), (0, 128 - num_classes))).astype(jnp.bfloat16)
    p["bf3"] = jnp.pad(bf3, ((0, 0), (0, 128 - num_classes)))
    return p


# ---------------------------------------------------------------------------
# Pure-JAX reference (lax.conv path, same folded bf16 weights)
# ---------------------------------------------------------------------------

def reference_forward(x, p, num_classes):
    dn = ("NWC", "WIO", "NWC")
    B, L, _ = x.shape

    def conv(h, w, b, K):
        y = lax.conv_general_dilated(h, w, (1,), [(K // 2, K // 2)],
                                     dimension_numbers=dn,
                                     preferred_element_type=jnp.float32)
        return jnp.maximum(y + b, 0.0)

    def maxpool(y):
        Bq, Lq, C = y.shape
        return jnp.max(y.reshape(Bq, Lq // 2, 2, C), axis=2).astype(jnp.bfloat16)

    # conv1 on the (I, Q, valid) 3-channel input with the folded I/Q+BN weights;
    # zero padding of the valid-channel reproduces Conv1d padding of the mix.
    x3 = jnp.concatenate([x, jnp.ones((B, L, 1), x.dtype)], axis=-1)
    w1 = p["w1"][:3 * _K1].reshape(_K1, 3, _C1)
    h = maxpool(conv(x3.astype(jnp.bfloat16), w1, p["b1"], _K1))
    h = maxpool(conv(h, p["w2"].reshape(_K2, _C1, _C2), p["b2"], _K2))
    h = maxpool(conv(h, p["w3"].reshape(_K3, _C2, _C3), p["b3"], _K3))
    y = conv(h, p["w4"].reshape(_K4, _C3, _C4), p["b4"], _K4)
    f = jnp.mean(y, axis=1)                                   # (B, 512) f32

    h = jnp.maximum(jnp.dot(f.astype(jnp.bfloat16), p["wf1"],
                            preferred_element_type=jnp.float32) + p["bf1"], 0.0)
    h = jnp.maximum(jnp.dot(h.astype(jnp.bfloat16), p["wf2"],
                            preferred_element_type=jnp.float32) + p["bf2"], 0.0)
    out = jnp.dot(h.astype(jnp.bfloat16), p["wf3"],
                  preferred_element_type=jnp.float32) + p["bf3"]
    return out[:, :num_classes]


# ---------------------------------------------------------------------------

if __name__ == "__main__":
    key = jax.random.PRNGKey(0)
    kx, kp = jax.random.split(key)

    B, L, num_classes = 2, 16, 12          # small shapes; L divisible by 8
    x = jax.random.normal(kx, (B, L, 2), dtype=jnp.float32)   # (batch, seq, I/Q)
    params = init_params(kp, num_classes=num_classes)

    fwd = jax.jit(functools.partial(iq_cnn_forward, num_classes=num_classes))
    out = jax.block_until_ready(fwd(x, params))

    ref = reference_forward(x, params, num_classes)
    assert out.shape == (B, num_classes)
    np.testing.assert_allclose(np.asarray(out, dtype=np.float32),
                               np.asarray(ref, dtype=np.float32),
                               rtol=2e-2, atol=2e-2)

    print("KERNEL_OK")
</pallas_src>

<mosaic_0001>
module attributes {stable_mosaic.version = 11 : i64} {
  func.func @iq_cnn_fused_kernel(%arg0: i32, %arg1: memref<1x16x24xbf16, #tpu.memory_space<vmem>>, %arg2: memref<24x128xbf16, #tpu.memory_space<vmem>>, %arg3: memref<1x128xf32, #tpu.memory_space<vmem>>, %arg4: memref<640x256xbf16, #tpu.memory_space<vmem>>, %arg5: memref<1x256xf32, #tpu.memory_space<vmem>>, %arg6: memref<768x512xbf16, #tpu.memory_space<vmem>>, %arg7: memref<1x512xf32, #tpu.memory_space<vmem>>, %arg8: memref<1536x512xbf16, #tpu.memory_space<vmem>>, %arg9: memref<1x512xf32, #tpu.memory_space<vmem>>, %arg10: memref<512x256xbf16, #tpu.memory_space<vmem>>, %arg11: memref<1x256xf32, #tpu.memory_space<vmem>>, %arg12: memref<256x128xbf16, #tpu.memory_space<vmem>>, %arg13: memref<1x128xf32, #tpu.memory_space<vmem>>, %arg14: memref<128x128xbf16, #tpu.memory_space<vmem>>, %arg15: memref<1x128xf32, #tpu.memory_space<vmem>>, %arg16: memref<1x1x128xf32, #tpu.memory_space<vmem>>, %arg17: memref<1x18x128xbf16, #tpu.memory_space<vmem>>, %arg18: memref<1x13x256xbf16, #tpu.memory_space<vmem>>, %arg19: memref<1x11x512xbf16, #tpu.memory_space<vmem>>) attributes {dimension_semantics = [#tpu.dimension_semantics<parallel>], iteration_bounds = array<i64: 2>, scalar_prefetch = 0 : i64, scratch_operands = 3 : i64, tpu.core_type = #tpu.core_type<tc>, window_params = [{transform_indices = @transform_0, window_bounds = array<i64: 1, 16, 24>}, {pipeline_mode = #tpu.pipeline_mode<synchronous>, transform_indices = @transform_1, window_bounds = array<i64: 24, 128>}, {pipeline_mode = #tpu.pipeline_mode<synchronous>, transform_indices = @transform_2, window_bounds = array<i64: 1, 128>}, {pipeline_mode = #tpu.pipeline_mode<synchronous>, transform_indices = @transform_3, window_bounds = array<i64: 640, 256>}, {pipeline_mode = #tpu.pipeline_mode<synchronous>, transform_indices = @transform_4, window_bounds = array<i64: 1, 256>}, {pipeline_mode = #tpu.pipeline_mode<synchronous>, transform_indices = @transform_5, window_bounds = array<i64: 768, 512>}, {pipeline_mode = #tpu.pipeline_mode<synchronous>, transform_indices = @transform_6, window_bounds = array<i64: 1, 512>}, {pipeline_mode = #tpu.pipeline_mode<synchronous>, transform_indices = @transform_7, window_bounds = array<i64: 1536, 512>}, {pipeline_mode = #tpu.pipeline_mode<synchronous>, transform_indices = @transform_8, window_bounds = array<i64: 1, 512>}, {pipeline_mode = #tpu.pipeline_mode<synchronous>, transform_indices = @transform_9, window_bounds = array<i64: 512, 256>}, {pipeline_mode = #tpu.pipeline_mode<synchronous>, transform_indices = @transform_10, window_bounds = array<i64: 1, 256>}, {pipeline_mode = #tpu.pipeline_mode<synchronous>, transform_indices = @transform_11, window_bounds = array<i64: 256, 128>}, {pipeline_mode = #tpu.pipeline_mode<synchronous>, transform_indices = @transform_12, window_bounds = array<i64: 1, 128>}, {pipeline_mode = #tpu.pipeline_mode<synchronous>, transform_indices = @transform_13, window_bounds = array<i64: 128, 128>}, {pipeline_mode = #tpu.pipeline_mode<synchronous>, transform_indices = @transform_14, window_bounds = array<i64: 1, 128>}, {transform_indices = @transform_15, window_bounds = array<i64: 1, 1, 128>}]} {
    %c0 = arith.constant 0 : index
    %c0_0 = arith.constant 0 : index
    %c0_1 = arith.constant 0 : index
    %0 = vector.load %arg1[%c0, %c0_0, %c0_1] : memref<1x16x24xbf16, #tpu.memory_space<vmem>>, vector<1x16x24xbf16>
    %1 = vector.shape_cast %0 : vector<1x16x24xbf16> to vector<16x24xbf16>
    %c0_2 = arith.constant 0 : index
    %c0_3 = arith.constant 0 : index
    %2 = vector.load %arg2[%c0_2, %c0_3] : memref<24x128xbf16, #tpu.memory_space<vmem>>, vector<24x128xbf16>
    %cst = arith.constant dense<0.000000e+00> : vector<16x128xf32>
    %3 = tpu.matmul %1, %2, %cst {dimension_numbers = #tpu.dot_dimension_numbers<[1], [0], [0], [1], [0, 0, 1, 1], [], []>} : vector<16x24xbf16>, vector<24x128xbf16>, vector<16x128xf32> -> vector<16x128xf32>
    %c0_4 = arith.constant 0 : index
    %c0_5 = arith.constant 0 : index
    %4 = vector.load %arg3[%c0_4, %c0_5] : memref<1x128xf32, #tpu.memory_space<vmem>>, vector<1x128xf32>
    %5 = vector.broadcast %4 : vector<1x128xf32> to vector<16x128xf32>
    %6 = arith.addf %3, %5 : vector<16x128xf32>
    %cst_6 = arith.constant 0.000000e+00 : f32
    %7 = vector.broadcast %cst_6 : f32 to vector<16x128xf32>
    %8 = arith.maximumf %6, %7 : vector<16x128xf32>
    %9 = vector.shape_cast %8 : vector<16x128xf32> to vector<8x2x128xf32>
    %cst_7 = arith.constant dense<0xFF800000> : vector<8x128xf32>
    %10 = vector.multi_reduction <maximumf>, %9, %cst_7 [1] : vector<8x2x128xf32> to vector<8x128xf32>
    %11 = vector.shape_cast %10 : vector<8x128xf32> to vector<1x8x128xf32>
    %cst_8 = arith.constant 0.000000e+00 : bf16
    %12 = vector.broadcast %cst_8 : bf16 to vector<1x8x128xbf16>
    %c0_9 = arith.constant 0 : index
    %c0_10 = arith.constant 0 : index
    %c0_11 = arith.constant 0 : index
    %13 = vector.load %arg17[%c0_9, %c0_10, %c0_11] : memref<1x18x128xbf16, #tpu.memory_space<vmem>>, vector<1x8x128xbf16>
    tpu.vector_store %arg17[%c0_9, %c0_10, %c0_11], %12 {strides = array<i32>} : memref<1x18x128xbf16, #tpu.memory_space<vmem>>, vector<1x8x128xbf16>,
    %cst_12 = arith.constant 0.000000e+00 : bf16
    %14 = vector.broadcast %cst_12 : bf16 to vector<1x2x128xbf16>
    %c0_13 = arith.constant 0 : index
    %c16 = arith.constant 16 : index
    %c0_14 = arith.constant 0 : index
    %15 = vector.load %arg17[%c0_13, %c16, %c0_14] : memref<1x18x128xbf16, #tpu.memory_space<vmem>>, vector<1x2x128xbf16>
    tpu.vector_store %arg17[%c0_13, %c16, %c0_14], %14 {strides = array<i32>} : memref<1x18x128xbf16, #tpu.memory_space<vmem>>, vector<1x2x128xbf16>,
    %16 = arith.truncf %11 : vector<1x8x128xf32> to vector<1x8x128xbf16>
    %c0_15 = arith.constant 0 : index
    %c8 = arith.constant 8 : index
    %c0_16 = arith.constant 0 : index
    %17 = vector.load %arg17[%c0_15, %c8, %c0_16] : memref<1x18x128xbf16, #tpu.memory_space<vmem>>, vector<1x8x128xbf16>
    tpu.vector_store %arg17[%c0_15, %c8, %c0_16], %16 {strides = array<i32>} : memref<1x18x128xbf16, #tpu.memory_space<vmem>>, vector<1x8x128xbf16>,
    %c0_17 = arith.constant 0 : index
    %c6 = arith.constant 6 : index
    %c0_18 = arith.constant 0 : index
    %18 = vector.load %arg17[%c0_17, %c6, %c0_18] : memref<1x18x128xbf16, #tpu.memory_space<vmem>>, vector<1x12x128xbf16>
    %19 = vector.extract_strided_slice %18 {offsets = [0, 0, 0], sizes = [1, 8, 128], strides = [1, 1, 1]} : vector<1x12x128xbf16> to vector<1x8x128xbf16>
    %20 = vector.extract_strided_slice %18 {offsets = [0, 1, 0], sizes = [1, 8, 128], strides = [1, 1, 1]} : vector<1x12x128xbf16> to vector<1x8x128xbf16>
    %21 = vector.extract_strided_slice %18 {offsets = [0, 2, 0], sizes = [1, 8, 128], strides = [1, 1, 1]} : vector<1x12x128xbf16> to vector<1x8x128xbf16>
    %22 = vector.extract_strided_slice %18 {offsets = [0, 3, 0], sizes = [1, 8, 128], strides = [1, 1, 1]} : vector<1x12x128xbf16> to vector<1x8x128xbf16>
    %23 = vector.extract_strided_slice %18 {offsets = [0, 4, 0], sizes = [1, 8, 128], strides = [1, 1, 1]} : vector<1x12x128xbf16> to vector<1x8x128xbf16>
    %24 = tpu.concatenate %19, %20, %21, %22, %23 in 2 : vector<1x8x128xbf16>, vector<1x8x128xbf16>, vector<1x8x128xbf16>, vector<1x8x128xbf16>, vector<1x8x128xbf16> -> vector<1x8x640xbf16>
    %25 = vector.shape_cast %24 : vector<1x8x640xbf16> to vector<8x640xbf16>
    %c0_19 = arith.constant 0 : index
    %c0_20 = arith.constant 0 : index
    %26 = vector.load %arg4[%c0_19, %c0_20] : memref<640x256xbf16, #tpu.memory_space<vmem>>, vector<640x256xbf16>
    %cst_21 = arith.constant dense<0.000000e+00> : vector<8x256xf32>
    %27 = tpu.matmul %25, %26, %cst_21 {dimension_numbers = #tpu.dot_dimension_numbers<[1], [0], [0], [1], [0, 0, 1, 1], [], []>} : vector<8x640xbf16>, vector<640x256xbf16>, vector<8x256xf32> -> vector<8x256xf32>
    %c0_22 = arith.constant 0 : index
    %c0_23 = arith.constant 0 : index
    %28 = vector.load %arg5[%c0_22, %c0_23] : memref<1x256xf32, #tpu.memory_space<vmem>>, vector<1x256xf32>
    %29 = vector.broadcast %28 : vector<1x256xf32> to vector<8x256xf32>
    %30 = arith.addf %27, %29 : vector<8x256xf32>
    %cst_24 = arith.constant 0.000000e+00 : f32
    %31 = vector.broadcast %cst_24 : f32 to vector<8x256xf32>
    %32 = arith.maximumf %30, %31 : vector<8x256xf32>
    %33 = vector.shape_cast %32 : vector<8x256xf32> to vector<4x2x256xf32>
    %cst_25 = arith.constant dense<0xFF800000> : vector<4x256xf32>
    %34 = vector.multi_reduction <maximumf>, %33, %cst_25 [1] : vector<4x2x256xf32> to vector<4x256xf32>
    %35 = vector.shape_cast %34 : vector<4x256xf32> to vector<1x4x256xf32>
    %cst_26 = arith.constant 0.000000e+00 : bf16
    %36 = vector.broadcast %cst_26 : bf16 to vector<1x8x256xbf16>
    %c0_27 = arith.constant 0 : index
    %c0_28 = arith.constant 0 : index
    %c0_29 = arith.constant 0 : index
    %37 = vector.load %arg18[%c0_27, %c0_28, %c0_29] : memref<1x13x256xbf16, #tpu.memory_space<vmem>>, vector<1x8x256xbf16>
    tpu.vector_store %arg18[%c0_27, %c0_28, %c0_29], %36 {strides = array<i32>} : memref<1x13x256xbf16, #tpu.memory_space<vmem>>, vector<1x8x256xbf16>,
    %cst_30 = arith.constant 0.000000e+00 : bf16
    %38 = vector.broadcast %cst_30 : bf16 to vector<1x5x256xbf16>
    %c0_31 = arith.constant 0 : index
    %c8_32 = arith.constant 8 : index
    %c0_33 = arith.constant 0 : index
    %39 = vector.load %arg18[%c0_31, %c8_32, %c0_33] : memref<1x13x256xbf16, #tpu.memory_space<vmem>>, vector<1x5x256xbf16>
    tpu.vector_store %arg18[%c0_31, %c8_32, %c0_33], %38 {strides = array<i32>} : memref<1x13x256xbf16, #tpu.memory_space<vmem>>, vector<1x5x256xbf16>,
    %40 = arith.truncf %35 : vector<1x4x256xf32> to vector<1x4x256xbf16>
    %c0_34 = arith.constant 0 : index
    %c8_35 = arith.constant 8 : index
    %c0_36 = arith.constant 0 : index
    %41 = vector.load %arg18[%c0_34, %c8_35, %c0_36] : memref<1x13x256xbf16, #tpu.memory_space<vmem>>, vector<1x4x256xbf16>
    tpu.vector_store %arg18[%c0_34, %c8_35, %c0_36], %40 {strides = array<i32>} : memref<1x13x256xbf16, #tpu.memory_space<vmem>>, vector<1x4x256xbf16>,
    %c0_37 = arith.constant 0 : index
    %c7 = arith.constant 7 : index
    %c0_38 = arith.constant 0 : index
    %42 = vector.load %arg18[%c0_37, %c7, %c0_38] : memref<1x13x256xbf16, #tpu.memory_space<vmem>>, vector<1x6x256xbf16>
    %43 = vector.extract_strided_slice %42 {offsets = [0, 0, 0], sizes = [1, 4, 256], strides = [1, 1, 1]} : vector<1x6x256xbf16> to vector<1x4x256xbf16>
    %44 = vector.shape_cast %43 : vector<1x4x256xbf16> to vector<4x256xbf16>
    %c0_39 = arith.constant 0 : index
    %c0_40 = arith.constant 0 : index
    %45 = vector.load %arg6[%c0_39, %c0_40] : memref<768x512xbf16, #tpu.memory_space<vmem>>, vector<256x512xbf16>
    %cst_41 = arith.constant dense<0.000000e+00> : vector<4x512xf32>
    %46 = tpu.matmul %44, %45, %cst_41 {dimension_numbers = #tpu.dot_dimension_numbers<[1], [0], [0], [1], [0, 0, 1, 1], [], []>} : vector<4x256xbf16>, vector<256x512xbf16>, vector<4x512xf32> -> vector<4x512xf32>
    %47 = vector.extract_strided_slice %42 {offsets = [0, 1, 0], sizes = [1, 4, 256], strides = [1, 1, 1]} : vector<1x6x256xbf16> to vector<1x4x256xbf16>
    %48 = vector.shape_cast %47 : vector<1x4x256xbf16> to vector<4x256xbf16>
    %c256 = arith.constant 256 : index
    %c0_42 = arith.constant 0 : index
    %49 = vector.load %arg6[%c256, %c0_42] : memref<768x512xbf16, #tpu.memory_space<vmem>>, vector<256x512xbf16>
    %cst_43 = arith.constant dense<0.000000e+00> : vector<4x512xf32>
    %50 = tpu.matmul %48, %49, %cst_43 {dimension_numbers = #tpu.dot_dimension_numbers<[1], [0], [0], [1], [0, 0, 1, 1], [], []>} : vector<4x256xbf16>, vector<256x512xbf16>, vector<4x512xf32> -> vector<4x512xf32>
    %51 = arith.addf %46, %50 : vector<4x512xf32>
    %52 = vector.extract_strided_slice %42 {offsets = [0, 2, 0], sizes = [1, 4, 256], strides = [1, 1, 1]} : vector<1x6x256xbf16> to vector<1x4x256xbf16>
    %53 = vector.shape_cast %52 : vector<1x4x256xbf16> to vector<4x256xbf16>
    %c512 = arith.constant 512 : index
    %c0_44 = arith.constant 0 : index
    %54 = vector.load %arg6[%c512, %c0_44] : memref<768x512xbf16, #tpu.memory_space<vmem>>, vector<256x512xbf16>
    %cst_45 = arith.constant dense<0.000000e+00> : vector<4x512xf32>
    %55 = tpu.matmul %53, %54, %cst_45 {dimension_numbers = #tpu.dot_dimension_numbers<[1], [0], [0], [1], [0, 0, 1, 1], [], []>} : vector<4x256xbf16>, vector<256x512xbf16>, vector<4x512xf32> -> vector<4x512xf32>
    %56 = arith.addf %51, %55 : vector<4x512xf32>
    %c0_46 = arith.constant 0 : index
    %c0_47 = arith.constant 0 : index
    %57 = vector.load %arg7[%c0_46, %c0_47] : memref<1x512xf32, #tpu.memory_space<vmem>>, vector<1x512xf32>
    %58 = vector.broadcast %57 : vector<1x512xf32> to vector<4x512xf32>
    %59 = arith.addf %56, %58 : vector<4x512xf32>
    %cst_48 = arith.constant 0.000000e+00 : f32
    %60 = vector.broadcast %cst_48 : f32 to vector<4x512xf32>
    %61 = arith.maximumf %59, %60 : vector<4x512xf32>
    %62 = vector.shape_cast %61 : vector<4x512xf32> to vector<2x2x512xf32>
    %cst_49 = arith.constant dense<0xFF800000> : vector<2x512xf32>
    %63 = vector.multi_reduction <maximumf>, %62, %cst_49 [1] : vector<2x2x512xf32> to vector<2x512xf32>
    %64 = vector.shape_cast %63 : vector<2x512xf32> to vector<1x2x512xf32>
    %cst_50 = arith.constant 0.000000e+00 : bf16
    %65 = vector.broadcast %cst_50 : bf16 to vector<1x8x512xbf16>
    %c0_51 = arith.constant 0 : index
    %c0_52 = arith.constant 0 : index
    %c0_53 = arith.constant 0 : index
    %66 = vector.load %arg19[%c0_51, %c0_52, %c0_53] : memref<1x11x512xbf16, #tpu.memory_space<vmem>>, vector<1x8x512xbf16>
    tpu.vector_store %arg19[%c0_51, %c0_52, %c0_53], %65 {strides = array<i32>} : memref<1x11x512xbf16, #tpu.memory_space<vmem>>, vector<1x8x512xbf16>,
    %cst_54 = arith.constant 0.000000e+00 : bf16
    %67 = vector.broadcast %cst_54 : bf16 to vector<1x3x512xbf16>
    %c0_55 = arith.constant 0 : index
    %c8_56 = arith.constant 8 : index
    %c0_57 = arith.constant 0 : index
    %68 = vector.load %arg19[%c0_55, %c8_56, %c0_57] : memref<1x11x512xbf16, #tpu.memory_space<vmem>>, vector<1x3x512xbf16>
    tpu.vector_store %arg19[%c0_55, %c8_56, %c0_57], %67 {strides = array<i32>} : memref<1x11x512xbf16, #tpu.memory_space<vmem>>, vector<1x3x512xbf16>,
    %69 = arith.truncf %64 : vector<1x2x512xf32> to vector<1x2x512xbf16>
    %c0_58 = arith.constant 0 : index
    %c8_59 = arith.constant 8 : index
    %c0_60 = arith.constant 0 : index
    %70 = vector.load %arg19[%c0_58, %c8_59, %c0_60] : memref<1x11x512xbf16, #tpu.memory_space<vmem>>, vector<1x2x512xbf16>
    tpu.vector_store %arg19[%c0_58, %c8_59, %c0_60], %69 {strides = array<i32>} : memref<1x11x512xbf16, #tpu.memory_space<vmem>>, vector<1x2x512xbf16>,
    %c0_61 = arith.constant 0 : index
    %c7_62 = arith.constant 7 : index
    %c0_63 = arith.constant 0 : index
    %71 = vector.load %arg19[%c0_61, %c7_62, %c0_63] : memref<1x11x512xbf16, #tpu.memory_space<vmem>>, vector<1x4x512xbf16>
    %72 = vector.extract_strided_slice %71 {offsets = [0, 0, 0], sizes = [1, 2, 512], strides = [1, 1, 1]} : vector<1x4x512xbf16> to vector<1x2x512xbf16>
    %73 = vector.shape_cast %72 : vector<1x2x512xbf16> to vector<2x512xbf16>
    %c0_64 = arith.constant 0 : index
    %c0_65 = arith.constant 0 : index
    %74 = vector.load %arg8[%c0_64, %c0_65] : memref<1536x512xbf16, #tpu.memory_space<vmem>>, vector<512x512xbf16>
    %cst_66 = arith.constant dense<0.000000e+00> : vector<2x512xf32>
    %75 = tpu.matmul %73, %74, %cst_66 {dimension_numbers = #tpu.dot_dimension_numbers<[1], [0], [0], [1], [0, 0, 1, 1], [], []>} : vector<2x512xbf16>, vector<512x512xbf16>, vector<2x512xf32> -> vector<2x512xf32>
    %76 = vector.extract_strided_slice %71 {offsets = [0, 1, 0], sizes = [1, 2, 512], strides = [1, 1, 1]} : vector<1x4x512xbf16> to vector<1x2x512xbf16>
    %77 = vector.shape_cast %76 : vector<1x2x512xbf16> to vector<2x512xbf16>
    %c512_67 = arith.constant 512 : index
    %c0_68 = arith.constant 0 : index
    %78 = vector.load %arg8[%c512_67, %c0_68] : memref<1536x512xbf16, #tpu.memory_space<vmem>>, vector<512x512xbf16>
    %cst_69 = arith.constant dense<0.000000e+00> : vector<2x512xf32>
    %79 = tpu.matmul %77, %78, %cst_69 {dimension_numbers = #tpu.dot_dimension_numbers<[1], [0], [0], [1], [0, 0, 1, 1], [], []>} : vector<2x512xbf16>, vector<512x512xbf16>, vector<2x512xf32> -> vector<2x512xf32>
    %80 = arith.addf %75, %79 : vector<2x512xf32>
    %81 = vector.extract_strided_slice %71 {offsets = [0, 2, 0], sizes = [1, 2, 512], strides = [1, 1, 1]} : vector<1x4x512xbf16> to vector<1x2x512xbf16>
    %82 = vector.shape_cast %81 : vector<1x2x512xbf16> to vector<2x512xbf16>
    %c1024 = arith.constant 1024 : index
    %c0_70 = arith.constant 0 : index
    %83 = vector.load %arg8[%c1024, %c0_70] : memref<1536x512xbf16, #tpu.memory_space<vmem>>, vector<512x512xbf16>
    %cst_71 = arith.constant dense<0.000000e+00> : vector<2x512xf32>
    %84 = tpu.matmul %82, %83, %cst_71 {dimension_numbers = #tpu.dot_dimension_numbers<[1], [0], [0], [1], [0, 0, 1, 1], [], []>} : vector<2x512xbf16>, vector<512x512xbf16>, vector<2x512xf32> -> vector<2x512xf32>
    %85 = arith.addf %80, %84 : vector<2x512xf32>
    %c0_72 = arith.constant 0 : index
    %c0_73 = arith.constant 0 : index
    %86 = vector.load %arg9[%c0_72, %c0_73] : memref<1x512xf32, #tpu.memory_space<vmem>>, vector<1x512xf32>
    %87 = vector.broadcast %86 : vector<1x512xf32> to vector<2x512xf32>
    %88 = arith.addf %85, %87 : vector<2x512xf32>
    %cst_74 = arith.constant 0.000000e+00 : f32
    %89 = vector.broadcast %cst_74 : f32 to vector<2x512xf32>
    %90 = arith.maximumf %88, %89 : vector<2x512xf32>
    %91 = vector.shape_cast %90 : vector<2x512xf32> to vector<1x2x512xf32>
    %cst_75 = arith.constant dense<0.000000e+00> : vector<1x512xf32>
    %92 = vector.multi_reduction <add>, %91, %cst_75 [1] : vector<1x2x512xf32> to vector<1x512xf32>
    %cst_76 = arith.constant 2.000000e+00 : f32
    %93 = vector.broadcast %cst_76 : f32 to vector<1x512xf32>
    %94 = arith.divf %92, %93 : vector<1x512xf32>
    %95 = arith.truncf %94 : vector<1x512xf32> to vector<1x512xbf16>
    %c0_77 = arith.constant 0 : index
    %c0_78 = arith.constant 0 : index
    %96 = vector.load %arg10[%c0_77, %c0_78] : memref<512x256xbf16, #tpu.memory_space<vmem>>, vector<512x256xbf16>
    %cst_79 = arith.constant dense<0.000000e+00> : vector<1x256xf32>
    %97 = tpu.matmul %95, %96, %cst_79 {dimension_numbers = #tpu.dot_dimension_numbers<[1], [0], [0], [1], [0, 0, 1, 1], [], []>} : vector<1x512xbf16>, vector<512x256xbf16>, vector<1x256xf32> -> vector<1x256xf32>
    %c0_80 = arith.constant 0 : index
    %c0_81 = arith.constant 0 : index
    %98 = vector.load %arg11[%c0_80, %c0_81] : memref<1x256xf32, #tpu.memory_space<vmem>>, vector<1x256xf32>
    %99 = arith.addf %97, %98 : vector<1x256xf32>
    %cst_82 = arith.constant 0.000000e+00 : f32
    %100 = vector.broadcast %cst_82 : f32 to vector<1x256xf32>
    %101 = arith.maximumf %99, %100 : vector<1x256xf32>
    %102 = arith.truncf %101 : vector<1x256xf32> to vector<1x256xbf16>
    %c0_83 = arith.constant 0 : index
    %c0_84 = arith.constant 0 : index
    %103 = vector.load %arg12[%c0_83, %c0_84] : memref<256x128xbf16, #tpu.memory_space<vmem>>, vector<256x128xbf16>
    %cst_85 = arith.constant dense<0.000000e+00> : vector<1x128xf32>
    %104 = tpu.matmul %102, %103, %cst_85 {dimension_numbers = #tpu.dot_dimension_numbers<[1], [0], [0], [1], [0, 0, 1, 1], [], []>} : vector<1x256xbf16>, vector<256x128xbf16>, vector<1x128xf32> -> vector<1x128xf32>
    %c0_86 = arith.constant 0 : index
    %c0_87 = arith.constant 0 : index
    %105 = vector.load %arg13[%c0_86, %c0_87] : memref<1x128xf32, #tpu.memory_space<vmem>>, vector<1x128xf32>
    %106 = arith.addf %104, %105 : vector<1x128xf32>
    %cst_88 = arith.constant 0.000000e+00 : f32
    %107 = vector.broadcast %cst_88 : f32 to vector<1x128xf32>
    %108 = arith.maximumf %106, %107 : vector<1x128xf32>
    %109 = arith.truncf %108 : vector<1x128xf32> to vector<1x128xbf16>
    %c0_89 = arith.constant 0 : index
    %c0_90 = arith.constant 0 : index
    %110 = vector.load %arg14[%c0_89, %c0_90] : memref<128x128xbf16, #tpu.memory_space<vmem>>, vector<128x128xbf16>
    %cst_91 = arith.constant dense<0.000000e+00> : vector<1x128xf32>
    %111 = tpu.matmul %109, %110, %cst_91 {dimension_numbers = #tpu.dot_dimension_numbers<[1], [0], [0], [1], [0, 0, 1, 1], [], []>} : vector<1x128xbf16>, vector<128x128xbf16>, vector<1x128xf32> -> vector<1x128xf32>
    %c0_92 = arith.constant 0 : index
    %c0_93 = arith.constant 0 : index
    %112 = vector.load %arg15[%c0_92, %c0_93] : memref<1x128xf32, #tpu.memory_space<vmem>>, vector<1x128xf32>
    %113 = arith.addf %111, %112 : vector<1x128xf32>
    %114 = vector.shape_cast %113 : vector<1x128xf32> to vector<1x1x128xf32>
    %c0_94 = arith.constant 0 : index
    %c0_95 = arith.constant 0 : index
    %c0_96 = arith.constant 0 : index
    %115 = vector.load %arg16[%c0_94, %c0_95, %c0_96] : memref<1x1x128xf32, #tpu.memory_space<vmem>>, vector<1x1x128xf32>
    tpu.vector_store %arg16[%c0_94, %c0_95, %c0_96], %114 {strides = array<i32>} : memref<1x1x128xf32, #tpu.memory_space<vmem>>, vector<1x1x128xf32>,
    return
  }
  func.func @transform_0(%arg0: i32) -> (i32, i32, i32) {
    %c0_i32 = arith.constant 0 : i32
    %c0_i32_0 = arith.constant 0 : i32
    %c0_i32_1 = arith.constant 0 : i32
    return %arg0, %c0_i32, %c0_i32_0 : i32, i32, i32
  }
  func.func @transform_1(%arg0: i32) -> (i32, i32) {
    %c0_i32 = arith.constant 0 : i32
    %c0_i32_0 = arith.constant 0 : i32
    %c0_i32_1 = arith.constant 0 : i32
    return %c0_i32, %c0_i32_0 : i32, i32
  }
  func.func @transform_2(%arg0: i32) -> (i32, i32) {
    %c0_i32 = arith.constant 0 : i32
    %c0_i32_0 = arith.constant 0 : i32
    %c0_i32_1 = arith.constant 0 : i32
    return %c0_i32, %c0_i32_0 : i32, i32
  }
  func.func @transform_3(%arg0: i32) -> (i32, i32) {
    %c0_i32 = arith.constant 0 : i32
    %c0_i32_0 = arith.constant 0 : i32
    %c0_i32_1 = arith.constant 0 : i32
    return %c0_i32, %c0_i32_0 : i32, i32
  }
  func.func @transform_4(%arg0: i32) -> (i32, i32) {
    %c0_i32 = arith.constant 0 : i32
    %c0_i32_0 = arith.constant 0 : i32
    %c0_i32_1 = arith.constant 0 : i32
    return %c0_i32, %c0_i32_0 : i32, i32
  }
  func.func @transform_5(%arg0: i32) -> (i32, i32) {
    %c0_i32 = arith.constant 0 : i32
    %c0_i32_0 = arith.constant 0 : i32
    %c0_i32_1 = arith.constant 0 : i32
    return %c0_i32, %c0_i32_0 : i32, i32
  }
  func.func @transform_6(%arg0: i32) -> (i32, i32) {
    %c0_i32 = arith.constant 0 : i32
    %c0_i32_0 = arith.constant 0 : i32
    %c0_i32_1 = arith.constant 0 : i32
    return %c0_i32, %c0_i32_0 : i32, i32
  }
  func.func @transform_7(%arg0: i32) -> (i32, i32) {
    %c0_i32 = arith.constant 0 : i32
    %c0_i32_0 = arith.constant 0 : i32
    %c0_i32_1 = arith.constant 0 : i32
    return %c0_i32, %c0_i32_0 : i32, i32
  }
  func.func @transform_8(%arg0: i32) -> (i32, i32) {
    %c0_i32 = arith.constant 0 : i32
    %c0_i32_0 = arith.constant 0 : i32
    %c0_i32_1 = arith.constant 0 : i32
    return %c0_i32, %c0_i32_0 : i32, i32
  }
  func.func @transform_9(%arg0: i32) -> (i32, i32) {
    %c0_i32 = arith.constant 0 : i32
    %c0_i32_0 = arith.constant 0 : i32
    %c0_i32_1 = arith.constant 0 : i32
    return %c0_i32, %c0_i32_0 : i32, i32
  }
  func.func @transform_10(%arg0: i32) -> (i32, i32) {
    %c0_i32 = arith.constant 0 : i32
    %c0_i32_0 = arith.constant 0 : i32
    %c0_i32_1 = arith.constant 0 : i32
    return %c0_i32, %c0_i32_0 : i32, i32
  }
  func.func @transform_11(%arg0: i32) -> (i32, i32) {
    %c0_i32 = arith.constant 0 : i32
    %c0_i32_0 = arith.constant 0 : i32
    %c0_i32_1 = arith.constant 0 : i32
    return %c0_i32, %c0_i32_0 : i32, i32
  }
  func.func @transform_12(%arg0: i32) -> (i32, i32) {
    %c0_i32 = arith.constant 0 : i32
    %c0_i32_0 = arith.constant 0 : i32
    %c0_i32_1 = arith.constant 0 : i32
    return %c0_i32, %c0_i32_0 : i32, i32
  }
  func.func @transform_13(%arg0: i32) -> (i32, i32) {
    %c0_i32 = arith.constant 0 : i32
    %c0_i32_0 = arith.constant 0 : i32
    %c0_i32_1 = arith.constant 0 : i32
    return %c0_i32, %c0_i32_0 : i32, i32
  }
  func.func @transform_14(%arg0: i32) -> (i32, i32) {
    %c0_i32 = arith.constant 0 : i32
    %c0_i32_0 = arith.constant 0 : i32
    %c0_i32_1 = arith.constant 0 : i32
    return %c0_i32, %c0_i32_0 : i32, i32
  }
  func.func @transform_15(%arg0: i32) -> (i32, i32, i32) {
    %c0_i32 = arith.constant 0 : i32
    %c0_i32_0 = arith.constant 0 : i32
    %c0_i32_1 = arith.constant 0 : i32
    return %arg0, %c0_i32, %c0_i32_0 : i32, i32, i32
  }
}

</mosaic_0001>

<bundles_post_ra>
// kernel: iq_cnn_forward.1
= control target key start
LH: loop header
LB: loop body
LE: loop exit
PB: predicated region body
PF: predicated region fallthrough
CT: control target
= control target key end

     0   :  { %s10918_s0 = inlined_call_operand.vmem [shape: bf16[2,16,24], index: 0, kind: input, shape index: {}]   ;;  %s10919_s1 = inlined_call_operand.hbm [shape: bf16[24,128], index: 1, kind: input, shape index: {}]   ;;  %s10920_s2 = inlined_call_operand.hbm [shape: f32[1,128], index: 2, kind: input, shape index: {}]   ;;  %s10921_s3 = inlined_call_operand.hbm [shape: bf16[640,256], index: 3, kind: input, shape index: {}]   ;;  %s10922_s4 = inlined_call_operand.hbm [shape: f32[1,256], index: 4, kind: input, shape index: {}]   ;;  %s10923_s5 = inlined_call_operand.hbm [shape: bf16[768,512], index: 5, kind: input, shape index: {}]   ;;  %s10924_s6 = inlined_call_operand.hbm [shape: f32[1,512], index: 6, kind: input, shape index: {}]   ;;  %s10925_s7 = inlined_call_operand.hbm [shape: bf16[1536,512], index: 7, kind: input, shape index: {}]   ;;  %s10926_s8 = inlined_call_operand.hbm [shape: f32[1,512], index: 8, kind: input, shape index: {}]   ;;  %s10927_s9 = inlined_call_operand.hbm [shape: bf16[512,256], index: 9, kind: input, shape index: {}]   ;;  %s10928_s10 = inlined_call_operand.hbm [shape: f32[1,256], index: 10, kind: input, shape index: {}]   ;;  %s10929_s11 = inlined_call_operand.hbm [shape: bf16[256,128], index: 11, kind: input, shape index: {}]   ;;  %s10930_s12 = inlined_call_operand.hbm [shape: f32[1,128], index: 12, kind: input, shape index: {}]   ;;  %s10931_s13 = inlined_call_operand.hbm [shape: bf16[128,128], index: 13, kind: input, shape index: {}]   ;;  %s10932_s14 = inlined_call_operand.hbm [shape: f32[1,128], index: 14, kind: input, shape index: {}]   ;;  %s10933_s15 = inlined_call_operand.hbm [shape: f32[2,1,128], index: 15, kind: output, shape index: {}]  }
   0x1   :  { %10953 = sst [smem:[#allocation46_spill]] %s10919_s1 }
   0x2   :  { %10954 = sst [smem:[#allocation47_spill]] %s10920_s2 }
   0x3   :  { %10955 = sst [smem:[#allocation48_spill]] %s10921_s3 }
   0x4   :  { %10956 = sst [smem:[#allocation49_spill]] %s10922_s4 }
   0x5   :  { %10957 = sst [smem:[#allocation50_spill]] %s10933_s15 }
   0x6   :  { %20 = vsyncpa [#allocation6], 0 }
   0x7   :  { %21 = vsyncpa [#allocation9], 0 }
   0x8   :  { %22 = vsyncpa [#allocation12], 0 }
   0x9   :  { %23 = vsyncpa [#allocation15], 0 }
   0xa   :  { %24 = vsyncpa [#allocation18], 0 }
   0xb   :  { %25 = vsyncpa [#allocation21], 0 }
   0xc   :  { %26 = vsyncpa [#allocation24], 0 }
   0xd   :  { %27 = vsyncpa [#allocation27], 0 }
   0xe   :  { %28 = vsyncpa [#allocation7], 0 }
   0xf   :  { %30 = vsyncpa [#allocation7 + $0x1], 0  ;;  %s10156_s18 = smov 0   ;;  %s10158_s19 = smov 0  }
  0x10   :  { %s10160_s20 = smov 0   ;;  %s10162_s21 = smov 0  }
  0x11 LB: > { %10958 = sst [smem:[#allocation38_spill]] %s10037_s18  ;;  %s10177_s22 = sadd.s32 4294967295, %s10049_s21   ;;  %s10049_s21 = sphi %s10162_s21, %s11008_s21   ;;  %s10045_s20 = sphi %s10160_s20, %s11011_s20   ;;  %s10041_s19 = sphi %s10158_s19, %s11010_s19   ;;  %s10037_s18 = sphi %s10156_s18, %s11009_s18  }
  0x12   : > { %10959 = sst [smem:[#allocation39_spill]] %s10041_s19  ;;  %s7335_s23 = sadd.s32 4294967294, %s10049_s21  }
  0x13   : > { %10960 = sst [smem:[#allocation40_spill]] %s10045_s20  ;;  %s10181_s24 = sadd.s32 1, %s10049_s21  }
  0x14   : > { %10961 = sst [smem:[#allocation41_spill]] %s10049_s21  ;;  %s363_s25 = sadd.s32 1, %s10045_s20 }
  0x15   : > { %10962 = sst [smem:[#allocation42_spill]] %s10181_s24  ;;  %s360_s26 = ssub.s32 %s10049_s21, %s10181_s24 }
  0x16   : > { %p373_p0 = scmp.ne.s32.totalorder %s10045_s20, %s10041_s19  ;;  %p361_p1 = scmp.eq.s32.totalorder %s360_s26, 0 }
  0x17   : > { %p374_p2 = scmp.eq.s32.totalorder %s10177_s22, 1  ;;  %p379_p3 = scmp.ne.s32.totalorder %s10041_s19, %s10037_s18 }
  0x18   : > { %p380_p4 = scmp.eq.s32.totalorder %s7335_s23, 1  ;;  %p7336_p7 = scmp.ge.s32.totalorder %s10049_s21, 1 }
  0x19   : > { %s10192_s27 = scalar_select %p361_p1, %s10045_s20, %s363_s25  }
  0x1a   : > { %p10194_p5 = por %p374_p2, %p373_p0  ;;  %p10198_p6 = por %p380_p4, %p379_p3 }
  0x1b   : > { %10963 = sst [smem:[#allocation43_spill]] %s10192_s27  ;;  %p387_p8 = scmp.lt.s32.totalorder %s10049_s21, 3 }
  0x1c   : > { %s10964_s28 = scalar_select %p10194_p5, 1, 0 }
  0x1d   : > { %s10966_s29 = scalar_select %p10198_p6, 1, 0 }
  0x1e   : > { %10965 = sst [smem:[#allocation44_spill]] %s10964_s28  ;;  %p10941_p9 = scmp.eq.s32.totalorder %s10177_s22, 0 }
  0x1f   : > { %10967 = sst [smem:[#allocation45_spill]] %s10966_s29  ;;  %p10205_p10 = pnand %p7336_p7, %p387_p8 }
  0x20   : > { %s10051_s16 = smov [#allocation8]   ;;  %s10052_s23 = smov [#allocation11]  }
  0x21   : > { %s10968_s30 = scalar_select %p10205_p10, 1, 0 }
  0x22   : > { %s413_s17 = sshll.u32 %s10051_s16, 4  ;;  %p8309_p11 = pneg %p10205_p10  ;;  %s414_s17 = int_to_ptr.vmem [resolvable:$true] %s413_s17 }
  0x23   : > { %s437_s25 = sshll.u32 %s10052_s23, 4  ;;  %s10053_s27 = smov [#allocation14]   ;;  %s10217_s25 = int_to_ptr.vmem [resolvable:$true] %s437_s25 }
  0x24   : > { %p10213_p12 = pnand %p10941_p9, %p8309_p11  ;;  %s461_s20 = sshll.u32 %s10053_s27, 4  ;;  %s10219_s20 = int_to_ptr.vmem [resolvable:$true] %s461_s20 }
  0x25   : > { %s10970_s2 = sld [smem:[#allocation47_spill]] }
  0x26   : > { %p10229_p0 = pneg %p10213_p12 }
  0x2b   : > { %s9563_s16 = scalar_lea.hbm %s10970_s2, 16 }
  0x2c   : > { %p9564_p13 = scmp.ne.s32.totalorder %s10970_s2, %s9563_s16  ;;  %p9570_p3 = scmp.lt.u32.totalorder %s9563_s16, %s10970_s2 }
  0x2e   : > { %p9566_p1 = pnand %p10229_p0, %p9564_p13 }
  0x30   : > { %p9567_p2 = pneg %p9566_p1 }
  0x32   : > { %p9572_p4 = pnand %p9570_p3, %p9567_p2 }
  0x34   : > { %9575 = shalt.err (!%p9572_p4)
}
  0x35   : > { %s9576_s24 = scalar_lea.vmem %s414_s17, 16  ;;  %s9583_s18 = scalar_lea.vmem %s414_s17, 32 }
  0x36   : > { %p9577_p7 = scmp.ne.s32.totalorder %s414_s17, %s9576_s24  ;;  %p9584_p9 = scmp.lt.s32.totalorder %s414_s17, %s414_s17 }
  0x37   : > { %p9585_p6 = scmp.lt.s32.totalorder %s9583_s18, %s9576_s24 }
  0x38   : > { %p9579_p8 = pnand %p9577_p7, %p10229_p0 }
  0x39   : > { %p9586_p5 = por %p9585_p6, %p9584_p9 }
  0x3a   : > { %p9580_p11 = pneg %p9579_p8 }
  0x3c   : > { %p9587_p10 = pnand %p9586_p5, %p9580_p11 }
  0x3e   : > { %9590 = shalt.err (!%p9587_p10)
}
  0x3f   : > { %8315 = dma.hbm_to_vmem [thread:$0]  (!%p10213_p12), %s10970_s2, 16, %s414_s17, [#allocation9]  }
  0x40   : > { %s10972_s4 = sld [smem:[#allocation49_spill]] }
  0x46   : > { %s9591_s27 = scalar_lea.hbm %s10972_s4, 32 }
  0x47   : > { %p9592_p13 = scmp.ne.s32.totalorder %s10972_s4, %s9591_s27  ;;  %p9598_p5 = scmp.lt.u32.totalorder %s9591_s27, %s10972_s4 }
  0x49   : > { %p9594_p1 = pnand %p9592_p13, %p10229_p0 }
  0x4b   : > { %p9595_p6 = pneg %p9594_p1 }
  0x4d   : > { %p9600_p9 = pnand %p9598_p5, %p9595_p6 }
  0x4f   : > { %9603 = shalt.err (!%p9600_p9)
}
  0x50   : > { %s9604_s17 = scalar_lea.vmem %s10217_s25, 32  ;;  %p9612_p4 = scmp.lt.s32.totalorder %s10217_s25, %s10217_s25 }
  0x51   : > { %p9605_p10 = scmp.ne.s32.totalorder %s10217_s25, %s9604_s17  ;;  %p9613_p7 = scmp.lt.s32.totalorder %s9604_s17, %s9604_s17 }
  0x53   : > { %p9607_p2 = pnand %p9605_p10, %p10229_p0  ;;  %p9614_p8 = por %p9613_p7, %p9612_p4 }
  0x55   : > { %p9608_p3 = pneg %p9607_p2 }
  0x57   : > { %p9615_p11 = pnand %p9614_p8, %p9608_p3 }
  0x59   : > { %9618 = shalt.err (!%p9615_p11)
}
  0x5a   : > { %8321 = dma.hbm_to_vmem [thread:$0]  (!%p10213_p12), %s10972_s4, 32, %s10217_s25, [#allocation12]  }
  0x5b   : > { %s9619_s15 = scalar_lea.hbm %s10924_s6, 64 }
  0x5c   : > { %p9620_p13 = scmp.ne.s32.totalorder %s10924_s6, %s9619_s15  ;;  %p9626_p5 = scmp.lt.u32.totalorder %s9619_s15, %s10924_s6 }
  0x5e   : > { %p9622_p1 = pnand %p9620_p13, %p10229_p0 }
  0x60   : > { %p9623_p6 = pneg %p9622_p1 }
  0x62   : > { %p9628_p9 = pnand %p9626_p5, %p9623_p6 }
  0x64   : > { %9631 = shalt.err (!%p9628_p9)
}
  0x65   : > { %s9632_s25 = scalar_lea.vmem %s10219_s20, 64  ;;  %p9640_p4 = scmp.lt.s32.totalorder %s10219_s20, %s10219_s20 }
  0x66   : > { %p9633_p10 = scmp.ne.s32.totalorder %s10219_s20, %s9632_s25  ;;  %p9641_p7 = scmp.lt.s32.totalorder %s9632_s25, %s9632_s25 }
  0x68   : > { %p9635_p2 = pnand %p9633_p10, %p10229_p0  ;;  %p9642_p8 = por %p9641_p7, %p9640_p4 }
  0x6a   : > { %p9636_p3 = pneg %p9635_p2 }
  0x6c   : > { %p9643_p11 = pnand %p9642_p8, %p9636_p3 }
  0x6e   : > { %9646 = shalt.err (!%p9643_p11)
}
  0x6f   : > { %8327 = dma.hbm_to_vmem [thread:$0]  (!%p10213_p12), %s10924_s6, 64, %s10219_s20, [#allocation15]  }
  0x70   : > { %s10054_s28 = smov [#allocation17]   ;;  %s10055_s29 = smov [#allocation20]  }
  0x71   : > { %s485_s21 = sshll.u32 %s10054_s28, 4  ;;  %s509_s15 = sshll.u32 %s10055_s29, 4  ;;  %s486_s21 = int_to_ptr.vmem [resolvable:$true] %s485_s21  ;;  %s510_s15 = int_to_ptr.vmem [resolvable:$true] %s509_s15 }
  0x72   : > { %s9647_s24 = scalar_lea.hbm %s10926_s8, 64 }
  0x73   : > { %p9648_p13 = scmp.ne.s32.totalorder %s10926_s8, %s9647_s24  ;;  %p9654_p5 = scmp.lt.u32.totalorder %s9647_s24, %s10926_s8 }
  0x75   : > { %p9650_p1 = pnand %p9648_p13, %p10229_p0 }
  0x77   : > { %p9651_p6 = pneg %p9650_p1 }
  0x79   : > { %p9656_p9 = pnand %p9654_p5, %p9651_p6 }
  0x7b   : > { %9659 = shalt.err (!%p9656_p9)
}
  0x7c   : > { %s9660_s20 = scalar_lea.vmem %s486_s21, 64  ;;  %p9668_p4 = scmp.lt.s32.totalorder %s486_s21, %s486_s21 }
  0x7d   : > { %p9661_p10 = scmp.ne.s32.totalorder %s486_s21, %s9660_s20  ;;  %p9669_p7 = scmp.lt.s32.totalorder %s9660_s20, %s9660_s20 }
  0x7f   : > { %p9663_p2 = pnand %p9661_p10, %p10229_p0  ;;  %p9670_p8 = por %p9669_p7, %p9668_p4 }
  0x81   : > { %p9664_p3 = pneg %p9663_p2 }
  0x83   : > { %p9671_p11 = pnand %p9670_p8, %p9664_p3 }
  0x85   : > { %9674 = shalt.err (!%p9671_p11)
}
  0x86   : > { %8333 = dma.hbm_to_vmem [thread:$0]  (!%p10213_p12), %s10926_s8, 64, %s486_s21, [#allocation18]  }
  0x87   : > { %s9675_s16 = scalar_lea.hbm %s10928_s10, 32 }
  0x88   : > { %p9676_p13 = scmp.ne.s32.totalorder %s10928_s10, %s9675_s16  ;;  %p9682_p5 = scmp.lt.u32.totalorder %s9675_s16, %s10928_s10 }
  0x8a   : > { %p9678_p1 = pnand %p9676_p13, %p10229_p0 }
  0x8c   : > { %p9679_p6 = pneg %p9678_p1 }
  0x8e   : > { %p9684_p9 = pnand %p9682_p5, %p9679_p6 }
  0x90   : > { %9687 = shalt.err (!%p9684_p9)
}
  0x91   : > { %s9688_s17 = scalar_lea.vmem %s510_s15, 32  ;;  %p9696_p4 = scmp.lt.s32.totalorder %s510_s15, %s510_s15 }
  0x92   : > { %p9689_p10 = scmp.ne.s32.totalorder %s510_s15, %s9688_s17  ;;  %p9697_p7 = scmp.lt.s32.totalorder %s9688_s17, %s9688_s17 }
  0x94   : > { %p9691_p2 = pnand %p9689_p10, %p10229_p0  ;;  %p9698_p8 = por %p9697_p7, %p9696_p4 }
  0x96   : > { %p9692_p3 = pneg %p9691_p2 }
  0x98   : > { %p9699_p11 = pnand %p9698_p8, %p9692_p3 }
  0x9a   : > { %9702 = shalt.err (!%p9699_p11)
}
  0x9b   : > { %8339 = dma.hbm_to_vmem [thread:$0]  (!%p10213_p12), %s10928_s10, 32, %s510_s15, [#allocation21]  }
  0x9c   : > { %s10056_s19 = smov [#allocation23]   ;;  %s10057_s2 = smov [#allocation5]  }
  0x9d   : > { %s533_s28 = sshll.u32 %s10056_s19, 4  ;;  %s399_s29 = sshll.u32 %s10057_s2, 4  ;;  %s534_s28 = int_to_ptr.vmem [resolvable:$true] %s533_s28  ;;  %s400_s29 = int_to_ptr.vmem [resolvable:$true] %s399_s29 }
  0x9e   : > { %s9703_s24 = scalar_lea.hbm %s10930_s12, 16 }
  0x9f   : > { %p9704_p13 = scmp.ne.s32.totalorder %s10930_s12, %s9703_s24  ;;  %p9710_p5 = scmp.lt.u32.totalorder %s9703_s24, %s10930_s12 }
  0xa1   : > { %p9706_p1 = pnand %p9704_p13, %p10229_p0 }
  0xa3   : > { %p9707_p6 = pneg %p9706_p1 }
  0xa5   : > { %p9712_p9 = pnand %p9710_p5, %p9707_p6 }
  0xa7   : > { %9715 = shalt.err (!%p9712_p9)
}
  0xa8   : > { %s9716_s15 = scalar_lea.vmem %s534_s28, 16  ;;  %s9723_s20 = scalar_lea.vmem %s534_s28, 32 }
  0xa9   : > { %p9717_p10 = scmp.ne.s32.totalorder %s534_s28, %s9716_s15  ;;  %p9724_p4 = scmp.lt.s32.totalorder %s534_s28, %s534_s28 }
  0xaa   : > { %p9725_p7 = scmp.lt.s32.totalorder %s9723_s20, %s9716_s15 }
  0xab   : > { %p9719_p2 = pnand %p9717_p10, %p10229_p0 }
  0xac   : > { %p9726_p8 = por %p9725_p7, %p9724_p4 }
  0xad   : > { %p9720_p3 = pneg %p9719_p2 }
  0xaf   : > { %p9727_p11 = pnand %p9726_p8, %p9720_p3 }
  0xb1   : > { %9730 = shalt.err (!%p9727_p11)
}
  0xb2   : > { %8345 = dma.hbm_to_vmem [thread:$0]  (!%p10213_p12), %s10930_s12, 16, %s534_s28, [#allocation24]  }
  0xb3   : > { %s10973_s1 = sld [smem:[#allocation46_spill]] }
  0xb9   : > { %s9731_s24 = scalar_lea.hbm %s10973_s1, 192 }
  0xba   : > { %p9732_p13 = scmp.ne.s32.totalorder %s10973_s1, %s9731_s24  ;;  %p9738_p5 = scmp.lt.u32.totalorder %s9731_s24, %s10973_s1 }
  0xbc   : > { %p9734_p1 = pnand %p9732_p13, %p10229_p0 }
  0xbe   : > { %p9735_p6 = pneg %p9734_p1 }
  0xc0   : > { %p9740_p9 = pnand %p9738_p5, %p9735_p6 }
  0xc2   : > { %9743 = shalt.err (!%p9740_p9)
}
  0xc3   : > { %s9744_s15 = scalar_lea.vmem %s400_s29, 192  ;;  %p9752_p4 = scmp.lt.s32.totalorder %s400_s29, %s400_s29 }
  0xc4   : > { %p9745_p10 = scmp.ne.s32.totalorder %s400_s29, %s9744_s15  ;;  %p9753_p7 = scmp.lt.s32.totalorder %s9744_s15, %s9744_s15 }
  0xc6   : > { %p9747_p2 = pnand %p9745_p10, %p10229_p0  ;;  %p9754_p8 = por %p9753_p7, %p9752_p4 }
  0xc8   : > { %p9748_p3 = pneg %p9747_p2 }
  0xca   : > { %p9755_p11 = pnand %p9754_p8, %p9748_p3 }
  0xcc   : > { %9758 = shalt.err (!%p9755_p11)
}
  0xcd   : > { %s10947_s28 = smov 64   ;;  %s10949_s20 = smov 4  }
  0xce   : > { %8312 = dma.hbm_to_vmem [thread:$0]  (!%p10213_p12), %s10973_s1, 192, %s400_s29, [#allocation6], %s10947_s28, %s10947_s28, %s10949_s20  }
  0xcf   : > { %s10060_s16 = smov [#allocation10]   ;;  %s10974_s3 = sld [smem:[#allocation48_spill]] }
  0xd0   : > { %s423_s27 = sshll.u32 %s10060_s16, 4  ;;  %s424_s27 = int_to_ptr.vmem [resolvable:$true] %s423_s27 }
  0xd5   : > { %s9759_s25 = scalar_lea.hbm %s10974_s3, 10240 }
  0xd6   : > { %p9760_p13 = scmp.ne.s32.totalorder %s10974_s3, %s9759_s25  ;;  %p9766_p5 = scmp.lt.u32.totalorder %s9759_s25, %s10974_s3 }
  0xd8   : > { %p9762_p1 = pnand %p9760_p13, %p10229_p0 }
  0xda   : > { %p9763_p6 = pneg %p9762_p1 }
  0xdc   : > { %p9768_p9 = pnand %p9766_p5, %p9763_p6 }
  0xde   : > { %9771 = shalt.err (!%p9768_p9)
}
  0xdf   : > { %s9772_s29 = scalar_lea.vmem %s424_s27, 10240  ;;  %p9780_p4 = scmp.lt.s32.totalorder %s424_s27, %s424_s27 }
  0xe0   : > { %p9773_p10 = scmp.ne.s32.totalorder %s424_s27, %s9772_s29  ;;  %p9781_p7 = scmp.lt.s32.totalorder %s9772_s29, %s9772_s29 }
  0xe2   : > { %p9775_p2 = pnand %p9773_p10, %p10229_p0  ;;  %p9782_p8 = por %p9781_p7, %p9780_p4 }
  0xe4   : > { %p9776_p3 = pneg %p9775_p2 }
  0xe6   : > { %p9783_p11 = pnand %p9782_p8, %p9776_p3 }
  0xe8   : > { %9786 = shalt.err (!%p9783_p11)
}
  0xe9   : > { %s10951_s19 = smov 128   ;;  %s10952_s2 = smov 8  }
  0xea   : > { %8318 = dma.hbm_to_vmem [thread:$0]  (!%p10213_p12), %s10974_s3, 10240, %s424_s27, [#allocation9], %s10951_s19, %s10951_s19, %s10952_s2  }
  0xeb   : > { %s10063_s24 = smov [#allocation13]   ;;  %s9787_s21 = scalar_lea.hbm %s10923_s5, 24576 }
  0xec   : > { %s447_s18 = sshll.u32 %s10063_s24, 4  ;;  %p9788_p13 = scmp.ne.s32.totalorder %s10923_s5, %s9787_s21  ;;  %s448_s18 = int_to_ptr.vmem [resolvable:$true] %s447_s18 }
  0xed   : > { %p9794_p5 = scmp.lt.u32.totalorder %s9787_s21, %s10923_s5 }
  0xee   : > { %p9790_p1 = pnand %p9788_p13, %p10229_p0 }
  0xf0   : > { %p9791_p6 = pneg %p9790_p1 }
  0xf2   : > { %p9796_p9 = pnand %p9794_p5, %p9791_p6 }
  0xf4   : > { %9799 = shalt.err (!%p9796_p9)
}
  0xf5   : > { %s9800_s27 = scalar_lea.vmem %s448_s18, 24576  ;;  %p9808_p4 = scmp.lt.s32.totalorder %s448_s18, %s448_s18 }
  0xf6   : > { %p9801_p10 = scmp.ne.s32.totalorder %s448_s18, %s9800_s27  ;;  %p9809_p7 = scmp.lt.s32.totalorder %s9800_s27, %s9800_s27 }
  0xf8   : > { %p9803_p2 = pnand %p9801_p10, %p10229_p0  ;;  %p9810_p8 = por %p9809_p7, %p9808_p4 }
  0xfa   : > { %p9804_p3 = pneg %p9803_p2 }
  0xfc   : > { %p9811_p11 = pnand %p9810_p8, %p9804_p3 }
  0xfe   : > { %9814 = shalt.err (!%p9811_p11)
}
  0xff   : > { %s10064_s4 = smov 256   ;;  %s10065_s16 = smov 16  }
 0x100   : > { %8324 = dma.hbm_to_vmem [thread:$0]  (!%p10213_p12), %s10923_s5, 24576, %s448_s18, [#allocation12], %s10064_s4, %s10064_s4, %s10065_s16  }
 0x101   : > { %s10066_s24 = smov [#allocation16]   ;;  %s10067_s17 = smov [#allocation19]  }
 0x102   : > { %s471_s25 = sshll.u32 %s10066_s24, 4  ;;  %s495_s21 = sshll.u32 %s10067_s17, 4  ;;  %s472_s25 = int_to_ptr.vmem [resolvable:$true] %s471_s25  ;;  %s496_s21 = int_to_ptr.vmem [resolvable:$true] %s495_s21 }
 0x103   : > { %s9815_s27 = scalar_lea.hbm %s10925_s7, 49152 }
 0x104   : > { %p9816_p13 = scmp.ne.s32.totalorder %s10925_s7, %s9815_s27  ;;  %p9822_p5 = scmp.lt.u32.totalorder %s9815_s27, %s10925_s7 }
 0x106   : > { %p9818_p1 = pnand %p9816_p13, %p10229_p0 }
 0x108   : > { %p9819_p6 = pneg %p9818_p1 }
 0x10a   : > { %p9824_p9 = pnand %p9822_p5, %p9819_p6 }
 0x10c   : > { %9827 = shalt.err (!%p9824_p9)
}
 0x10d   : > { %s9828_s18 = scalar_lea.vmem %s472_s25, 49152  ;;  %p9836_p4 = scmp.lt.s32.totalorder %s472_s25, %s472_s25 }
 0x10e   : > { %p9829_p10 = scmp.ne.s32.totalorder %s472_s25, %s9828_s18  ;;  %p9837_p7 = scmp.lt.s32.totalorder %s9828_s18, %s9828_s18 }
 0x110   : > { %p9831_p2 = pnand %p9829_p10, %p10229_p0  ;;  %p9838_p8 = por %p9837_p7, %p9836_p4 }
 0x112   : > { %p9832_p3 = pneg %p9831_p2 }
 0x114   : > { %p9839_p11 = pnand %p9838_p8, %p9832_p3 }
 0x116   : > { %9842 = shalt.err (!%p9839_p11)
}
 0x117   : > { %8330 = dma.hbm_to_vmem [thread:$0]  (!%p10213_p12), %s10925_s7, 49152, %s472_s25, [#allocation15], %s10064_s4, %s10064_s4, %s10065_s16  }
 0x118   : > { %s9843_s28 = scalar_lea.hbm %s10927_s9, 8192 }
 0x119   : > { %p9844_p13 = scmp.ne.s32.totalorder %s10927_s9, %s9843_s28  ;;  %p9850_p5 = scmp.lt.u32.totalorder %s9843_s28, %s10927_s9 }
 0x11b   : > { %p9846_p1 = pnand %p9844_p13, %p10229_p0 }
 0x11d   : > { %p9847_p6 = pneg %p9846_p1 }
 0x11f   : > { %p9852_p9 = pnand %p9850_p5, %p9847_p6 }
 0x121   : > { %9855 = shalt.err (!%p9852_p9)
}
 0x122   : > { %s9856_s29 = scalar_lea.vmem %s496_s21, 8192  ;;  %p9864_p4 = scmp.lt.s32.totalorder %s496_s21, %s496_s21 }
 0x123   : > { %p9857_p10 = scmp.ne.s32.totalorder %s496_s21, %s9856_s29  ;;  %p9865_p7 = scmp.lt.s32.totalorder %s9856_s29, %s9856_s29 }
 0x125   : > { %p9859_p2 = pnand %p9857_p10, %p10229_p0  ;;  %p9866_p8 = por %p9865_p7, %p9864_p4 }
 0x127   : > { %p9860_p3 = pneg %p9859_p2 }
 0x129   : > { %p9867_p11 = pnand %p9866_p8, %p9860_p3 }
 0x12b   : > { %9870 = shalt.err (!%p9867_p11)
}
 0x12c   : > { %s10975_s4 = smov 8   ;;  %s10976_s16 = smov 128  }
 0x12d   : > { %8336 = dma.hbm_to_vmem [thread:$0]  (!%p10213_p12), %s10927_s9, 8192, %s496_s21, [#allocation18], %s10976_s16, %s10976_s16, %s10975_s4  }
 0x12e   : > { %s10068_s18 = smov [#allocation22]   ;;  %s10069_s2 = smov [#allocation25]  }
 0x12f   : > { %s519_s19 = sshll.u32 %s10068_s18, 4  ;;  %s543_s1 = sshll.u32 %s10069_s2, 4  ;;  %s520_s19 = int_to_ptr.vmem [resolvable:$true] %s519_s19  ;;  %s544_s1 = int_to_ptr.vmem [resolvable:$true] %s543_s1 }
 0x130   : > { %s9871_s20 = scalar_lea.hbm %s10929_s11, 2048 }
 0x131   : > { %p9872_p13 = scmp.ne.s32.totalorder %s10929_s11, %s9871_s20  ;;  %p9878_p5 = scmp.lt.u32.totalorder %s9871_s20, %s10929_s11 }
 0x133   : > { %p9874_p1 = pnand %p9872_p13, %p10229_p0 }
 0x135   : > { %p9875_p6 = pneg %p9874_p1 }
 0x137   : > { %p9880_p9 = pnand %p9878_p5, %p9875_p6 }
 0x139   : > { %9883 = shalt.err (!%p9880_p9)
}
 0x13a   : > { %s9884_s21 = scalar_lea.vmem %s520_s19, 2048  ;;  %p9892_p4 = scmp.lt.s32.totalorder %s520_s19, %s520_s19 }
 0x13b   : > { %p9885_p10 = scmp.ne.s32.totalorder %s520_s19, %s9884_s21  ;;  %p9893_p7 = scmp.lt.s32.totalorder %s9884_s21, %s9884_s21 }
 0x13d   : > { %p9887_p2 = pnand %p9885_p10, %p10229_p0  ;;  %p9894_p8 = por %p9893_p7, %p9892_p4 }
 0x13f   : > { %p9888_p3 = pneg %p9887_p2 }
 0x141   : > { %p9895_p11 = pnand %p9894_p8, %p9888_p3 }
 0x143   : > { %9898 = shalt.err (!%p9895_p11)
}
 0x144   : > { %s10977_s4 = smov 4   ;;  %s10978_s16 = smov 64  }
 0x145   : > { %8342 = dma.hbm_to_vmem [thread:$0]  (!%p10213_p12), %s10929_s11, 2048, %s520_s19, [#allocation21], %s10978_s16, %s10978_s16, %s10977_s4  }
 0x146   : > { %s9899_s3 = scalar_lea.hbm %s10931_s13, 1024 }
 0x147   : > { %p9900_p13 = scmp.ne.s32.totalorder %s10931_s13, %s9899_s3  ;;  %p9906_p5 = scmp.lt.u32.totalorder %s9899_s3, %s10931_s13 }
 0x149   : > { %p9902_p1 = pnand %p9900_p13, %p10229_p0 }
 0x14b   : > { %p9903_p6 = pneg %p9902_p1 }
 0x14d   : > { %p9908_p9 = pnand %p9906_p5, %p9903_p6 }
 0x14f   : > { %9911 = shalt.err (!%p9908_p9)
}
 0x150   : > { %s9912_s15 = scalar_lea.vmem %s544_s1, 1024  ;;  %p9920_p4 = scmp.lt.s32.totalorder %s544_s1, %s544_s1 }
 0x151   : > { %p9913_p10 = scmp.ne.s32.totalorder %s544_s1, %s9912_s15  ;;  %p9921_p7 = scmp.lt.s32.totalorder %s9912_s15, %s9912_s15 }
 0x153   : > { %p9915_p2 = pnand %p9913_p10, %p10229_p0  ;;  %p9922_p8 = por %p9921_p7, %p9920_p4 }
 0x155   : > { %p9916_p3 = pneg %p9915_p2 }
 0x157   : > { %p9923_p11 = pnand %p9922_p8, %p9916_p3 }
 0x159   : > { %9926 = shalt.err (!%p9923_p11)
}
 0x15a   : > { %8348 = dma.hbm_to_vmem [thread:$0]  (!%p10213_p12), %s10931_s13, 1024, %s544_s1, [#allocation24], %s10978_s16, %s10978_s16, %s10977_s4  }
 0x15b   : > { %s10070_s21 = smov [#allocation26]   ;;  %s9927_s2 = scalar_lea.hbm %s10932_s14, 16 }
 0x15c   : > { %s557_s25 = sshll.u32 %s10070_s21, 4  ;;  %p9928_p13 = scmp.ne.s32.totalorder %s10932_s14, %s9927_s2  ;;  %s558_s25 = int_to_ptr.vmem [resolvable:$true] %s557_s25 }
 0x15d   : > { %p9934_p5 = scmp.lt.u32.totalorder %s9927_s2, %s10932_s14 }
 0x15e   : > { %p9930_p1 = pnand %p9928_p13, %p10229_p0 }
 0x160   : > { %p9931_p6 = pneg %p9930_p1 }
 0x162   : > { %p9936_p9 = pnand %p9934_p5, %p9931_p6 }
 0x164   : > { %9939 = shalt.err (!%p9936_p9)
}
 0x165   : > { %s9940_s1 = scalar_lea.vmem %s558_s25, 16  ;;  %s9947_s4 = scalar_lea.vmem %s558_s25, 32 }
 0x166   : > { %p9941_p10 = scmp.ne.s32.totalorder %s558_s25, %s9940_s1  ;;  %p9948_p4 = scmp.lt.s32.totalorder %s558_s25, %s558_s25 }
 0x167   : > { %p9949_p7 = scmp.lt.s32.totalorder %s9947_s4, %s9940_s1 }
 0x168   : > { %p9943_p2 = pnand %p9941_p10, %p10229_p0 }
 0x169   : > { %p9950_p8 = por %p9949_p7, %p9948_p4 }
 0x16a   : > { %p9944_p3 = pneg %p9943_p2 }
 0x16c   : > { %p9951_p11 = pnand %p9950_p8, %p9944_p3 }
 0x16e   : > { %9954 = shalt.err (!%p9951_p11)
}
 0x16f   : > { %8351 = dma.hbm_to_vmem [thread:$0]  (!%p10213_p12), %s10932_s14, 16, %s558_s25, [#allocation27]  }
 0x170   : > { %p10979_p13 = scmp.ne.s32.totalorder %s10968_s30, 0 }
 0x171   : > { %p10980_p1 = scmp.eq.s32.totalorder (!%p10979_p13), %s10177_s22, 0 }
 0x172   : > { %578 = sbr.rel (%p10979_p13) target bundleno = 2713 (0xa99), region = 80 }
 0x179   : > { %10000 = dma.done.wait (%p10980_p1), [#allocation6], 192   ;;  %p10981_p0 = pmov %p10980_p1 }
 0x17b   : > { %10002 = vsyncadd (%p10981_p0), [#allocation6], 4294967104  ;;  %p10982_p6 = pmov %p10981_p0 }
 0x17c   : > { %p10983_p5 = pmov %p10981_p0 }
 0x17d   : > { %10004 = dma.done.wait (%p10982_p6), [#allocation9], 10256  }
 0x17e   : > { %10006 = vsyncadd (%p10983_p5), [#allocation9], 4294957040  ;;  %p10984_p9 = pmov %p10981_p0 }
 0x17f   : > { %p10985_p12 = pmov %p10981_p0 }
 0x180   : > { %10008 = dma.done.wait (%p10984_p9), [#allocation12], 24608  }
 0x181   : > { %10010 = vsyncadd (%p10985_p12), [#allocation12], 4294942688  ;;  %p10986_p10 = pmov %p10981_p0 }
 0x182   : > { %p10987_p2 = pmov %p10981_p0 }
 0x183   : > { %10012 = dma.done.wait (%p10986_p10), [#allocation15], 49216  }
 0x184   : > { %10014 = vsyncadd (%p10987_p2), [#allocation15], 4294918080  ;;  %p10988_p3 = pmov %p10981_p0 }
 0x185   : > { %p10989_p4 = pmov %p10981_p0 }
 0x186   : > { %10016 = dma.done.wait (%p10988_p3), [#allocation18], 8256  }
 0x187   : > { %10018 = vsyncadd (%p10989_p4), [#allocation18], 4294959040  ;;  %p10990_p7 = pmov %p10981_p0 }
 0x188   : > { %p10991_p8 = pmov %p10981_p0 }
 0x189   : > { %10020 = dma.done.wait (%p10990_p7), [#allocation21], 2080  }
 0x18a   : > { %10022 = vsyncadd (%p10991_p8), [#allocation21], 4294965216  ;;  %p10992_p11 = pmov %p10981_p0 }
 0x18b   : > { %p10993_p13 = pmov %p10981_p0 }
 0x18c   : > { %10024 = dma.done.wait (%p10992_p11), [#allocation24], 1040  }
 0x18d   : > { %10026 = vsyncadd (%p10993_p13), [#allocation24], 4294966256  ;;  %p10994_p1 = pmov %p10981_p0 }
 0x18f   : > { %10028 = dma.done.wait (%p10994_p1), [#allocation27], 16  }
 0x190   : > { %10030 = vsyncadd (%p10981_p0), [#allocation27], 4294967280  ;;  %p677_p6 = scmp.lt.s32.totalorder %s10177_s22, 1  ;;  %v10071_v0 = vmov 0.0   ;;  %vm10072_vm0 = vmmov 0   ;;  %v8441_v1 = vld [vmem:[#allocation5] sm:$0xff]   ;;  %v766_v41 = vlaneseq }
 0x191   : > { %8207 = vmatprep.subr.bf16.mxu1 %v10071_v0  ;;  %8211 = vmatprep.mubr.msk.bf16.mxu1 %vm10072_vm0, %v10071_v0  ;;  %vm713_vm1 = vcmask 1043456   ;;  %v8442_v2 = vld [vmem:[#allocation5 + $0x8] ss:$0 sps:$4 sm:$0xff]   ;;  %v8446_v4 = vld [vmem:[#allocation10 + $0x4] ss:$8 sps:$4 sm:$0xff]   ;;  %vm709_vm2 = vcmask 195584  }
 0x192   : > { %s678_s30 = scalar_select %p677_p6, %s10177_s22, 1  ;;  %8208 = vmatpush3.bf16.msra.mxu1 %v8441_v1  ;;  %v715_v3 = vsel %vm713_vm1, %v8442_v2, 0  ;;  %v8444_v6 = vld [vmem:[#allocation10] ss:$8 sps:$4 sm:$0xff]   ;;  %v8449_v7 = vld [vmem:[#allocation10 + $0x14] ss:$8 sps:$4 sm:$0xff]  }
 0x193   : > { %8209 = vmatprep.subr.bf16.mxu1 %v10071_v0  ;;  %v8447_v8 = vld [vmem:[#allocation10 + $0x10] ss:$8 sps:$4 sm:$0xff]   ;;  %v8452_v9 = vld [vmem:[#allocation10 + $0x24] ss:$8 sps:$4 sm:$0xff]   ;;  %v8450_v10 = vld [vmem:[#allocation10 + $0x20] ss:$8 sps:$4 sm:$0xff]  }
 0x194   : > { %s8156_s26 = sshll.u32 %s678_s30, 3  ;;  %v8455_v11 = vld [vmem:[#allocation10 + $0x34] ss:$8 sps:$4 sm:$0xff]   ;;  %v8453_v12 = vld [vmem:[#allocation10 + $0x30] ss:$8 sps:$4 sm:$0xff]   ;;  %v10073_v33 = vmov 0  }
 0x195   : > { %s681_s19 = scalar_lea.vmem %s10918_s0, %s8156_s26  ;;  %v8458_v13 = vld [vmem:[#allocation10 + $0x44] ss:$8 sps:$4 sm:$0xff]   ;;  %v8456_v14 = vld [vmem:[#allocation10 + $0x40] ss:$8 sps:$4 sm:$0xff]   ;;  %v8461_v15 = vld [vmem:[#allocation10 + $0x54] ss:$8 sps:$4 sm:$0xff]  }
 0x196   : > { %v8443_v5 = vld [vmem:[%s681_s19] sm:$0xff]   ;;  %8210 = vmatpush3.bf16.msra.mxu1 %v715_v3  ;;  %v8464_v17 = vld [vmem:[#allocation10 + $0x64] ss:$8 sps:$4 sm:$0xff]   ;;  %v8462_v18 = vld [vmem:[#allocation10 + $0x60] ss:$8 sps:$4 sm:$0xff]   ;;  %1692 = vst [vmem:[#allocation3] sm:$0xff] %v10073_v33 }
 0x197   : > { %1451 = vmatprep.subr.bf16.mxu1 %v8446_v4  ;;  %v8459_v16 = vld [vmem:[#allocation10 + $0x50] ss:$8 sps:$4 sm:$0xff]   ;;  %v8467_v19 = vld [vmem:[#allocation10 + $0x74] ss:$8 sps:$4 sm:$0xff]   ;;  %v8470_v21 = vld [vmem:[#allocation10 + $0x84] ss:$8 sps:$4 sm:$0xff]  }
 0x198   : > { %v8465_v20 = vld [vmem:[#allocation10 + $0x70] ss:$8 sps:$4 sm:$0xff]   ;;  %v8468_v22 = vld [vmem:[#allocation10 + $0x80] ss:$8 sps:$4 sm:$0xff]   ;;  %v8473_v23 = vld [vmem:[#allocation10 + $0x94] ss:$8 sps:$4 sm:$0xff]  }
 0x199   : > { %8212 = vmatmul.mubr.msk.bf16.vlgmr.msra.gmra.mrb[0].mxu1 %vm709_vm2, %v8443_v5  ;;  %v8471_v24 = vld [vmem:[#allocation10 + $0x90] ss:$8 sps:$4 sm:$0xff]   ;;  %v8476_v25 = vld [vmem:[#allocation10 + $0xa4] ss:$8 sps:$4 sm:$0xff]   ;;  %v8474_v26 = vld [vmem:[#allocation10 + $0xa0] ss:$8 sps:$4 sm:$0xff]  }
 0x19a   : > { %1452 = vmatpush1.bf16.msra.mxu1 %v8444_v6  ;;  %v8479_v27 = vld [vmem:[#allocation10 + $0xb4] ss:$8 sps:$4 sm:$0xff]   ;;  %v8477_v28 = vld [vmem:[#allocation10 + $0xb0] ss:$8 sps:$4 sm:$0xff]   ;;  %v8482_v29 = vld [vmem:[#allocation10 + $0xc4] ss:$8 sps:$4 sm:$0xff]  }
 0x19b   : > { %1453 = vmatprep.subr.bf16.mxu1 %v8449_v7  ;;  %v8480_v30 = vld [vmem:[#allocation10 + $0xc0] ss:$8 sps:$4 sm:$0xff]   ;;  %v8485_v31 = vld [vmem:[#allocation10 + $0xd4] ss:$8 sps:$4 sm:$0xff]   ;;  %v8483_v32 = vld [vmem:[#allocation10 + $0xd0] ss:$8 sps:$4 sm:$0xff]  }
 0x19c   : > { %861 = vst [vmem:[#allocation2] sm:$0xf] %v10073_v33  ;;  %862 = vst [vmem:[#allocation2 + $0x8] sm:$0x1] %v10073_v33  ;;  %v8488_v34 = vld [vmem:[#allocation10 + $0xe4] ss:$8 sps:$4 sm:$0xff]  }
 0x19d   : > { %3348 = vst [vmem:[#allocation4] sm:$0xff] %v10073_v33  ;;  %3349 = vst [vmem:[#allocation4 + $0x8] sm:$0xff] %v10073_v33  ;;  %v8486_v35 = vld [vmem:[#allocation10 + $0xe0] ss:$8 sps:$4 sm:$0xff]   ;;  %v8491_v36 = vld [vmem:[#allocation10 + $0xf4] ss:$8 sps:$4 sm:$0xff]  }
 0x19e   : > { %1454 = vmatpush1.bf16.msra.mxu1 %v8447_v8  ;;  %v8489_v37 = vld [vmem:[#allocation10 + $0xf0] ss:$8 sps:$4 sm:$0xff]   ;;  %v8495_v38 = vld [vmem:[#allocation10 + $0x104] ss:$8 sps:$4 sm:$0xff]   ;;  %v10074_v39 = vmov 1983009808  }
 0x19f   : > { %1455 = vmatprep.subr.bf16.mxu1 %v8452_v9  ;;  %v764_v40 = vunpack.c.l.s4 %v10074_v39  ;;  %v7369_v42 = vld [vmem:[#allocation8] ss:$0 sm:$0xff]  ;;  %v10547_v44 = vshrl.u32 %v766_v41, 7  ;;  %vm804_vm3 = vcmask 1041408   ;;  %vm903_vm4 = vcmask 1041409   ;;  %s10999_s29 = sld [smem:[#allocation39_spill]] }
 0x1a0   : > { %vm905_vm5 = vcmask 1042434   ;;  %vm907_vm6 = vcmask 1043459   ;;  %vm909_vm7 = vcmask 1044484   ;;  %vm911_vm8 = vcmask 1045509   ;;  %s11000_s25 = sld [smem:[#allocation44_spill]]  ;;  %s8153_s27 = sshll.u32 %s10177_s22, 4 }
 0x1a1   : > { %v765_v43 = vunpack.c.0.s8 %v764_v40  ;;  %vm913_vm9 = vcmask 1046534   ;;  %vm915_vm10 = vcmask 1047559   ;;  %vm1693_vm11 = vcmask 1042432   ;;  %s11001_s20 = sld [smem:[#allocation50_spill]]  ;;  %s10075_s16 = smov [#allocation28]  }
 0x1a2   : > { %1456 = vmatpush1.bf16.msra.mxu1 %v8450_v10  ;;  %vm1694_vm12 = vsmask.f32 2304  ;;  %vm1696_vm13 = vcmask 1046532   ;;  %vm1697_vm14 = vsmask.f32 6400  ;;  %s9959_s17 = sshll.u32 %s10075_s16, 4  ;;  %s9960_s17 = int_to_ptr.vmem [resolvable:$false] %s9959_s17 }
 0x1a3   : > { %1457 = vmatprep.subr.bf16.mxu1 %v8455_v11  ;;  %v10550_v47 = vsub.s32 %v765_v43, %v10547_v44  ;;  %vm1695_vm15 = vmand %vm1693_vm11, %vm1694_vm12  ;;  %s9961_s30 = scalar_lea.vmem %s9960_s17, 32 }
 0x1a4   : > { %vm1698_vm1 = vmand %vm1696_vm13, %vm1697_vm14 }
 0x1a5   : > { %vm1699_vm2 = vmor %vm1698_vm1, %vm1695_vm15  ;;  %s675_s21 = sand.u32 1, %s10999_s29  }
 0x1a6   : > { %1458 = vmatpush1.bf16.msra.mxu1 %v8453_v12  ;;  %s676_s18 = scalar_lea.vmem [#allocation28], %s675_s21  ;;  %s7132_s4 = scalar_lea.sflag [#allocation7], %s675_s21 }
 0x1a7   : > { %1459 = vmatprep.subr.bf16.mxu1 %v8458_v13  ;;  %s7144_s2 = sshll.u32 %s676_s18, 4  ;;  %s11002_s24 = smov %s11001_s20  ;;  %s10878_s2 = int_to_ptr.vmem [resolvable:$true] %s7144_s2 }
 0x1a8   : > { %s10876_s1 = scalar_lea.hbm %s11001_s20, %s8153_s27  ;;  %s9955_s22 = scalar_lea.vmem %s10878_s2, 16 }
 0x1a9   : > { %p9956_p5 = scmp.ne.s32.totalorder %s10878_s2, %s9955_s22  ;;  %p11003_p9 = scmp.ne.s32.totalorder %s11000_s25, 0 }
 0x1aa   : > { %1460 = vmatpush1.bf16.msra.mxu1 %v8456_v14  ;;  %p9962_p2 = scmp.lt.s32.totalorder %s10878_s2, %s9960_s17  ;;  %p9963_p3 = scmp.lt.s32.totalorder %s9961_s30, %s9955_s22 }
 0x1ab   : > { %1461 = vmatprep.subr.bf16.mxu1 %v8461_v15  ;;  %p9957_p12 = pnand %p9956_p5, %p11003_p9 }
 0x1ac   : > { %p9964_p4 = por %p9963_p3, %p9962_p2 }
 0x1ad   : > { %p9958_p10 = pneg %p9957_p12 }
 0x1ae   : > { %1462 = vmatpush1.bf16.msra.mxu1 %v8459_v16 }
 0x1af   : > { %1463 = vmatprep.subr.bf16.mxu1 %v8464_v17  ;;  %p9965_p7 = pnand %p9964_p4, %p9958_p10 }
 0x1b2   : > { %1464 = vmatpush1.bf16.msra.mxu1 %v8462_v18 }
 0x1b3   : > { %1465 = vmatprep.subr.bf16.mxu1 %v8467_v19 }
 0x1b6   : > { %1466 = vmatpush1.bf16.msra.mxu1 %v8465_v20 }
 0x1b7   : > { %1467 = vmatprep.subr.bf16.mxu1 %v8470_v21 }
 0x1ba   : > { %1468 = vmatpush1.bf16.msra.mxu1 %v8468_v22 }
 0x1bb   : > { %1469 = vmatprep.subr.bf16.mxu1 %v8473_v23 }
 0x1be   : > { %1470 = vmatpush1.bf16.msra.mxu1 %v8471_v24 }
 0x1bf   : > { %1471 = vmatprep.subr.bf16.mxu1 %v8476_v25 }
 0x1c2   : > { %1472 = vmatpush1.bf16.msra.mxu1 %v8474_v26 }
 0x1c3   : > { %1473 = vmatprep.subr.bf16.mxu1 %v8479_v27 }
 0x1c6   : > { %1474 = vmatpush1.bf16.msra.mxu1 %v8477_v28 }
 0x1c7   : > { %1475 = vmatprep.subr.bf16.mxu1 %v8482_v29 }
 0x1ca   : > { %1476 = vmatpush1.bf16.msra.mxu1 %v8480_v30 }
 0x1cb   : > { %1477 = vmatprep.subr.bf16.mxu1 %v8485_v31 }
 0x1ce   : > { %1478 = vmatpush1.bf16.msra.mxu1 %v8483_v32 }
 0x1cf   : > { %1479 = vmatprep.subr.bf16.mxu1 %v8488_v34 }
 0x1d2   : > { %1480 = vmatpush1.bf16.msra.mxu1 %v8486_v35 }
 0x1d3   : > { %1481 = vmatprep.subr.bf16.mxu1 %v8491_v36 }
 0x1d6   : > { %1482 = vmatpush1.bf16.msra.mxu1 %v8489_v37 }
 0x1d7   : > { %1492 = vmatprep.subr.bf16.mxu1 %v8495_v38 }
 0x26c   : > { %v751_v45 = vpop.f32.mrb[0].mxu1 }
 0x26d   : > { %v752_v46 = vadd.f32 %v7369_v42, %v751_v45  ;;  %v8213_v48 = vpop.f32.mrb[1].mxu1 }
 0x26e   : > { %v754_v49 = vpop.f32.mrb[2].mxu1 }
 0x26f   : > { %v758_v50 = vmax.f32 %v752_v46, 0.0  ;;  %v755_v51 = vadd.f32 %v7369_v42, %v754_v49  ;;  %v8214_v52 = vpop.f32.mrb[3].mxu1 }
 0x271   : > { %v762_v53 = vcombine.high %v758_v50, %v758_v50  ;;  %v769_v54 = vrot.slane %v758_v50, %v10550_v47  ;;  %v759_v55 = vmax.f32 %v755_v51, 0.0 }
 0x273   : > { %v776_v56 = vrot.slane %v762_v53, %v10550_v47  ;;  %v777_v57 = vcombine.high %v769_v54, %v769_v54  ;;  %v805_v58 = vsel %vm804_vm3, %v769_v54, -inf  ;;  %v779_v59 = vcombine.high %v759_v55, %v759_v55 }
 0x274   : > { %v806_v60 = vrot.slane %v805_v58, 4  ;;  %v786_v61 = vrot.slane %v759_v55, %v10550_v47 }
 0x275   : > { %v778_v62 = vcombine.high %v776_v56, %v776_v56  ;;  %v812_v63 = vsel %vm804_vm3, %v777_v57, -inf  ;;  %v819_v1 = vsel %vm804_vm3, %v776_v56, -inf  ;;  %v793_v2 = vrot.slane %v779_v59, %v10550_v47 }
 0x276   : > { %v807_v3 = vmax.f32 %v805_v58, %v806_v60  ;;  %v813_v4 = vrot.slane %v812_v63, 4  ;;  %v820_v5 = vrot.slane %v819_v1, 4  ;;  %v794_v6 = vcombine.high %v786_v61, %v786_v61  ;;  %v8566_v60 = vld [vmem:[#allocation13 + $0x204] ss:$16 sps:$4 sm:$0xff]  }
 0x277   : > { %v826_v7 = vsel %vm804_vm3, %v778_v62, -inf  ;;  %v795_v8 = vcombine.high %v793_v2, %v793_v2  ;;  %v833_v9 = vsel %vm804_vm3, %v786_v61, -inf  ;;  %v847_v10 = vsel %vm804_vm3, %v793_v2, -inf  ;;  %v8568_v61 = vld [vmem:[#allocation13 + $0x200] ss:$16 sps:$4 sm:$0xff]   ;;  %2205 = vmatprep.subr.bf16.mxu0 %v8566_v60 }
 0x278   : > { %v808_v11 = vrot.slane %v807_v3, 2  ;;  %v814_v12 = vmax.f32 %v812_v63, %v813_v4  ;;  %v821_v13 = vmax.f32 %v819_v1, %v820_v5  ;;  %v827_v14 = vrot.slane %v826_v7, 4  ;;  %2206 = vmatpush1.bf16.msra.mxu0 %v8568_v61  ;;  %v8516_v60 = vld [vmem:[#allocation10 + $0x174] ss:$8 sps:$4 sm:$0xff]   ;;  %v8514_v61 = vld [vmem:[#allocation10 + $0x170] ss:$8 sps:$4 sm:$0xff]  }
 0x279   : > { %v834_v15 = vrot.slane %v833_v9, 4  ;;  %v840_v16 = vsel %vm804_vm3, %v794_v6, -inf  ;;  %v848_v17 = vrot.slane %v847_v10, 4  ;;  %v854_v18 = vsel %vm804_vm3, %v795_v8, -inf }
 0x27a   : > { %v809_v19 = vmax.f32 %v807_v3, %v808_v11  ;;  %v815_v20 = vrot.slane %v814_v12, 2  ;;  %v822_v21 = vrot.slane %v821_v13, 2  ;;  %v828_v22 = vmax.f32 %v826_v7, %v827_v14  ;;  %v8569_v3 = vld [vmem:[#allocation13 + $0x224] ss:$16 sps:$4 sm:$0xff]  }
 0x27b   : > { %v835_v23 = vmax.f32 %v833_v9, %v834_v15  ;;  %v841_v24 = vrot.slane %v840_v16, 4  ;;  %v849_v25 = vmax.f32 %v847_v10, %v848_v17  ;;  %v855_v26 = vrot.slane %v854_v18, 4  ;;  %v8571_v10 = vld [vmem:[#allocation13 + $0x220] ss:$16 sps:$4 sm:$0xff]   ;;  %v8575_v11 = vld [vmem:[#allocation13 + $0x244] ss:$16 sps:$4 sm:$0xff]   ;;  %2207 = vmatprep.subr.bf16.mxu0 %v8569_v3 }
 0x27c   : > { %v810_v27 = vrot.slane %v809_v19, 1  ;;  %v816_v28 = vmax.f32 %v814_v12, %v815_v20  ;;  %v823_v29 = vmax.f32 %v821_v13, %v822_v21  ;;  %v829_v30 = vrot.slane %v828_v22, 2  ;;  %v8577_v17 = vld [vmem:[#allocation13 + $0x240] ss:$16 sps:$4 sm:$0xff]   ;;  %v8581_v20 = vld [vmem:[#allocation13 + $0x264] ss:$16 sps:$4 sm:$0xff]   ;;  %2208 = vmatpush1.bf16.msra.mxu0 %v8571_v10 }
 0x27d   : > { %v836_v31 = vrot.slane %v835_v23, 2  ;;  %v842_v32 = vmax.f32 %v840_v16, %v841_v24  ;;  %v850_v33 = vrot.slane %v849_v25, 2  ;;  %v856_v34 = vmax.f32 %v854_v18, %v855_v26  ;;  %2209 = vmatprep.subr.bf16.mxu0 %v8575_v11  ;;  %v8525_v3 = vld [vmem:[#allocation10 + $0x1a4] ss:$8 sps:$4 sm:$0xff]   ;;  %v8532_v10 = vld [vmem:[#allocation10 + $0x1d0] ss:$8 sps:$4 sm:$0xff]  }
 0x27e   : > { %v811_v35 = vmax.f32 %v809_v19, %v810_v27  ;;  %v817_v36 = vrot.slane %v816_v28, 1  ;;  %v824_v37 = vrot.slane %v823_v29, 1  ;;  %v830_v38 = vmax.f32 %v828_v22, %v829_v30  ;;  %v8537_v11 = vld [vmem:[#allocation10 + $0x1e4] ss:$8 sps:$4 sm:$0xff]  }
 0x27f   : > { %v837_v39 = vmax.f32 %v835_v23, %v836_v31  ;;  %v843_v40 = vrot.slane %v842_v32, 2  ;;  %v851_v41 = vmax.f32 %v849_v25, %v850_v33  ;;  %v857_v42 = vrot.slane %v856_v34, 2  ;;  %v8583_v25 = vld [vmem:[#allocation13 + $0x260] ss:$16 sps:$4 sm:$0xff]  }
 0x280   : > { %v818_v43 = vmax.f32 %v816_v28, %v817_v36  ;;  %v825_v45 = vmax.f32 %v823_v29, %v824_v37  ;;  %v831_v46 = vrot.slane %v830_v38, 1  ;;  %v8157_v48 = vpack.c.bf16 %v811_v35, %v811_v35  ;;  %2210 = vmatpush1.bf16.msra.mxu0 %v8577_v17  ;;  %v920_v28 = vld [vmem:[#allocation2] sm:$0x8]  ;;  %v922_v29 = vld [vmem:[#allocation2 + $0x8] sm:$0x1] }
 0x281   : > { %v838_v49 = vrot.slane %v837_v39, 1  ;;  %v844_v50 = vmax.f32 %v842_v32, %v843_v40  ;;  %v852_v51 = vrot.slane %v851_v41, 1  ;;  %v858_v52 = vmax.f32 %v856_v34, %v857_v42  ;;  %2211 = vmatprep.subr.bf16.mxu0 %v8581_v20  ;;  %v9562_v20 = vld [vmem:[#allocation3] sm:$0xff] }
 0x282   : > { %v832_v53 = vmax.f32 %v830_v38, %v831_v46  ;;  %v8158_v54 = vpack.c.bf16 %v818_v43, %v818_v43  ;;  %v8159_v55 = vpack.c.bf16 %v825_v45, %v825_v45  ;;  %v895_v63 = vunpack.c.l.b16 %v8157_v48  ;;  %v8498_v43 = vld [vmem:[#allocation10 + $0x114] ss:$8 sps:$4 sm:$0xff]  }
 0x283   : > { %v839_v56 = vmax.f32 %v837_v39, %v838_v49  ;;  %v845_v57 = vrot.slane %v844_v50, 1  ;;  %v853_v58 = vmax.f32 %v851_v41, %v852_v51  ;;  %v859_v59 = vrot.slane %v858_v52, 1  ;;  %v8493_v41 = vld [vmem:[#allocation10 + $0x100] ss:$8 sps:$4 sm:$0xff]   ;;  %v8496_v49 = vld [vmem:[#allocation10 + $0x110] ss:$8 sps:$4 sm:$0xff]  }
 0x284   : > { %v8160_v62 = vpack.c.bf16 %v832_v53, %v832_v53  ;;  %v896_v1 = vunpack.c.l.b16 %v8158_v54  ;;  %v897_v2 = vunpack.c.l.b16 %v8159_v55  ;;  %2212 = vmatpush1.bf16.msra.mxu0 %v8583_v25  ;;  %v8499_v51 = vld [vmem:[#allocation10 + $0x120] ss:$8 sps:$4 sm:$0xff]   ;;  %v8502_v53 = vld [vmem:[#allocation10 + $0x130] ss:$8 sps:$4 sm:$0xff]   ;;  %v8507_v54 = vld [vmem:[#allocation10 + $0x144] ss:$8 sps:$4 sm:$0xff]  }
 0x285   : > { %v846_v4 = vmax.f32 %v844_v50, %v845_v57  ;;  %v860_v5 = vmax.f32 %v858_v52, %v859_v59  ;;  %v8161_v6 = vpack.c.bf16 %v839_v56, %v839_v56  ;;  %v8163_v9 = vpack.c.bf16 %v853_v58, %v853_v58  ;;  %v8501_v50 = vld [vmem:[#allocation10 + $0x124] ss:$8 sps:$4 sm:$0xff]   ;;  %v8504_v52 = vld [vmem:[#allocation10 + $0x134] ss:$8 sps:$4 sm:$0xff]   ;;  %v8505_v55 = vld [vmem:[#allocation10 + $0x140] ss:$8 sps:$4 sm:$0xff]  }
 0x286   : > { %v898_v7 = vunpack.c.l.b16 %v8160_v62  ;;  %v904_v8 = vsel %vm903_vm4, %v896_v1, %v895_v63  ;;  %v8510_v56 = vld [vmem:[#allocation10 + $0x154] ss:$8 sps:$4 sm:$0xff]   ;;  %v8508_v57 = vld [vmem:[#allocation10 + $0x150] ss:$8 sps:$4 sm:$0xff]   ;;  %v8513_v58 = vld [vmem:[#allocation10 + $0x164] ss:$8 sps:$4 sm:$0xff]  }
 0x287   : > { %v906_v12 = vsel %vm905_vm5, %v897_v2, %v904_v8  ;;  %v8162_v13 = vpack.c.bf16 %v846_v4, %v846_v4  ;;  %v8164_v14 = vpack.c.bf16 %v860_v5, %v860_v5  ;;  %v899_v15 = vunpack.c.l.b16 %v8161_v6  ;;  %v8511_v59 = vld [vmem:[#allocation10 + $0x160] ss:$8 sps:$4 sm:$0xff]   ;;  %v8519_v62 = vld [vmem:[#allocation10 + $0x184] ss:$8 sps:$4 sm:$0xff]   ;;  %v8522_v1 = vld [vmem:[#allocation10 + $0x194] ss:$8 sps:$4 sm:$0xff]  }
 0x288   : > { %v908_v16 = vsel %vm907_vm6, %v898_v7, %v906_v12  ;;  %v901_v21 = vunpack.c.l.b16 %v8163_v9  ;;  %v8517_v63 = vld [vmem:[#allocation10 + $0x180] ss:$8 sps:$4 sm:$0xff]   ;;  %v8520_v2 = vld [vmem:[#allocation10 + $0x190] ss:$8 sps:$4 sm:$0xff]   ;;  %v8528_v5 = vld [vmem:[#allocation10 + $0x1b4] ss:$8 sps:$4 sm:$0xff]  }
 0x289   : > { %v900_v18 = vunpack.c.l.b16 %v8162_v13  ;;  %v910_v19 = vsel %vm909_vm7, %v899_v15, %v908_v16  ;;  %v902_v22 = vunpack.c.l.b16 %v8164_v14  ;;  %v8523_v4 = vld [vmem:[#allocation10 + $0x1a0] ss:$8 sps:$4 sm:$0xff]   ;;  %v8526_v6 = vld [vmem:[#allocation10 + $0x1b0] ss:$8 sps:$4 sm:$0xff]   ;;  %v8531_v7 = vld [vmem:[#allocation10 + $0x1c4] ss:$8 sps:$4 sm:$0xff]  }
 0x28a   : > { %v8529_v8 = vld [vmem:[#allocation10 + $0x1c0] ss:$8 sps:$4 sm:$0xff]   ;;  %v8534_v9 = vld [vmem:[#allocation10 + $0x1d4] ss:$8 sps:$4 sm:$0xff]   ;;  %v8538_v14 = vld [vmem:[#allocation10 + $0x1f0] ss:$8 sps:$4 sm:$0xff]  }
 0x28b   : > { %v912_v23 = vsel %vm911_vm8, %v900_v18, %v910_v19  ;;  %v8535_v12 = vld [vmem:[#allocation10 + $0x1e0] ss:$8 sps:$4 sm:$0xff]   ;;  %v8540_v13 = vld [vmem:[#allocation10 + $0x1f4] ss:$8 sps:$4 sm:$0xff]   ;;  %v8544_v15 = vld [vmem:[#allocation10 + $0x204] ss:$8 sps:$4 sm:$0xff]  }
 0x28c   : > { %v914_v24 = vsel %vm913_vm9, %v901_v21, %v912_v23  ;;  %v8542_v16 = vld [vmem:[#allocation10 + $0x200] ss:$8 sps:$4 sm:$0xff]   ;;  %v8547_v18 = vld [vmem:[#allocation10 + $0x214] ss:$8 sps:$4 sm:$0xff]   ;;  %v8545_v19 = vld [vmem:[#allocation10 + $0x210] ss:$8 sps:$4 sm:$0xff]  }
 0x28d   : > { %v916_v26 = vsel %vm915_vm10, %v902_v22, %v914_v24  ;;  %v8550_v21 = vld [vmem:[#allocation10 + $0x224] ss:$8 sps:$4 sm:$0xff]   ;;  %v8548_v22 = vld [vmem:[#allocation10 + $0x220] ss:$8 sps:$4 sm:$0xff]   ;;  %v8553_v23 = vld [vmem:[#allocation10 + $0x234] ss:$8 sps:$4 sm:$0xff]  }
 0x28e   : > { %v917_v27 = vpack.c.b16 %v916_v26, %v916_v26  ;;  %v8551_v24 = vld [vmem:[#allocation10 + $0x230] ss:$8 sps:$4 sm:$0xff]   ;;  %v8556_v25 = vld [vmem:[#allocation10 + $0x244] ss:$8 sps:$4 sm:$0xff]   ;;  %v8554_v26 = vld [vmem:[#allocation10 + $0x240] ss:$8 sps:$4 sm:$0xff]  }
 0x28f   : > { %vm3354_vm7 = vsmask.f32 5376 }
 0x290   : > { %919 = vst [vmem:[#allocation2 + $0x4] sm:$0xf] %v917_v27  ;;  %v8559_v27 = vld [vmem:[#allocation10 + $0x254] ss:$8 sps:$4 sm:$0xff]  }
 0x297   : > { %v10567_v30 = vld [vmem:[#allocation2 + $0x4] sm:$0xf] }
 0x298   : > { %v7382_v31 = vcombine.low %v920_v28, %v10567_v30  ;;  %v10571_v32 = vcombine.low %v10567_v30, %v922_v29  ;;  %v7383_v17 = vcombine.low %v10567_v30, %v10567_v30  ;;  %v8557_v28 = vld [vmem:[#allocation10 + $0x250] ss:$8 sps:$4 sm:$0xff]   ;;  %v8562_v29 = vld [vmem:[#allocation10 + $0x264] ss:$8 sps:$4 sm:$0xff]   ;;  %v8560_v30 = vld [vmem:[#allocation10 + $0x260] ss:$8 sps:$4 sm:$0xff]  }
 0x29a   : > { %v931_v33 = vshll.u32 %v7382_v31, 16  ;;  %v941_v34 = vshrl.u32 %v10571_v32, 16  ;;  %v944_v35 = vshll.u32 %v10571_v32, 16  ;;  %v929_v36 = vshrl.u32 %v7382_v31, 16 }
 0x29b   : > { %v1041_v46 = vrot.slane %v7382_v31, 3  ;;  %v8565_v31 = vld [vmem:[#allocation10 + $0x274] ss:$8 sps:$4 sm:$0xff]  }
 0x29c   : > { %v933_v37 = vrot.slane %v931_v33, 1  ;;  %v943_v38 = vrot.slane %v941_v34, 5  ;;  %v946_v39 = vrot.slane %v944_v35, 6  ;;  %v8563_v33 = vld [vmem:[#allocation10 + $0x270] ss:$8 sps:$4 sm:$0xff]  }
 0x29d   : > { %v8574_v34 = vld [vmem:[#allocation13 + $0xc] ss:$16 sps:$4 sm:$0xff]   ;;  %v8572_v35 = vld [vmem:[#allocation13 + $0x8] ss:$16 sps:$4 sm:$0xff]  }
 0x29e   : > { %v934_v40 = vor.u32 %v933_v37, %v929_v36  ;;  %v947_v42 = vor.u32 %v946_v39, %v943_v38  ;;  %v7386_v36 = vrot.slane %v10571_v32, 9  ;;  %v8580_v37 = vld [vmem:[#allocation13 + $0x2c] ss:$16 sps:$4 sm:$0xff]   ;;  %v8578_v38 = vld [vmem:[#allocation13 + $0x28] ss:$16 sps:$4 sm:$0xff]  }
 0x29f   : > { %v8586_v39 = vld [vmem:[#allocation13 + $0x4c] ss:$16 sps:$4 sm:$0xff]   ;;  %v8595_v32 = vld [vmem:[#allocation13 + $0x2a0] ss:$16 sps:$4 sm:$0xff]  }
 0x2a0   : > { %v1042_v45 = vrot.slane %v934_v40, 3  ;;  %v1044_v48 = vrot.slane %v947_v42, 3  ;;  %v8584_v40 = vld [vmem:[#allocation13 + $0x48] ss:$16 sps:$4 sm:$0xff]   ;;  %v8589_v42 = vld [vmem:[#allocation13 + $0x280] ss:$16 sps:$4 sm:$0xff]  }
 0x2a2   : > { %1483 = vmatprep.mubr.bf16.mxu1 %v1042_v45  ;;  %v8590_v45 = vld [vmem:[#allocation13 + $0x68] ss:$16 sps:$4 sm:$0xff]  }
 0x2a3   : > { %1484 = vmatmul.mubr.bf16.vlgmr.msra.gmra.mrb[4].mxu1 %v1041_v46  ;;  %v8593_v46 = vld [vmem:[#allocation13 + $0x2a4] ss:$16 sps:$4 sm:$0xff]  }
 0x2a4   : > { %1493 = vmatpush1.bf16.msra.mxu1 %v8493_v41  ;;  %1524 = vmatprep.mubr.bf16.mxu1 %v1044_v48  ;;  %v8587_v41 = vld [vmem:[#allocation13 + $0x284] ss:$16 sps:$4 sm:$0xff]   ;;  %v8598_v48 = vld [vmem:[#allocation13 + $0x8c] ss:$16 sps:$4 sm:$0xff]  }
 0x2a5   : > { %1494 = vmatprep.subr.bf16.mxu1 %v8498_v43  ;;  %2213 = vmatprep.subr.bf16.mxu0 %v8587_v41  ;;  %v8592_v43 = vld [vmem:[#allocation13 + $0x6c] ss:$16 sps:$4 sm:$0xff]  }
 0x2a6   : > { %2214 = vmatpush1.bf16.msra.mxu0 %v8589_v42 }
 0x2a7   : > { %2215 = vmatprep.subr.bf16.mxu0 %v8593_v46 }
 0x2a8   : > { %1495 = vmatpush1.bf16.msra.mxu1 %v8496_v49  ;;  %v8596_v49 = vld [vmem:[#allocation13 + $0x88] ss:$16 sps:$4 sm:$0xff]  }
 0x2a9   : > { %1496 = vmatprep.subr.bf16.mxu1 %v8501_v50  ;;  %v8599_v50 = vld [vmem:[#allocation13 + $0x2c4] ss:$16 sps:$4 sm:$0xff]  }
 0x2aa   : > { %2216 = vmatpush1.bf16.msra.mxu0 %v8595_v32 }
 0x2ab   : > { %2217 = vmatprep.subr.bf16.mxu0 %v8599_v50 }
 0x2ac   : > { %1497 = vmatpush1.bf16.msra.mxu1 %v8499_v51  ;;  %v8601_v51 = vld [vmem:[#allocation13 + $0x2c0] ss:$16 sps:$4 sm:$0xff]  }
 0x2ad   : > { %1498 = vmatprep.subr.bf16.mxu1 %v8504_v52  ;;  %v8604_v52 = vld [vmem:[#allocation13 + $0xac] ss:$16 sps:$4 sm:$0xff]  }
 0x2ae   : > { %2218 = vmatpush1.bf16.msra.mxu0 %v8601_v51 }
 0x2b0   : > { %1499 = vmatpush1.bf16.msra.mxu1 %v8502_v53  ;;  %v8602_v53 = vld [vmem:[#allocation13 + $0xa8] ss:$16 sps:$4 sm:$0xff]  }
 0x2b1   : > { %1500 = vmatprep.subr.bf16.mxu1 %v8507_v54  ;;  %v8605_v54 = vld [vmem:[#allocation13 + $0x2e4] ss:$16 sps:$4 sm:$0xff]  }
 0x2b2   : > { %2219 = vmatprep.subr.bf16.mxu0 %v8605_v54 }
 0x2b4   : > { %1501 = vmatpush1.bf16.msra.mxu1 %v8505_v55  ;;  %v8607_v55 = vld [vmem:[#allocation13 + $0x2e0] ss:$16 sps:$4 sm:$0xff]  }
 0x2b5   : > { %1502 = vmatprep.subr.bf16.mxu1 %v8510_v56  ;;  %v8610_v56 = vld [vmem:[#allocation13 + $0xcc] ss:$16 sps:$4 sm:$0xff]   ;;  %2220 = vmatpush1.bf16.msra.mxu0 %v8607_v55 }
 0x2b8   : > { %1503 = vmatpush1.bf16.msra.mxu1 %v8508_v57  ;;  %v8608_v57 = vld [vmem:[#allocation13 + $0xc8] ss:$16 sps:$4 sm:$0xff]  }
 0x2b9   : > { %1504 = vmatprep.subr.bf16.mxu1 %v8513_v58  ;;  %v8611_v58 = vld [vmem:[#allocation13 + $0x304] ss:$16 sps:$4 sm:$0xff]  }
 0x2ba   : > { %2221 = vmatprep.subr.bf16.mxu0 %v8611_v58 }
 0x2bc   : > { %1505 = vmatpush1.bf16.msra.mxu1 %v8511_v59  ;;  %v8613_v59 = vld [vmem:[#allocation13 + $0x300] ss:$16 sps:$4 sm:$0xff]  }
 0x2bd   : > { %1506 = vmatprep.subr.bf16.mxu1 %v8516_v60  ;;  %v8616_v60 = vld [vmem:[#allocation13 + $0xec] ss:$16 sps:$4 sm:$0xff]   ;;  %2222 = vmatpush1.bf16.msra.mxu0 %v8613_v59 }
 0x2c0   : > { %1507 = vmatpush1.bf16.msra.mxu1 %v8514_v61  ;;  %v8614_v61 = vld [vmem:[#allocation13 + $0xe8] ss:$16 sps:$4 sm:$0xff]  }
 0x2c1   : > { %1508 = vmatprep.subr.bf16.mxu1 %v8519_v62  ;;  %v8617_v62 = vld [vmem:[#allocation13 + $0x324] ss:$16 sps:$4 sm:$0xff]  }
 0x2c2   : > { %2223 = vmatprep.subr.bf16.mxu0 %v8617_v62 }
 0x2c4   : > { %1509 = vmatpush1.bf16.msra.mxu1 %v8517_v63  ;;  %v8619_v63 = vld [vmem:[#allocation13 + $0x320] ss:$16 sps:$4 sm:$0xff]  }
 0x2c5   : > { %1510 = vmatprep.subr.bf16.mxu1 %v8522_v1  ;;  %v8622_v1 = vld [vmem:[#allocation13 + $0x10c] ss:$16 sps:$4 sm:$0xff]   ;;  %2224 = vmatpush1.bf16.msra.mxu0 %v8619_v63 }
 0x2c8   : > { %1511 = vmatpush1.bf16.msra.mxu1 %v8520_v2  ;;  %v8620_v2 = vld [vmem:[#allocation13 + $0x108] ss:$16 sps:$4 sm:$0xff]  }
 0x2c9   : > { %1512 = vmatprep.subr.bf16.mxu1 %v8525_v3  ;;  %v8623_v3 = vld [vmem:[#allocation13 + $0x344] ss:$16 sps:$4 sm:$0xff]  }
 0x2ca   : > { %2225 = vmatprep.subr.bf16.mxu0 %v8623_v3 }
 0x2cc   : > { %1513 = vmatpush1.bf16.msra.mxu1 %v8523_v4  ;;  %v8625_v4 = vld [vmem:[#allocation13 + $0x340] ss:$16 sps:$4 sm:$0xff]  }
 0x2cd   : > { %1514 = vmatprep.subr.bf16.mxu1 %v8528_v5  ;;  %v8628_v5 = vld [vmem:[#allocation13 + $0x12c] ss:$16 sps:$4 sm:$0xff]   ;;  %2226 = vmatpush1.bf16.msra.mxu0 %v8625_v4 }
 0x2d0   : > { %1515 = vmatpush1.bf16.msra.mxu1 %v8526_v6  ;;  %v8626_v6 = vld [vmem:[#allocation13 + $0x128] ss:$16 sps:$4 sm:$0xff]  }
 0x2d1   : > { %1516 = vmatprep.subr.bf16.mxu1 %v8531_v7  ;;  %v8629_v7 = vld [vmem:[#allocation13 + $0x364] ss:$16 sps:$4 sm:$0xff]  }
 0x2d2   : > { %2227 = vmatprep.subr.bf16.mxu0 %v8629_v7 }
 0x2d4   : > { %1517 = vmatpush1.bf16.msra.mxu1 %v8529_v8  ;;  %v1700_v8 = vld [vmem:[#allocation3 + $0x8] sm:$0x77] }
 0x2d5   : > { %1518 = vmatprep.subr.bf16.mxu1 %v8534_v9  ;;  %v8631_v9 = vld [vmem:[#allocation13 + $0x360] ss:$16 sps:$4 sm:$0xff]  }
 0x2d6   : > { %2228 = vmatpush1.bf16.msra.mxu0 %v8631_v9 }
 0x2d8   : > { %1519 = vmatpush1.bf16.msra.mxu1 %v8532_v10  ;;  %v8632_v10 = vld [vmem:[#allocation13 + $0x148] ss:$16 sps:$4 sm:$0xff]  }
 0x2d9   : > { %1520 = vmatprep.subr.bf16.mxu1 %v8537_v11  ;;  %v8634_v11 = vld [vmem:[#allocation13 + $0x14c] ss:$16 sps:$4 sm:$0xff]  }
 0x2dc   : > { %1521 = vmatpush1.bf16.msra.mxu1 %v8535_v12  ;;  %v8635_v12 = vld [vmem:[#allocation13 + $0x384] ss:$16 sps:$4 sm:$0xff]  }
 0x2dd   : > { %1522 = vmatprep.subr.bf16.mxu1 %v8540_v13  ;;  %v1701_v13 = vsel %vm1699_vm2, 0, %v1700_v8  ;;  %2229 = vmatprep.subr.bf16.mxu0 %v8635_v12 }
 0x2de   : > { %1702 = vst [vmem:[#allocation3 + $0x8] sm:$0x77] %v1701_v13 }
 0x2e0   : > { %1523 = vmatpush1.bf16.msra.mxu1 %v8538_v14  ;;  %v8637_v14 = vld [vmem:[#allocation13 + $0x380] ss:$16 sps:$4 sm:$0xff]  }
 0x2e1   : > { %1533 = vmatprep.subr.bf16.mxu1 %v8544_v15  ;;  %v8640_v15 = vld [vmem:[#allocation13 + $0x16c] ss:$16 sps:$4 sm:$0xff]   ;;  %2230 = vmatpush1.bf16.msra.mxu0 %v8637_v14 }
 0x2e3   : > { %1525 = vmatmul.mubr.bf16.vlgmr.msra.gmra.mrb[4].mxu1 %v7383_v17  ;;  %v8641_v17 = vld [vmem:[#allocation13 + $0x3a4] ss:$16 sps:$4 sm:$0xff]  }
 0x2e4   : > { %1534 = vmatpush1.bf16.msra.mxu1 %v8542_v16  ;;  %1565 = vmatprep.mubr.bf16.mxu1 %v9562_v20  ;;  %v8638_v16 = vld [vmem:[#allocation13 + $0x168] ss:$16 sps:$4 sm:$0xff]   ;;  %v8646_v20 = vld [vmem:[#allocation13 + $0x18c] ss:$16 sps:$4 sm:$0xff]  }
 0x2e5   : > { %1535 = vmatprep.subr.bf16.mxu1 %v8547_v18  ;;  %v8643_v18 = vld [vmem:[#allocation13 + $0x3a0] ss:$16 sps:$4 sm:$0xff]   ;;  %2231 = vmatprep.subr.bf16.mxu0 %v8641_v17 }
 0x2e6   : > { %2232 = vmatpush1.bf16.msra.mxu0 %v8643_v18 }
 0x2e8   : > { %1536 = vmatpush1.bf16.msra.mxu1 %v8545_v19  ;;  %v8644_v19 = vld [vmem:[#allocation13 + $0x188] ss:$16 sps:$4 sm:$0xff]  }
 0x2e9   : > { %1537 = vmatprep.subr.bf16.mxu1 %v8550_v21  ;;  %v8647_v21 = vld [vmem:[#allocation13 + $0x3c4] ss:$16 sps:$4 sm:$0xff]  }
 0x2ea   : > { %2233 = vmatprep.subr.bf16.mxu0 %v8647_v21 }
 0x2ec   : > { %1538 = vmatpush1.bf16.msra.mxu1 %v8548_v22  ;;  %v8652_v22 = vld [vmem:[#allocation13 + $0x1ac] ss:$16 sps:$4 sm:$0xff]  }
 0x2ed   : > { %1539 = vmatprep.subr.bf16.mxu1 %v8553_v23  ;;  %v8649_v23 = vld [vmem:[#allocation13 + $0x3c0] ss:$16 sps:$4 sm:$0xff]  }
 0x2ee   : > { %2234 = vmatpush1.bf16.msra.mxu0 %v8649_v23 }
 0x2f0   : > { %1540 = vmatpush1.bf16.msra.mxu1 %v8551_v24  ;;  %v8653_v24 = vld [vmem:[#allocation13 + $0x3e4] ss:$16 sps:$4 sm:$0xff]  }
 0x2f1   : > { %1541 = vmatprep.subr.bf16.mxu1 %v8556_v25  ;;  %v8650_v25 = vld [vmem:[#allocation13 + $0x1a8] ss:$16 sps:$4 sm:$0xff]   ;;  %2235 = vmatprep.subr.bf16.mxu0 %v8653_v24 }
 0x2f4   : > { %1542 = vmatpush1.bf16.msra.mxu1 %v8554_v26  ;;  %v8658_v26 = vld [vmem:[#allocation13 + $0x1cc] ss:$16 sps:$4 sm:$0xff]  }
 0x2f5   : > { %1543 = vmatprep.subr.bf16.mxu1 %v8559_v27  ;;  %v8655_v27 = vld [vmem:[#allocation13 + $0x3e0] ss:$16 sps:$4 sm:$0xff]  }
 0x2f6   : > { %2236 = vmatpush1.bf16.msra.mxu0 %v8655_v27 }
 0x2f8   : > { %1544 = vmatpush1.bf16.msra.mxu1 %v8557_v28  ;;  %v8656_v28 = vld [vmem:[#allocation13 + $0x1c8] ss:$16 sps:$4 sm:$0xff]  }
 0x2f9   : > { %1545 = vmatprep.subr.bf16.mxu1 %v8562_v29  ;;  %v8662_v29 = vld [vmem:[#allocation13 + $0x20c] ss:$16 sps:$4 sm:$0xff]  }
 0x2fa   : > { %2246 = vmatprep.subr.bf16.mxu0 %v8662_v29 }
 0x2fc   : > { %1546 = vmatpush1.bf16.msra.mxu1 %v8560_v30  ;;  %v8664_v30 = vld [vmem:[#allocation13 + $0x1e8] ss:$16 sps:$4 sm:$0xff]  }
 0x2fd   : > { %1547 = vmatprep.subr.bf16.mxu1 %v8565_v31  ;;  %v8666_v31 = vld [vmem:[#allocation13 + $0x1ec] ss:$16 sps:$4 sm:$0xff]  }
 0x300   : > { %1548 = vmatpush1.bf16.msra.mxu1 %v8563_v33  ;;  %v8674_v33 = vld [vmem:[#allocation13 + $0x40c] ss:$16 sps:$4 sm:$0xff]  }
 0x301   : > { %2671 = vmatprep.subr.bf16.mxu1 %v8574_v34  ;;  %v10579_v34 = vsub.s32 0, %v10547_v44 }
 0x303   : > { %1566 = vmatmul.mubr.bf16.vlgmr.msra.gmra.mrb[4].mxu1 %v7386_v36  ;;  %v10582_v36 = vsub.s32 1, %v10547_v44 }
 0x304   : > { %2672 = vmatpush1.bf16.msra.mxu1 %v8572_v35  ;;  %v1029_v35 = vld [vmem:[#allocation11] sm:$0x3] }
 0x305   : > { %2673 = vmatprep.subr.bf16.mxu1 %v8580_v37  ;;  %v1034_v37 = vrot.slane %v1029_v35, %v10579_v34 }
 0x308   : > { %2674 = vmatpush1.bf16.msra.mxu1 %v8578_v38  ;;  %v1038_v38 = vrot.slane %v1029_v35, %v10582_v36 }
 0x309   : > { %2675 = vmatprep.subr.bf16.mxu1 %v8586_v39 }
 0x30c   : > { %2676 = vmatpush1.bf16.msra.mxu1 %v8584_v40 }
 0x30d   : > { %2677 = vmatprep.subr.bf16.mxu1 %v8592_v43 }
 0x310   : > { %2678 = vmatpush1.bf16.msra.mxu1 %v8590_v45 }
 0x311   : > { %2679 = vmatprep.subr.bf16.mxu1 %v8598_v48 }
 0x314   : > { %2680 = vmatpush1.bf16.msra.mxu1 %v8596_v49 }
 0x315   : > { %2681 = vmatprep.subr.bf16.mxu1 %v8604_v52 }
 0x318   : > { %2682 = vmatpush1.bf16.msra.mxu1 %v8602_v53 }
 0x319   : > { %2683 = vmatprep.subr.bf16.mxu1 %v8610_v56 }
 0x31c   : > { %2684 = vmatpush1.bf16.msra.mxu1 %v8608_v57 }
 0x31d   : > { %2685 = vmatprep.subr.bf16.mxu1 %v8616_v60 }
 0x320   : > { %2686 = vmatpush1.bf16.msra.mxu1 %v8614_v61 }
 0x321   : > { %2687 = vmatprep.subr.bf16.mxu1 %v8622_v1 }
 0x324   : > { %2688 = vmatpush1.bf16.msra.mxu1 %v8620_v2 }
 0x325   : > { %2689 = vmatprep.subr.bf16.mxu1 %v8628_v5 }
 0x328   : > { %2690 = vmatpush1.bf16.msra.mxu1 %v8626_v6 }
 0x329   : > { %2691 = vmatprep.subr.bf16.mxu1 %v8634_v11 }
 0x32c   : > { %2692 = vmatpush1.bf16.msra.mxu1 %v8632_v10 }
 0x32d   : > { %2693 = vmatprep.subr.bf16.mxu1 %v8640_v15 }
 0x330   : > { %2694 = vmatpush1.bf16.msra.mxu1 %v8638_v16 }
 0x331   : > { %2695 = vmatprep.subr.bf16.mxu1 %v8646_v20 }
 0x334   : > { %2696 = vmatpush1.bf16.msra.mxu1 %v8644_v19 }
 0x335   : > { %2697 = vmatprep.subr.bf16.mxu1 %v8652_v22 }
 0x338   : > { %2698 = vmatpush1.bf16.msra.mxu1 %v8650_v25 }
 0x339   : > { %2699 = vmatprep.subr.bf16.mxu1 %v8658_v26 }
 0x33c   : > { %2700 = vmatpush1.bf16.msra.mxu1 %v8656_v28 }
 0x33d   : > { %2701 = vmatprep.subr.bf16.mxu1 %v8666_v31 }
 0x340   : > { %2702 = vmatpush1.bf16.msra.mxu1 %v8664_v30 }
 0x341   : > { %3153 = vmatprep.subr.bf16.mxu1 %v8674_v33 }
 0x3d6   : > { %v1567_v39 = vpop.f32.mrb[4].mxu1 }
 0x3d7   : > { %v8235_v40 = vadd.f32 %v1567_v39, %v1034_v37  ;;  %v1569_v41 = vpop.f32.mrb[5].mxu1 }
 0x3d8   : > { %v8236_v42 = vadd.f32 %v1569_v41, %v1038_v38  ;;  %v1571_v43 = vpop.f32.mrb[6].mxu1 }
 0x3d9   : > { %v1574_v45 = vmax.f32 %v8235_v40, 0.0  ;;  %v1572_v46 = vpop.f32.mrb[7].mxu1 }
 0x3da   : > { %v1575_v32 = vmax.f32 %v8236_v42, 0.0 }
 0x3dc   : > { %v1578_v48 = vcombine.low %v1574_v45, %v1575_v32  ;;  %v1579_v49 = vcombine.high %v1574_v45, %v1575_v32 }
 0x3de   : > { %v1586_v50 = vrot.slane %v1578_v48, %v10550_v47  ;;  %v1593_v51 = vrot.slane %v1579_v49, %v10550_v47 }
 0x3e0   : > { %v1594_v52 = vcombine.high %v1586_v50, %v1586_v50  ;;  %v1595_v53 = vcombine.high %v1593_v51, %v1593_v51  ;;  %v1602_v54 = vrot.slane %v1586_v50, %v10550_v47  ;;  %v1618_v55 = vrot.slane %v1593_v51, %v10550_v47 }
 0x3e2   : > { %v1603_v56 = vcombine.high %v1602_v54, %v1602_v54  ;;  %v1610_v57 = vrot.slane %v1594_v52, %v10550_v47  ;;  %v1619_v58 = vcombine.high %v1618_v55, %v1618_v55  ;;  %v1626_v59 = vrot.slane %v1595_v53, %v10550_v47 }
 0x3e3   : > { %v1636_v60 = vsel %vm804_vm3, %v1602_v54, -inf  ;;  %v1664_v61 = vsel %vm804_vm3, %v1618_v55, -inf }
 0x3e4   : > { %v1611_v62 = vcombine.high %v1610_v57, %v1610_v57  ;;  %v1627_v63 = vcombine.high %v1626_v59, %v1626_v59  ;;  %v1637_v1 = vrot.slane %v1636_v60, 4  ;;  %v1643_v2 = vsel %vm804_vm3, %v1603_v56, -inf }
 0x3e5   : > { %v1644_v3 = vrot.slane %v1643_v2, 4  ;;  %v1650_v4 = vsel %vm804_vm3, %v1610_v57, -inf  ;;  %v1665_v5 = vrot.slane %v1664_v61, 4  ;;  %v1671_v6 = vsel %vm804_vm3, %v1619_v58, -inf }
 0x3e6   : > { %v1638_v7 = vmax.f32 %v1636_v60, %v1637_v1  ;;  %v1651_v8 = vrot.slane %v1650_v4, 4  ;;  %v1657_v9 = vsel %vm804_vm3, %v1611_v62, -inf  ;;  %v1672_v10 = vrot.slane %v1671_v6, 4 }
 0x3e7   : > { %v1645_v11 = vmax.f32 %v1643_v2, %v1644_v3  ;;  %v1658_v12 = vrot.slane %v1657_v9, 4  ;;  %v1666_v13 = vmax.f32 %v1664_v61, %v1665_v5  ;;  %v1678_v14 = vsel %vm804_vm3, %v1626_v59, -inf }
 0x3e8   : > { %v1639_v15 = vrot.slane %v1638_v7, 2  ;;  %v1652_v16 = vmax.f32 %v1650_v4, %v1651_v8  ;;  %v1673_v17 = vmax.f32 %v1671_v6, %v1672_v10  ;;  %v1679_v18 = vrot.slane %v1678_v14, 4 }
 0x3e9   : > { %v1646_v19 = vrot.slane %v1645_v11, 2  ;;  %v1659_v20 = vmax.f32 %v1657_v9, %v1658_v12  ;;  %v1667_v21 = vrot.slane %v1666_v13, 2  ;;  %v1685_v22 = vsel %vm804_vm3, %v1627_v63, -inf }
 0x3ea   : > { %v1640_v23 = vmax.f32 %v1638_v7, %v1639_v15  ;;  %v1653_v24 = vrot.slane %v1652_v16, 2  ;;  %v1674_v25 = vrot.slane %v1673_v17, 2  ;;  %v1680_v26 = vmax.f32 %v1678_v14, %v1679_v18  ;;  %v1748_v15 = vld [vmem:[#allocation3] sm:$0x88]  ;;  %v8660_v18 = vld [vmem:[#allocation13 + $0x208] ss:$16 sps:$4 sm:$0xff]  }
 0x3eb   : > { %v1647_v27 = vmax.f32 %v1645_v11, %v1646_v19  ;;  %v1660_v28 = vrot.slane %v1659_v20, 2  ;;  %v1668_v29 = vmax.f32 %v1666_v13, %v1667_v21  ;;  %v1686_v30 = vrot.slane %v1685_v22, 4 }
 0x3ec   : > { %v1641_v31 = vrot.slane %v1640_v23, 1  ;;  %v1654_v33 = vmax.f32 %v1652_v16, %v1653_v24  ;;  %v1675_v35 = vmax.f32 %v1673_v17, %v1674_v25  ;;  %v1681_v37 = vrot.slane %v1680_v26, 2 }
 0x3ed   : > { %v1648_v38 = vrot.slane %v1647_v27, 1  ;;  %v1661_v39 = vmax.f32 %v1659_v20, %v1660_v28  ;;  %v1669_v40 = vrot.slane %v1668_v29, 1  ;;  %v1687_v41 = vmax.f32 %v1685_v22, %v1686_v30  ;;  %v8669_v22 = vld [vmem:[#allocation13 + $0x22c] ss:$16 sps:$4 sm:$0xff]   ;;  %v8667_v28 = vld [vmem:[#allocation13 + $0x228] ss:$16 sps:$4 sm:$0xff]  }
 0x3ee   : > { %v1655_v42 = vrot.slane %v1654_v33, 1  ;;  %v1676_v43 = vrot.slane %v1675_v35, 1  ;;  %v1682_v45 = vmax.f32 %v1680_v26, %v1681_v37  ;;  %v1642_v46 = vmax.f32 %v1640_v23, %v1641_v31 }
 0x3ef   : > { %v1649_v32 = vmax.f32 %v1647_v27, %v1648_v38  ;;  %v1662_v48 = vrot.slane %v1661_v39, 1  ;;  %v1688_v49 = vrot.slane %v1687_v41, 2  ;;  %v1670_v50 = vmax.f32 %v1668_v29, %v1669_v40 }
 0x3f0   : > { %v1677_v51 = vmax.f32 %v1675_v35, %v1676_v43  ;;  %v1683_v52 = vrot.slane %v1682_v45, 1  ;;  %v1656_v53 = vmax.f32 %v1654_v33, %v1655_v42  ;;  %v8677_v35 = vld [vmem:[#allocation13 + $0x24c] ss:$16 sps:$4 sm:$0xff]   ;;  %v8675_v43 = vld [vmem:[#allocation13 + $0x248] ss:$16 sps:$4 sm:$0xff]  }
 0x3f1   : > { %v1663_v54 = vmax.f32 %v1661_v39, %v1662_v48  ;;  %v1689_v55 = vmax.f32 %v1687_v41, %v1688_v49  ;;  %v8165_v56 = vpack.c.bf16 %v1649_v32, %v1642_v46  ;;  %v8672_v39 = vld [vmem:[#allocation13 + $0x408] ss:$16 sps:$4 sm:$0xff]   ;;  %v8680_v42 = vld [vmem:[#allocation13 + $0x42c] ss:$16 sps:$4 sm:$0xff]  }
 0x3f2   : > { %v8167_v57 = vpack.c.bf16 %v1677_v51, %v1670_v50  ;;  %v1684_v60 = vmax.f32 %v1682_v45, %v1683_v52  ;;  %v8683_v46 = vld [vmem:[#allocation13 + $0x26c] ss:$16 sps:$4 sm:$0xff]   ;;  %v8678_v32 = vld [vmem:[#allocation13 + $0x428] ss:$16 sps:$4 sm:$0xff]  }
 0x3f3   : > { %v1690_v58 = vrot.slane %v1689_v55, 1  ;;  %v8166_v59 = vpack.c.bf16 %v1663_v54, %v1656_v53  ;;  %v1731_v61 = vunpack.c.l.b16 %v8165_v56  ;;  %v1732_v63 = vunpack.c.h.b16 %v8165_v56  ;;  %v8686_v48 = vld [vmem:[#allocation13 + $0x44c] ss:$16 sps:$4 sm:$0xff]   ;;  %v8681_v49 = vld [vmem:[#allocation13 + $0x268] ss:$16 sps:$4 sm:$0xff]  }
 0x3f4   : > { %v1735_v3 = vunpack.c.l.b16 %v8167_v57  ;;  %v1736_v4 = vunpack.c.h.b16 %v8167_v57  ;;  %v8689_v50 = vld [vmem:[#allocation13 + $0x28c] ss:$16 sps:$4 sm:$0xff]   ;;  %v8684_v51 = vld [vmem:[#allocation13 + $0x448] ss:$16 sps:$4 sm:$0xff]  }
 0x3f5   : > { %v1691_v62 = vmax.f32 %v1689_v55, %v1690_v58  ;;  %v1733_v1 = vunpack.c.l.b16 %v8166_v59  ;;  %v1734_v2 = vunpack.c.h.b16 %v8166_v59  ;;  %v8692_v52 = vld [vmem:[#allocation13 + $0x46c] ss:$16 sps:$4 sm:$0xff]   ;;  %v8687_v53 = vld [vmem:[#allocation13 + $0x288] ss:$16 sps:$4 sm:$0xff]  }
 0x3f6   : > { %v8695_v54 = vld [vmem:[#allocation13 + $0x2ac] ss:$16 sps:$4 sm:$0xff]   ;;  %v8690_v55 = vld [vmem:[#allocation13 + $0x468] ss:$16 sps:$4 sm:$0xff]  }
 0x3f7   : > { %v8168_v5 = vpack.c.bf16 %v1691_v62, %v1684_v60  ;;  %v1739_v6 = vsel %vm903_vm4, %v1733_v1, %v1731_v61  ;;  %v1742_v7 = vsel %vm903_vm4, %v1734_v2, %v1732_v63  ;;  %v8698_v56 = vld [vmem:[#allocation13 + $0x48c] ss:$16 sps:$4 sm:$0xff]   ;;  %v8693_v57 = vld [vmem:[#allocation13 + $0x2a8] ss:$16 sps:$4 sm:$0xff]  }
 0x3f8   : > { %v1740_v8 = vsel %vm905_vm5, %v1735_v3, %v1739_v6  ;;  %v1743_v9 = vsel %vm905_vm5, %v1736_v4, %v1742_v7  ;;  %v8701_v58 = vld [vmem:[#allocation13 + $0x2cc] ss:$16 sps:$4 sm:$0xff]   ;;  %v8696_v59 = vld [vmem:[#allocation13 + $0x488] ss:$16 sps:$4 sm:$0xff]   ;;  %vm3351_vm5 = vsmask.f32 1280 }
 0x3f9   : > { %v1737_v10 = vunpack.c.l.b16 %v8168_v5  ;;  %v1738_v11 = vunpack.c.h.b16 %v8168_v5  ;;  %v8704_v60 = vld [vmem:[#allocation13 + $0x4ac] ss:$16 sps:$4 sm:$0xff]   ;;  %v8699_v61 = vld [vmem:[#allocation13 + $0x2c8] ss:$16 sps:$4 sm:$0xff]   ;;  %vm10628_vm8 = vmand %vm804_vm3, %vm3351_vm5 }
 0x3fa   : > { %v8707_v62 = vld [vmem:[#allocation13 + $0x2ec] ss:$16 sps:$4 sm:$0xff]   ;;  %v8702_v63 = vld [vmem:[#allocation13 + $0x4a8] ss:$16 sps:$4 sm:$0xff]  }
 0x3fb   : > { %v1741_v12 = vsel %vm907_vm6, %v1737_v10, %v1740_v8  ;;  %v1744_v13 = vsel %vm907_vm6, %v1738_v11, %v1743_v9  ;;  %v8710_v1 = vld [vmem:[#allocation13 + $0x4cc] ss:$16 sps:$4 sm:$0xff]   ;;  %v8705_v2 = vld [vmem:[#allocation13 + $0x2e8] ss:$16 sps:$4 sm:$0xff]   ;;  %vm3353_vm6 = vcmask 1045508  }
 0x3fc   : > { %v1745_v14 = vpack.c.b16 %v1744_v13, %v1741_v12  ;;  %v8713_v3 = vld [vmem:[#allocation13 + $0x30c] ss:$16 sps:$4 sm:$0xff]   ;;  %v8708_v4 = vld [vmem:[#allocation13 + $0x4c8] ss:$16 sps:$4 sm:$0xff]   ;;  %vm10632_vm9 = vmand %vm3353_vm6, %vm3354_vm7 }
 0x3fd   : > { %v8716_v5 = vld [vmem:[#allocation13 + $0x4ec] ss:$16 sps:$4 sm:$0xff]   ;;  %v8711_v6 = vld [vmem:[#allocation13 + $0x308] ss:$16 sps:$4 sm:$0xff]   ;;  %vm3356_vm10 = vmor %vm10632_vm9, %vm10628_vm8 }
 0x3fe   : > { %1747 = vst [vmem:[#allocation3 + $0x8] sm:$0x33] %v1745_v14  ;;  %v8719_v7 = vld [vmem:[#allocation13 + $0x32c] ss:$16 sps:$4 sm:$0xff]   ;;  %v8714_v8 = vld [vmem:[#allocation13 + $0x4e8] ss:$16 sps:$4 sm:$0xff]  }
 0x3ff   : > { %v8722_v9 = vld [vmem:[#allocation13 + $0x50c] ss:$16 sps:$4 sm:$0xff]   ;;  %v8717_v10 = vld [vmem:[#allocation13 + $0x328] ss:$16 sps:$4 sm:$0xff]  }
 0x400   : > { %v8725_v11 = vld [vmem:[#allocation13 + $0x34c] ss:$16 sps:$4 sm:$0xff]   ;;  %v8720_v12 = vld [vmem:[#allocation13 + $0x508] ss:$16 sps:$4 sm:$0xff]  }
 0x401   : > { %v8728_v13 = vld [vmem:[#allocation13 + $0x52c] ss:$16 sps:$4 sm:$0xff]   ;;  %v8723_v14 = vld [vmem:[#allocation13 + $0x348] ss:$16 sps:$4 sm:$0xff]  }
 0x405   : > { %v1749_v16 = vld [vmem:[#allocation3 + $0x8] sm:$0x77] }
 0x406   : > { %v7472_v17 = vcombine.high %v1749_v16, %v1749_v16  ;;  %v10606_v19 = vcombine.low %v1749_v16, %v1749_v16  ;;  %v7537_v20 = vcombine.low %v1748_v15, %v1749_v16  ;;  %v7538_v21 = vcombine.high %v1748_v15, %v1749_v16  ;;  %v8731_v15 = vld [vmem:[#allocation13 + $0x36c] ss:$16 sps:$4 sm:$0xff]   ;;  %v8726_v16 = vld [vmem:[#allocation13 + $0x528] ss:$16 sps:$4 sm:$0xff]  }
 0x408   : > { %2237 = vmatprep.mubr.bf16.mxu0 %v7472_v17  ;;  %v2301_v23 = vshrl.u32 %v7538_v21, 16  ;;  %v2304_v24 = vshll.u32 %v7538_v21, 16  ;;  %v2293_v25 = vshrl.u32 %v7537_v20, 16  ;;  %v2296_v26 = vshll.u32 %v7537_v20, 16  ;;  %v8737_v20 = vld [vmem:[#allocation13 + $0x38c] ss:$16 sps:$4 sm:$0xff]  }
 0x409   : > { %2238 = vmatmul.mubr.bf16.vlgmr.msra.gmra.mrb[0].mxu0 %v10606_v19  ;;  %v2786_v27 = vshll.u32 %v7472_v17, 16  ;;  %v2784_v41 = vshrl.u32 %v7472_v17, 16  ;;  %v8732_v21 = vld [vmem:[#allocation13 + $0x548] ss:$16 sps:$4 sm:$0xff]  }
 0x40a   : > { %2247 = vmatpush1.bf16.msra.mxu0 %v8660_v18  ;;  %2278 = vmatprep.mubr.bf16.mxu0 %v7472_v17  ;;  %v2303_v29 = vrot.slane %v2301_v23, 3  ;;  %v2306_v30 = vrot.slane %v2304_v24, 4  ;;  %v2295_v31 = vrot.slane %v2293_v25, 3  ;;  %v2298_v33 = vrot.slane %v2296_v26, 4  ;;  %v8734_v17 = vld [vmem:[#allocation13 + $0x54c] ss:$16 sps:$4 sm:$0xff]  }
 0x40b   : > { %2248 = vmatprep.subr.bf16.mxu0 %v8669_v22  ;;  %v2788_v37 = vrot.slane %v2786_v27, 1  ;;  %v8729_v18 = vld [vmem:[#allocation13 + $0x368] ss:$16 sps:$4 sm:$0xff]   ;;  %v8740_v22 = vld [vmem:[#allocation13 + $0x56c] ss:$16 sps:$4 sm:$0xff]  }
 0x40c   : > { %v10609_v38 = vor.u32 %v2306_v30, %v2303_v29  ;;  %v10611_v40 = vor.u32 %v2298_v33, %v2295_v31  ;;  %v8735_v23 = vld [vmem:[#allocation13 + $0x388] ss:$16 sps:$4 sm:$0xff]   ;;  %v8743_v24 = vld [vmem:[#allocation13 + $0x3ac] ss:$16 sps:$4 sm:$0xff]  }
 0x40d   : > { %v10614_v45 = vor.u32 %v2788_v37, %v2784_v41  ;;  %v8738_v25 = vld [vmem:[#allocation13 + $0x568] ss:$16 sps:$4 sm:$0xff]   ;;  %v8746_v26 = vld [vmem:[#allocation13 + $0x58c] ss:$16 sps:$4 sm:$0xff]   ;;  %v8761_v41 = vld [vmem:[#allocation13 + $0x4] ss:$16 sps:$4 sm:$0xff]  }
 0x40e   : > { %2249 = vmatpush1.bf16.msra.mxu0 %v8667_v28  ;;  %2703 = vmatprep.mubr.bf16.mxu1 %v10609_v38  ;;  %v8741_v27 = vld [vmem:[#allocation13 + $0x3a8] ss:$16 sps:$4 sm:$0xff]   ;;  %v8749_v28 = vld [vmem:[#allocation13 + $0x3cc] ss:$16 sps:$4 sm:$0xff]  }
 0x40f   : > { %2704 = vmatmul.mubr.bf16.vlgmr.msra.gmra.mrb[8].mxu1 %v10611_v40  ;;  %2250 = vmatprep.subr.bf16.mxu0 %v8677_v35  ;;  %v8744_v29 = vld [vmem:[#allocation13 + $0x588] ss:$16 sps:$4 sm:$0xff]   ;;  %v8752_v30 = vld [vmem:[#allocation13 + $0x5ac] ss:$16 sps:$4 sm:$0xff]  }
 0x410   : > { %3154 = vmatpush1.bf16.msra.mxu1 %v8672_v39  ;;  %3185 = vmatprep.mubr.bf16.mxu1 %v10614_v45  ;;  %v8747_v31 = vld [vmem:[#allocation13 + $0x3c8] ss:$16 sps:$4 sm:$0xff]   ;;  %v8755_v33 = vld [vmem:[#allocation13 + $0x3ec] ss:$16 sps:$4 sm:$0xff]  }
 0x411   : > { %3155 = vmatprep.subr.bf16.mxu1 %v8680_v42  ;;  %v8750_v35 = vld [vmem:[#allocation13 + $0x5a8] ss:$16 sps:$4 sm:$0xff]   ;;  %v8758_v37 = vld [vmem:[#allocation13 + $0x5cc] ss:$16 sps:$4 sm:$0xff]  }
 0x412   : > { %2251 = vmatpush1.bf16.msra.mxu0 %v8675_v43  ;;  %v8753_v39 = vld [vmem:[#allocation13 + $0x3e8] ss:$16 sps:$4 sm:$0xff]   ;;  %v8764_v43 = vld [vmem:[#allocation13 + $0x5ec] ss:$16 sps:$4 sm:$0xff]  }
 0x413   : > { %2252 = vmatprep.subr.bf16.mxu0 %v8683_v46  ;;  %v8756_v42 = vld [vmem:[#allocation13 + $0x5c8] ss:$16 sps:$4 sm:$0xff]   ;;  %v2779_v46 = vshll.u32 %v10606_v19, 16 }
 0x414   : > { %3156 = vmatpush1.bf16.msra.mxu1 %v8678_v32  ;;  %v8759_v32 = vld [vmem:[#allocation13] ss:$16 sps:$4 sm:$0xff]  }
 0x415   : > { %3157 = vmatprep.subr.bf16.mxu1 %v8686_v48  ;;  %v8767_v48 = vld [vmem:[#allocation13 + $0x24] ss:$16 sps:$4 sm:$0xff]  }
 0x416   : > { %2253 = vmatpush1.bf16.msra.mxu0 %v8681_v49  ;;  %v8762_v49 = vld [vmem:[#allocation13 + $0x5e8] ss:$16 sps:$4 sm:$0xff]  }
 0x417   : > { %2254 = vmatprep.subr.bf16.mxu0 %v8689_v50  ;;  %v2781_v50 = vrot.slane %v2779_v46, 1  ;;  %v8872_v46 = vld [vmem:[#allocation16 + $0x684] ss:$16 sps:$4 sm:$0xff]  }
 0x418   : > { %3158 = vmatpush1.bf16.msra.mxu1 %v8684_v51  ;;  %v8765_v51 = vld [vmem:[#allocation13 + $0x20] ss:$16 sps:$4 sm:$0xff]  }
 0x419   : > { %3159 = vmatprep.subr.bf16.mxu1 %v8692_v52  ;;  %v2777_v52 = vshrl.u32 %v10606_v19, 16 }
 0x41a   : > { %2255 = vmatpush1.bf16.msra.mxu0 %v8687_v53  ;;  %v8770_v53 = vld [vmem:[#allocation13 + $0x44] ss:$16 sps:$4 sm:$0xff]  }
 0x41b   : > { %2256 = vmatprep.subr.bf16.mxu0 %v8695_v54  ;;  %v10622_v54 = vor.u32 %v2781_v50, %v2777_v52  ;;  %v8875_v50 = vld [vmem:[#allocation16 + $0x6a4] ss:$16 sps:$4 sm:$0xff]   ;;  %v8873_v52 = vld [vmem:[#allocation16 + $0x6a0] ss:$16 sps:$4 sm:$0xff]  }
 0x41c   : > { %3160 = vmatpush1.bf16.msra.mxu1 %v8690_v55  ;;  %v8768_v55 = vld [vmem:[#allocation13 + $0x40] ss:$16 sps:$4 sm:$0xff]  }
 0x41d   : > { %3161 = vmatprep.subr.bf16.mxu1 %v8698_v56  ;;  %v8773_v56 = vld [vmem:[#allocation13 + $0x64] ss:$16 sps:$4 sm:$0xff]  }
 0x41e   : > { %2257 = vmatpush1.bf16.msra.mxu0 %v8693_v57  ;;  %v8771_v57 = vld [vmem:[#allocation13 + $0x60] ss:$16 sps:$4 sm:$0xff]  }
 0x41f   : > { %2258 = vmatprep.subr.bf16.mxu0 %v8701_v58  ;;  %v8776_v58 = vld [vmem:[#allocation13 + $0x84] ss:$16 sps:$4 sm:$0xff]  }
 0x420   : > { %3162 = vmatpush1.bf16.msra.mxu1 %v8696_v59  ;;  %v8779_v59 = vld [vmem:[#allocation13 + $0xa4] ss:$16 sps:$4 sm:$0xff]  }
 0x421   : > { %3163 = vmatprep.subr.bf16.mxu1 %v8704_v60  ;;  %v8782_v60 = vld [vmem:[#allocation13 + $0xc4] ss:$16 sps:$4 sm:$0xff]  }
 0x422   : > { %2259 = vmatpush1.bf16.msra.mxu0 %v8699_v61  ;;  %v8780_v61 = vld [vmem:[#allocation13 + $0xc0] ss:$16 sps:$4 sm:$0xff]  }
 0x423   : > { %2260 = vmatprep.subr.bf16.mxu0 %v8707_v62  ;;  %v8785_v62 = vld [vmem:[#allocation13 + $0xe4] ss:$16 sps:$4 sm:$0xff]  }
 0x424   : > { %3164 = vmatpush1.bf16.msra.mxu1 %v8702_v63  ;;  %v8783_v63 = vld [vmem:[#allocation13 + $0xe0] ss:$16 sps:$4 sm:$0xff]  }
 0x425   : > { %3165 = vmatprep.subr.bf16.mxu1 %v8710_v1  ;;  %v8788_v1 = vld [vmem:[#allocation13 + $0x104] ss:$16 sps:$4 sm:$0xff]  }
 0x426   : > { %2261 = vmatpush1.bf16.msra.mxu0 %v8705_v2  ;;  %v8858_v2 = vld [vmem:[#allocation16 + $0x600] ss:$16 sps:$4 sm:$0xff]  }
 0x427   : > { %2262 = vmatprep.subr.bf16.mxu0 %v8713_v3  ;;  %v8860_v3 = vld [vmem:[#allocation16 + $0x604] ss:$16 sps:$4 sm:$0xff]  }
 0x428   : > { %3166 = vmatpush1.bf16.msra.mxu1 %v8708_v4  ;;  %v8786_v4 = vld [vmem:[#allocation13 + $0x100] ss:$16 sps:$4 sm:$0xff]  }
 0x429   : > { %3167 = vmatprep.subr.bf16.mxu1 %v8716_v5  ;;  %v8863_v5 = vld [vmem:[#allocation16 + $0x624] ss:$16 sps:$4 sm:$0xff]  }
 0x42a   : > { %2263 = vmatpush1.bf16.msra.mxu0 %v8711_v6  ;;  %v8791_v6 = vld [vmem:[#allocation13 + $0x124] ss:$16 sps:$4 sm:$0xff]  }
 0x42b   : > { %2264 = vmatprep.subr.bf16.mxu0 %v8719_v7  ;;  %v8861_v7 = vld [vmem:[#allocation16 + $0x620] ss:$16 sps:$4 sm:$0xff]  }
 0x42c   : > { %3168 = vmatpush1.bf16.msra.mxu1 %v8714_v8  ;;  %v8866_v8 = vld [vmem:[#allocation16 + $0x644] ss:$16 sps:$4 sm:$0xff]  }
 0x42d   : > { %3169 = vmatprep.subr.bf16.mxu1 %v8722_v9  ;;  %v8789_v9 = vld [vmem:[#allocation13 + $0x120] ss:$16 sps:$4 sm:$0xff]  }
 0x42e   : > { %2265 = vmatpush1.bf16.msra.mxu0 %v8717_v10  ;;  %v8794_v10 = vld [vmem:[#allocation13 + $0x144] ss:$16 sps:$4 sm:$0xff]  }
 0x42f   : > { %2266 = vmatprep.subr.bf16.mxu0 %v8725_v11  ;;  %v8864_v11 = vld [vmem:[#allocation16 + $0x640] ss:$16 sps:$4 sm:$0xff]  }
 0x430   : > { %3170 = vmatpush1.bf16.msra.mxu1 %v8720_v12  ;;  %v8792_v12 = vld [vmem:[#allocation13 + $0x140] ss:$16 sps:$4 sm:$0xff]  }
 0x431   : > { %3171 = vmatprep.subr.bf16.mxu1 %v8728_v13  ;;  %v8797_v13 = vld [vmem:[#allocation13 + $0x164] ss:$16 sps:$4 sm:$0xff]  }
 0x432   : > { %2267 = vmatpush1.bf16.msra.mxu0 %v8723_v14  ;;  %v8795_v14 = vld [vmem:[#allocation13 + $0x160] ss:$16 sps:$4 sm:$0xff]  }
 0x433   : > { %2268 = vmatprep.subr.bf16.mxu0 %v8731_v15  ;;  %v8800_v15 = vld [vmem:[#allocation13 + $0x184] ss:$16 sps:$4 sm:$0xff]  }
 0x434   : > { %3172 = vmatpush1.bf16.msra.mxu1 %v8726_v16  ;;  %v8798_v16 = vld [vmem:[#allocation13 + $0x180] ss:$16 sps:$4 sm:$0xff]  }
 0x435   : > { %3173 = vmatprep.subr.bf16.mxu1 %v8734_v17  ;;  %v8803_v17 = vld [vmem:[#allocation13 + $0x1a4] ss:$16 sps:$4 sm:$0xff]  }
 0x436   : > { %2269 = vmatpush1.bf16.msra.mxu0 %v8729_v18  ;;  %v8801_v18 = vld [vmem:[#allocation13 + $0x1a0] ss:$16 sps:$4 sm:$0xff]  }
 0x437   : > { %2270 = vmatprep.subr.bf16.mxu0 %v8737_v20  ;;  %v8806_v20 = vld [vmem:[#allocation13 + $0x1c4] ss:$16 sps:$4 sm:$0xff]  }
 0x438   : > { %3174 = vmatpush1.bf16.msra.mxu1 %v8732_v21  ;;  %v8804_v21 = vld [vmem:[#allocation13 + $0x1c0] ss:$16 sps:$4 sm:$0xff]  }
 0x439   : > { %3175 = vmatprep.subr.bf16.mxu1 %v8740_v22  ;;  %v8809_v22 = vld [vmem:[#allocation13 + $0x1e4] ss:$16 sps:$4 sm:$0xff]  }
 0x43a   : > { %2271 = vmatpush1.bf16.msra.mxu0 %v8735_v23  ;;  %v8807_v23 = vld [vmem:[#allocation13 + $0x1e0] ss:$16 sps:$4 sm:$0xff]  }
 0x43b   : > { %2272 = vmatprep.subr.bf16.mxu0 %v8743_v24  ;;  %v8812_v24 = vld [vmem:[#allocation13 + $0x404] ss:$16 sps:$4 sm:$0xff]  }
 0x43c   : > { %3176 = vmatpush1.bf16.msra.mxu1 %v8738_v25  ;;  %v8810_v25 = vld [vmem:[#allocation13 + $0x400] ss:$16 sps:$4 sm:$0xff]  }
 0x43d   : > { %3177 = vmatprep.subr.bf16.mxu1 %v8746_v26  ;;  %v8815_v26 = vld [vmem:[#allocation13 + $0x424] ss:$16 sps:$4 sm:$0xff]  }
 0x43e   : > { %2273 = vmatpush1.bf16.msra.mxu0 %v8741_v27  ;;  %v8813_v27 = vld [vmem:[#allocation13 + $0x420] ss:$16 sps:$4 sm:$0xff]  }
 0x43f   : > { %2274 = vmatprep.subr.bf16.mxu0 %v8749_v28  ;;  %v8818_v28 = vld [vmem:[#allocation13 + $0x444] ss:$16 sps:$4 sm:$0xff]  }
 0x440   : > { %3178 = vmatpush1.bf16.msra.mxu1 %v8744_v29  ;;  %v8816_v29 = vld [vmem:[#allocation13 + $0x440] ss:$16 sps:$4 sm:$0xff]  }
 0x441   : > { %3179 = vmatprep.subr.bf16.mxu1 %v8752_v30  ;;  %v8821_v30 = vld [vmem:[#allocation13 + $0x464] ss:$16 sps:$4 sm:$0xff]  }
 0x442   : > { %2275 = vmatpush1.bf16.msra.mxu0 %v8747_v31  ;;  %v8819_v31 = vld [vmem:[#allocation13 + $0x460] ss:$16 sps:$4 sm:$0xff]  }
 0x443   : > { %2276 = vmatprep.subr.bf16.mxu0 %v8755_v33  ;;  %v8824_v33 = vld [vmem:[#allocation13 + $0x484] ss:$16 sps:$4 sm:$0xff]  }
 0x444   : > { %3180 = vmatpush1.bf16.msra.mxu1 %v8750_v35  ;;  %v8822_v35 = vld [vmem:[#allocation13 + $0x480] ss:$16 sps:$4 sm:$0xff]  }
 0x445   : > { %3181 = vmatprep.subr.bf16.mxu1 %v8758_v37  ;;  %v8827_v37 = vld [vmem:[#allocation13 + $0x4a4] ss:$16 sps:$4 sm:$0xff]  }
 0x446   : > { %2277 = vmatpush1.bf16.msra.mxu0 %v8753_v39  ;;  %v8830_v39 = vld [vmem:[#allocation13 + $0x4c4] ss:$16 sps:$4 sm:$0xff]  }
 0x447   : > { %2630 = vmatprep.subr.bf16.mxu0 %v8761_v41  ;;  %v8828_v41 = vld [vmem:[#allocation13 + $0x4c0] ss:$16 sps:$4 sm:$0xff]  }
 0x448   : > { %3182 = vmatpush1.bf16.msra.mxu1 %v8756_v42  ;;  %v8867_v42 = vld [vmem:[#allocation16 + $0x660] ss:$16 sps:$4 sm:$0xff]  }
 0x449   : > { %2279 = vmatmul.mubr.bf16.vlgmr.msra.gmra.mrb[4].mxu0 %v10606_v19  ;;  %3183 = vmatprep.subr.bf16.mxu1 %v8764_v43  ;;  %v8777_v19 = vld [vmem:[#allocation13 + $0xa0] ss:$16 sps:$4 sm:$0xff]   ;;  %v8833_v43 = vld [vmem:[#allocation13 + $0x4e4] ss:$16 sps:$4 sm:$0xff]  }
 0x44a   : > { %2631 = vmatpush1.bf16.msra.mxu0 %v8759_v32  ;;  %2662 = vmatprep.mubr.bf16.mxu0 %v10609_v38  ;;  %v8774_v38 = vld [vmem:[#allocation13 + $0x80] ss:$16 sps:$4 sm:$0xff]  }
 0x44b   : > { %2632 = vmatprep.subr.bf16.mxu0 %v8767_v48  ;;  %v8831_v32 = vld [vmem:[#allocation13 + $0x4e0] ss:$16 sps:$4 sm:$0xff]   ;;  %v8870_v48 = vld [vmem:[#allocation16 + $0x680] ss:$16 sps:$4 sm:$0xff]  }
 0x44c   : > { %3184 = vmatpush1.bf16.msra.mxu1 %v8762_v49  ;;  %v8836_v49 = vld [vmem:[#allocation13 + $0x504] ss:$16 sps:$4 sm:$0xff]  }
 0x44d   : > { %4364 = vmatprep.subr.bf16.mxu1 %v8860_v3  ;;  %v8846_v3 = vld [vmem:[#allocation13 + $0x580] ss:$16 sps:$4 sm:$0xff]  }
 0x44e   : > { %2633 = vmatpush1.bf16.msra.mxu0 %v8765_v51  ;;  %v8834_v51 = vld [vmem:[#allocation13 + $0x500] ss:$16 sps:$4 sm:$0xff]  }
 0x44f   : > { %3186 = vmatmul.mubr.bf16.vlgmr.msra.gmra.mrb[12].mxu1 %v10622_v54  ;;  %2634 = vmatprep.subr.bf16.mxu0 %v8770_v53  ;;  %v8839_v53 = vld [vmem:[#allocation13 + $0x524] ss:$16 sps:$4 sm:$0xff]  }
 0x450   : > { %4365 = vmatpush1.bf16.msra.mxu1 %v8858_v2  ;;  %v8887_v2 = vld [vmem:[#allocation16 + $0x724] ss:$16 sps:$4 sm:$0xff]  }
 0x451   : > { %4366 = vmatprep.subr.bf16.mxu1 %v8863_v5  ;;  %v8851_v5 = vld [vmem:[#allocation13 + $0x5a4] ss:$16 sps:$4 sm:$0xff]  }
 0x452   : > { %2635 = vmatpush1.bf16.msra.mxu0 %v8768_v55  ;;  %v8878_v55 = vld [vmem:[#allocation16 + $0x6c4] ss:$16 sps:$4 sm:$0xff]  }
 0x453   : > { %2636 = vmatprep.subr.bf16.mxu0 %v8773_v56  ;;  %v8837_v56 = vld [vmem:[#allocation13 + $0x520] ss:$16 sps:$4 sm:$0xff]  }
 0x454   : > { %4367 = vmatpush1.bf16.msra.mxu1 %v8861_v7  ;;  %v8849_v7 = vld [vmem:[#allocation13 + $0x5a0] ss:$16 sps:$4 sm:$0xff]  }
 0x455   : > { %4368 = vmatprep.subr.bf16.mxu1 %v8866_v8  ;;  %v8888_v8 = vld [vmem:[#allocation16 + $0x740] ss:$16 sps:$4 sm:$0xff]  }
 0x456   : > { %2637 = vmatpush1.bf16.msra.mxu0 %v8771_v57  ;;  %v8876_v57 = vld [vmem:[#allocation16 + $0x6c0] ss:$16 sps:$4 sm:$0xff]  }
 0x457   : > { %2638 = vmatprep.subr.bf16.mxu0 %v8776_v58  ;;  %v8842_v58 = vld [vmem:[#allocation13 + $0x544] ss:$16 sps:$4 sm:$0xff]  }
 0x458   : > { %4369 = vmatpush1.bf16.msra.mxu1 %v8864_v11  ;;  %v8852_v11 = vld [vmem:[#allocation13 + $0x5c0] ss:$16 sps:$4 sm:$0xff]  }
 0x45a   : > { %2639 = vmatpush1.bf16.msra.mxu0 %v8774_v38  ;;  %v8881_v38 = vld [vmem:[#allocation16 + $0x6e4] ss:$16 sps:$4 sm:$0xff]  }
 0x45b   : > { %2640 = vmatprep.subr.bf16.mxu0 %v8779_v59  ;;  %v8840_v59 = vld [vmem:[#allocation13 + $0x540] ss:$16 sps:$4 sm:$0xff]  }
 0x45e   : > { %2641 = vmatpush1.bf16.msra.mxu0 %v8777_v19  ;;  %v8879_v19 = vld [vmem:[#allocation16 + $0x6e0] ss:$16 sps:$4 sm:$0xff]  }
 0x45f   : > { %2642 = vmatprep.subr.bf16.mxu0 %v8782_v60  ;;  %v8845_v60 = vld [vmem:[#allocation13 + $0x564] ss:$16 sps:$4 sm:$0xff]  }
 0x462   : > { %2643 = vmatpush1.bf16.msra.mxu0 %v8780_v61  ;;  %v8884_v61 = vld [vmem:[#allocation16 + $0x704] ss:$16 sps:$4 sm:$0xff]  }
 0x463   : > { %2644 = vmatprep.subr.bf16.mxu0 %v8785_v62  ;;  %v8843_v62 = vld [vmem:[#allocation13 + $0x560] ss:$16 sps:$4 sm:$0xff]  }
 0x466   : > { %2645 = vmatpush1.bf16.msra.mxu0 %v8783_v63  ;;  %v8882_v63 = vld [vmem:[#allocation16 + $0x700] ss:$16 sps:$4 sm:$0xff]  }
 0x467   : > { %2646 = vmatprep.subr.bf16.mxu0 %v8788_v1  ;;  %v8848_v1 = vld [vmem:[#allocation13 + $0x584] ss:$16 sps:$4 sm:$0xff]  }
 0x46a   : > { %2647 = vmatpush1.bf16.msra.mxu0 %v8786_v4  ;;  %v8885_v4 = vld [vmem:[#allocation16 + $0x720] ss:$16 sps:$4 sm:$0xff]  }
 0x46b   : > { %2648 = vmatprep.subr.bf16.mxu0 %v8791_v6  ;;  %v8890_v6 = vld [vmem:[#allocation16 + $0x744] ss:$16 sps:$4 sm:$0xff]  }
 0x46e   : > { %2649 = vmatpush1.bf16.msra.mxu0 %v8789_v9  ;;  %v8854_v9 = vld [vmem:[#allocation13 + $0x5c4] ss:$16 sps:$4 sm:$0xff]  }
 0x46f   : > { %2650 = vmatprep.subr.bf16.mxu0 %v8794_v10  ;;  %v8893_v10 = vld [vmem:[#allocation16 + $0x764] ss:$16 sps:$4 sm:$0xff]  }
 0x472   : > { %2651 = vmatpush1.bf16.msra.mxu0 %v8792_v12  ;;  %v8857_v12 = vld [vmem:[#allocation13 + $0x5e4] ss:$16 sps:$4 sm:$0xff]  }
 0x473   : > { %2652 = vmatprep.subr.bf16.mxu0 %v8797_v13  ;;  %v8891_v13 = vld [vmem:[#allocation16 + $0x760] ss:$16 sps:$4 sm:$0xff]  }
 0x476   : > { %2653 = vmatpush1.bf16.msra.mxu0 %v8795_v14  ;;  %v9033_v14 = vld [vmem:[#allocation16 + $0x5a0] ss:$16 sps:$4 sm:$0xff]  }
 0x477   : > { %2654 = vmatprep.subr.bf16.mxu0 %v8800_v15  ;;  %v3360_v15 = vld [vmem:[#allocation4 + $0x18] sm:$0x33] }
 0x47a   : > { %2655 = vmatpush1.bf16.msra.mxu0 %v8798_v16 }
 0x47b   : > { %2656 = vmatprep.subr.bf16.mxu0 %v8803_v17  ;;  %v8896_v17 = vld [vmem:[#allocation16 + $0x784] ss:$16 sps:$4 sm:$0xff]  }
 0x47e   : > { %2657 = vmatpush1.bf16.msra.mxu0 %v8801_v18  ;;  %v8855_v18 = vld [vmem:[#allocation13 + $0x5e0] ss:$16 sps:$4 sm:$0xff]  }
 0x47f   : > { %2658 = vmatprep.subr.bf16.mxu0 %v8806_v20  ;;  %v8894_v20 = vld [vmem:[#allocation16 + $0x780] ss:$16 sps:$4 sm:$0xff]  }
 0x482   : > { %2659 = vmatpush1.bf16.msra.mxu0 %v8804_v21  ;;  %v3361_v21 = vsel %vm3356_vm10, 0, %v3360_v15 }
 0x483   : > { %2660 = vmatprep.subr.bf16.mxu0 %v8809_v22  ;;  %3362 = vst [vmem:[#allocation4 + $0x18] sm:$0x33] %v3361_v21  ;;  %v8899_v22 = vld [vmem:[#allocation16 + $0x7a4] ss:$16 sps:$4 sm:$0xff]  }
 0x486   : > { %2661 = vmatpush1.bf16.msra.mxu0 %v8807_v23  ;;  %v8897_v23 = vld [vmem:[#allocation16 + $0x7a0] ss:$16 sps:$4 sm:$0xff]  }
 0x487   : > { %3112 = vmatprep.subr.bf16.mxu0 %v8812_v24  ;;  %v8900_v24 = vld [vmem:[#allocation16 + $0x7c0] ss:$16 sps:$4 sm:$0xff]  }
 0x489   : > { %2663 = vmatmul.mubr.bf16.vlgmr.msra.gmra.mrb[8].mxu0 %v10611_v40  ;;  %v8825_v40 = vld [vmem:[#allocation13 + $0x4a0] ss:$16 sps:$4 sm:$0xff]  }
 0x48a   : > { %3113 = vmatpush1.bf16.msra.mxu0 %v8810_v25  ;;  %3144 = vmatprep.mubr.bf16.mxu0 %v10614_v45  ;;  %v8869_v45 = vld [vmem:[#allocation16 + $0x664] ss:$16 sps:$4 sm:$0xff]  }
 0x48b   : > { %3114 = vmatprep.subr.bf16.mxu0 %v8815_v26  ;;  %4370 = vmatprep.subr.bf16.mxu1 %v8869_v45  ;;  %v8902_v25 = vld [vmem:[#allocation16 + $0x7c4] ss:$16 sps:$4 sm:$0xff]  }
 0x48c   : > { %4371 = vmatpush1.bf16.msra.mxu1 %v8867_v42  ;;  %v8905_v26 = vld [vmem:[#allocation16 + $0x7e4] ss:$16 sps:$4 sm:$0xff]   ;;  %v8959_v42 = vld [vmem:[#allocation16 + $0x420] ss:$16 sps:$4 sm:$0xff]  }
 0x48d   : > { %4372 = vmatprep.subr.bf16.mxu1 %v8872_v46  ;;  %v8955_v45 = vld [vmem:[#allocation16 + $0x404] ss:$16 sps:$4 sm:$0xff]   ;;  %v8967_v46 = vld [vmem:[#allocation16 + $0x440] ss:$16 sps:$4 sm:$0xff]  }
 0x48e   : > { %3115 = vmatpush1.bf16.msra.mxu0 %v8813_v27  ;;  %v8903_v27 = vld [vmem:[#allocation16 + $0x7e0] ss:$16 sps:$4 sm:$0xff]  }
 0x48f   : > { %3116 = vmatprep.subr.bf16.mxu0 %v8818_v28  ;;  %v8909_v28 = vld [vmem:[#allocation16 + $0x60c] ss:$16 sps:$4 sm:$0xff]  }
 0x490   : > { %4373 = vmatpush1.bf16.msra.mxu1 %v8870_v48  ;;  %v8973_v48 = vld [vmem:[#allocation16 + $0x460] ss:$16 sps:$4 sm:$0xff]  }
 0x491   : > { %4374 = vmatprep.subr.bf16.mxu1 %v8875_v50 }
 0x492   : > { %3117 = vmatpush1.bf16.msra.mxu0 %v8816_v29 }
 0x493   : > { %3118 = vmatprep.subr.bf16.mxu0 %v8821_v30 }
 0x494   : > { %4375 = vmatpush1.bf16.msra.mxu1 %v8873_v52 }
 0x495   : > { %4376 = vmatprep.subr.bf16.mxu1 %v8878_v55  ;;  %v3210_v55 = vsub.s32 2, %v10547_v44 }
 0x496   : > { %3119 = vmatpush1.bf16.msra.mxu0 %v8819_v31 }
 0x497   : > { %3120 = vmatprep.subr.bf16.mxu0 %v8824_v33 }
 0x498   : > { %4377 = vmatpush1.bf16.msra.mxu1 %v8876_v57 }
 0x499   : > { %4378 = vmatprep.subr.bf16.mxu1 %v8881_v38  ;;  %v3214_v38 = vsub.s32 3, %v10547_v44 }
 0x49a   : > { %3121 = vmatpush1.bf16.msra.mxu0 %v8822_v35 }
 0x49b   : > { %3122 = vmatprep.subr.bf16.mxu0 %v8827_v37 }
 0x49c   : > { %4379 = vmatpush1.bf16.msra.mxu1 %v8879_v19  ;;  %v8987_v19 = vld [vmem:[#allocation16 + $0x4a4] ss:$16 sps:$4 sm:$0xff]  }
 0x49d   : > { %4380 = vmatprep.subr.bf16.mxu1 %v8884_v61 }
 0x49e   : > { %3123 = vmatpush1.bf16.msra.mxu0 %v8825_v40 }
 0x49f   : > { %3124 = vmatprep.subr.bf16.mxu0 %v8830_v39 }
 0x4a0   : > { %4381 = vmatpush1.bf16.msra.mxu1 %v8882_v63 }
 0x4a1   : > { %4382 = vmatprep.subr.bf16.mxu1 %v8887_v2 }
 0x4a2   : > { %3125 = vmatpush1.bf16.msra.mxu0 %v8828_v41  ;;  %v8961_v41 = vld [vmem:[#allocation16 + $0x424] ss:$16 sps:$4 sm:$0xff]  }
 0x4a3   : > { %3126 = vmatprep.subr.bf16.mxu0 %v8833_v43  ;;  %v8969_v43 = vld [vmem:[#allocation16 + $0x444] ss:$16 sps:$4 sm:$0xff]  }
 0x4a4   : > { %4383 = vmatpush1.bf16.msra.mxu1 %v8885_v4 }
 0x4a5   : > { %4384 = vmatprep.subr.bf16.mxu1 %v8890_v6  ;;  %v8991_v6 = vld [vmem:[#allocation16 + $0x4c0] ss:$16 sps:$4 sm:$0xff]  }
 0x4a6   : > { %3127 = vmatpush1.bf16.msra.mxu0 %v8831_v32  ;;  %v8975_v32 = vld [vmem:[#allocation16 + $0x464] ss:$16 sps:$4 sm:$0xff]  }
 0x4a7   : > { %3128 = vmatprep.subr.bf16.mxu0 %v8836_v49  ;;  %v8981_v49 = vld [vmem:[#allocation16 + $0x484] ss:$16 sps:$4 sm:$0xff]  }
 0x4a8   : > { %4385 = vmatpush1.bf16.msra.mxu1 %v8888_v8 }
 0x4a9   : > { %4386 = vmatprep.subr.bf16.mxu1 %v8893_v10 }
 0x4aa   : > { %3129 = vmatpush1.bf16.msra.mxu0 %v8834_v51  ;;  %v8979_v51 = vld [vmem:[#allocation16 + $0x480] ss:$16 sps:$4 sm:$0xff]  }
 0x4ab   : > { %3130 = vmatprep.subr.bf16.mxu0 %v8839_v53 }
 0x4ac   : > { %4387 = vmatpush1.bf16.msra.mxu1 %v8891_v13  ;;  %v8997_v13 = vld [vmem:[#allocation16 + $0x4e0] ss:$16 sps:$4 sm:$0xff]  }
 0x4ad   : > { %4388 = vmatprep.subr.bf16.mxu1 %v8896_v17  ;;  %v9005_v17 = vld [vmem:[#allocation16 + $0x504] ss:$16 sps:$4 sm:$0xff]  }
 0x4ae   : > { %3131 = vmatpush1.bf16.msra.mxu0 %v8837_v56 }
 0x4af   : > { %3132 = vmatprep.subr.bf16.mxu0 %v8842_v58  ;;  %v10651_v58 = vld [vmem:[#allocation14] sm:$0xf] }
 0x4b0   : > { %4389 = vmatpush1.bf16.msra.mxu1 %v8894_v20  ;;  %v3211_v61 = vrot.slane %v10651_v58, %v3210_v55  ;;  %v3215_v63 = vrot.slane %v10651_v58, %v3214_v38  ;;  %v9003_v20 = vld [vmem:[#allocation16 + $0x500] ss:$16 sps:$4 sm:$0xff]  }
 0x4b1   : > { %4390 = vmatprep.subr.bf16.mxu1 %v8899_v22 }
 0x4b2   : > { %3133 = vmatpush1.bf16.msra.mxu0 %v8840_v59 }
 0x4b3   : > { %3134 = vmatprep.subr.bf16.mxu0 %v8845_v60  ;;  %v8985_v60 = vld [vmem:[#allocation16 + $0x4a0] ss:$16 sps:$4 sm:$0xff]  }
 0x4b4   : > { %4391 = vmatpush1.bf16.msra.mxu1 %v8897_v23  ;;  %v9011_v23 = vld [vmem:[#allocation16 + $0x524] ss:$16 sps:$4 sm:$0xff]  }
 0x4b5   : > { %4392 = vmatprep.subr.bf16.mxu1 %v8902_v25 }
 0x4b6   : > { %3135 = vmatpush1.bf16.msra.mxu0 %v8843_v62 }
 0x4b7   : > { %3136 = vmatprep.subr.bf16.mxu0 %v8848_v1 }
 0x4b8   : > { %4393 = vmatpush1.bf16.msra.mxu1 %v8900_v24 }
 0x4b9   : > { %4394 = vmatprep.subr.bf16.mxu1 %v8905_v26  ;;  %v9009_v26 = vld [vmem:[#allocation16 + $0x520] ss:$16 sps:$4 sm:$0xff]  }
 0x4ba   : > { %3137 = vmatpush1.bf16.msra.mxu0 %v8846_v3  ;;  %v8993_v3 = vld [vmem:[#allocation16 + $0x4c4] ss:$16 sps:$4 sm:$0xff]  }
 0x4bb   : > { %3138 = vmatprep.subr.bf16.mxu0 %v8851_v5 }
 0x4bc   : > { %4395 = vmatpush1.bf16.msra.mxu1 %v8903_v27 }
 0x4bd   : > { %4446 = vmatprep.subr.bf16.mxu1 %v8909_v28 }
 0x4be   : > { %3139 = vmatpush1.bf16.msra.mxu0 %v8849_v7 }
 0x4bf   : > { %3140 = vmatprep.subr.bf16.mxu0 %v8854_v9 }
 0x4c2   : > { %3141 = vmatpush1.bf16.msra.mxu0 %v8852_v11  ;;  %v8999_v11 = vld [vmem:[#allocation16 + $0x4e4] ss:$16 sps:$4 sm:$0xff]  }
 0x4c3   : > { %3142 = vmatprep.subr.bf16.mxu0 %v8857_v12 }
 0x4c6   : > { %3143 = vmatpush1.bf16.msra.mxu0 %v8855_v18 }
 0x4c7   : > { %4323 = vmatprep.subr.bf16.mxu0 %v8955_v45 }
 0x4c9   : > { %3145 = vmatmul.mubr.bf16.vlgmr.msra.gmra.mrb[12].mxu0 %v10622_v54  ;;  %v8953_v54 = vld [vmem:[#allocation16 + $0x400] ss:$16 sps:$4 sm:$0xff]  }
 0x4ca   : > { %4324 = vmatpush1.bf16.msra.mxu0 %v8953_v54  ;;  %v9015_v54 = vld [vmem:[#allocation16 + $0x540] ss:$16 sps:$4 sm:$0xff]  }
 0x4cb   : > { %4325 = vmatprep.subr.bf16.mxu0 %v8961_v41 }
 0x4ce   : > { %4326 = vmatpush1.bf16.msra.mxu0 %v8959_v42 }
 0x4cf   : > { %4327 = vmatprep.subr.bf16.mxu0 %v8969_v43 }
 0x4d2   : > { %4328 = vmatpush1.bf16.msra.mxu0 %v8967_v46 }
 0x4d3   : > { %4329 = vmatprep.subr.bf16.mxu0 %v8975_v32 }
 0x4d6   : > { %4330 = vmatpush1.bf16.msra.mxu0 %v8973_v48 }
 0x4d7   : > { %4331 = vmatprep.subr.bf16.mxu0 %v8981_v49 }
 0x4da   : > { %4332 = vmatpush1.bf16.msra.mxu0 %v8979_v51  ;;  %v9023_v51 = vld [vmem:[#allocation16 + $0x564] ss:$16 sps:$4 sm:$0xff]  }
 0x4db   : > { %4333 = vmatprep.subr.bf16.mxu0 %v8987_v19  ;;  %v3357_v19 = vld [vmem:[#allocation4 + $0x10] sm:$0x33] }
 0x4dc   : > { %v10646_v29 = vpop.f32.mrb[0].mxu0 }
 0x4dd   : > { %v10648_v30 = vpop.f32.mrb[1].mxu0 }
 0x4de   : > { %v2243_v31 = vpop.f32.mrb[2].mxu0  ;;  %4334 = vmatpush1.bf16.msra.mxu0 %v8985_v60  ;;  %v3358_v60 = vsel %vm3356_vm10, 0, %v3357_v19  ;;  %v8934_v19 = vld [vmem:[#allocation16 + $0x70c] ss:$16 sps:$4 sm:$0xff]  }
 0x4df   : > { %v2244_v33 = vpop.f32.mrb[3].mxu0  ;;  %4335 = vmatprep.subr.bf16.mxu0 %v8993_v3  ;;  %3359 = vst [vmem:[#allocation4 + $0x10] sm:$0x33] %v3358_v60  ;;  %v9027_v3 = vld [vmem:[#allocation16 + $0x580] ss:$16 sps:$4 sm:$0xff]  }
 0x4e0   : > { %v8937_v60 = vld [vmem:[#allocation16 + $0x72c] ss:$16 sps:$4 sm:$0xff]  }
 0x4e2   : > { %v2705_v35 = vpop.f32.mrb[8].mxu1  ;;  %4336 = vmatpush1.bf16.msra.mxu0 %v8991_v6 }
 0x4e3   : > { %v2707_v37 = vpop.f32.mrb[9].mxu1  ;;  %4337 = vmatprep.subr.bf16.mxu0 %v8999_v11 }
 0x4e4   : > { %v2709_v40 = vpop.f32.mrb[10].mxu1 }
 0x4e5   : > { %v2710_v39 = vpop.f32.mrb[11].mxu1  ;;  %v9017_v40 = vld [vmem:[#allocation16 + $0x544] ss:$16 sps:$4 sm:$0xff]  }
 0x4e6   : > { %4338 = vmatpush1.bf16.msra.mxu0 %v8997_v13 }
 0x4e7   : > { %4339 = vmatprep.subr.bf16.mxu0 %v9005_v17 }
 0x4ea   : > { %4340 = vmatpush1.bf16.msra.mxu0 %v9003_v20  ;;  %v9041_v20 = vld [vmem:[#allocation16 + $0x5c4] ss:$16 sps:$4 sm:$0xff]  }
 0x4eb   : > { %4341 = vmatprep.subr.bf16.mxu0 %v9011_v23 }
 0x4ee   : > { %4342 = vmatpush1.bf16.msra.mxu0 %v9009_v26  ;;  %v9045_v26 = vld [vmem:[#allocation16 + $0x5e0] ss:$16 sps:$4 sm:$0xff]  }
 0x4ef   : > { %4343 = vmatprep.subr.bf16.mxu0 %v9017_v40  ;;  %v8911_v40 = vld [vmem:[#allocation16 + $0x628] ss:$16 sps:$4 sm:$0xff]  }
 0x4f2   : > { %4344 = vmatpush1.bf16.msra.mxu0 %v9015_v54  ;;  %v8919_v54 = vld [vmem:[#allocation16 + $0x66c] ss:$16 sps:$4 sm:$0xff]  }
 0x4f3   : > { %4345 = vmatprep.subr.bf16.mxu0 %v9023_v51  ;;  %v8920_v51 = vld [vmem:[#allocation16 + $0x688] ss:$16 sps:$4 sm:$0xff]  }
 0x51c   : > { %v2280_v50 = vpop.f32.mrb[4].mxu0 }
 0x51d   : > { %v2706_v52 = vadd.f32 %v2705_v35, %v2280_v50  ;;  %v2282_v53 = vpop.f32.mrb[5].mxu0 }
 0x51e   : > { %v2708_v56 = vadd.f32 %v2707_v37, %v2282_v53  ;;  %v2284_v57 = vpop.f32.mrb[6].mxu0 }
 0x51f   : > { %v2285_v59 = vpop.f32.mrb[7].mxu0 }
 0x522   : > { %v3187_v62 = vpop.f32.mrb[12].mxu1 }
 0x523   : > { %v3196_v1 = vadd.f32 %v3187_v62, %v2706_v52  ;;  %v3189_v2 = vpop.f32.mrb[13].mxu1  ;;  %v9021_v52 = vld [vmem:[#allocation16 + $0x560] ss:$16 sps:$4 sm:$0xff]  }
 0x524   : > { %v3197_v4 = vadd.f32 %v3189_v2, %v2708_v56  ;;  %v3191_v5 = vpop.f32.mrb[14].mxu1  ;;  %4346 = vmatpush1.bf16.msra.mxu0 %v9021_v52  ;;  %v9029_v2 = vld [vmem:[#allocation16 + $0x584] ss:$16 sps:$4 sm:$0xff]   ;;  %v8925_v52 = vld [vmem:[#allocation16 + $0x6ac] ss:$16 sps:$4 sm:$0xff]  }
 0x525   : > { %v3222_v7 = vadd.f32 %v3211_v61, %v3196_v1  ;;  %v3192_v8 = vpop.f32.mrb[15].mxu1  ;;  %4347 = vmatprep.subr.bf16.mxu0 %v9029_v2  ;;  %v8941_v2 = vld [vmem:[#allocation16 + $0x768] ss:$16 sps:$4 sm:$0xff]  }
 0x526   : > { %v3223_v9 = vadd.f32 %v3215_v63, %v3197_v4 }
 0x527   : > { %v3226_v10 = vmax.f32 %v3222_v7, 0.0 }
 0x528   : > { %v3227_v12 = vmax.f32 %v3223_v9, 0.0  ;;  %4348 = vmatpush1.bf16.msra.mxu0 %v9027_v3  ;;  %v9035_v9 = vld [vmem:[#allocation16 + $0x5a4] ss:$16 sps:$4 sm:$0xff]   ;;  %v8946_v3 = vld [vmem:[#allocation16 + $0x78c] ss:$16 sps:$4 sm:$0xff]  }
 0x529   : > { %4349 = vmatprep.subr.bf16.mxu0 %v9035_v9  ;;  %v8950_v9 = vld [vmem:[#allocation16 + $0x7c8] ss:$16 sps:$4 sm:$0xff]  }
 0x52a   : > { %v3233_v15 = vcombine.low %v3226_v10, %v3227_v12 }
 0x52c   : > { %v10661_v18 = vrot.slane %v3233_v15, %v10550_v47  ;;  %4350 = vmatpush1.bf16.msra.mxu0 %v9033_v14  ;;  %v8958_v14 = vld [vmem:[#allocation16 + $0x7ec] ss:$16 sps:$4 sm:$0xff]  }
 0x52d   : > { %4351 = vmatprep.subr.bf16.mxu0 %v9041_v20  ;;  %v8962_v20 = vld [vmem:[#allocation16 + $0x200] ss:$16 sps:$4 sm:$0xff]  }
 0x52e   : > { %v7667_v21 = vcombine.low %v10661_v18, %v10661_v18  ;;  %v7668_v22 = vcombine.high %v10661_v18, %v10661_v18 }
 0x530   : > { %v3264_v24 = vrot.slane %v7667_v21, %v10550_v47  ;;  %v3281_v25 = vrot.slane %v7668_v22, %v10550_v47  ;;  %v9039_v21 = vld [vmem:[#allocation16 + $0x5c0] ss:$16 sps:$4 sm:$0xff]  }
 0x531   : > { %4352 = vmatpush1.bf16.msra.mxu0 %v9039_v21  ;;  %v8972_v21 = vld [vmem:[#allocation16 + $0x224] ss:$16 sps:$4 sm:$0xff]  }
 0x532   : > { %v3266_v27 = vcombine.high %v3264_v24, %v3264_v24  ;;  %v3283_v28 = vcombine.high %v3281_v25, %v3281_v25  ;;  %v3306_v31 = vsel %vm804_vm3, %v3264_v24, -inf  ;;  %v3334_v33 = vsel %vm804_vm3, %v3281_v25, -inf  ;;  %v9047_v25 = vld [vmem:[#allocation16 + $0x5e4] ss:$16 sps:$4 sm:$0xff]  }
 0x533   : > { %v3307_v35 = vrot.slane %v3306_v31, 4  ;;  %v3335_v37 = vrot.slane %v3334_v33, 4  ;;  %4353 = vmatprep.subr.bf16.mxu0 %v9047_v25  ;;  %v8976_v25 = vld [vmem:[#allocation16 + $0x240] ss:$16 sps:$4 sm:$0xff]  }
 0x534   : > { %v3313_v39 = vsel %vm804_vm3, %v3266_v27, -inf  ;;  %v3341_v45 = vsel %vm804_vm3, %v3283_v28, -inf  ;;  %v9054_v27 = vld [vmem:[#allocation16 + $0x40c] ss:$16 sps:$4 sm:$0xff]  }
 0x535   : > { %v3308_v41 = vmax.f32 %v3306_v31, %v3307_v35  ;;  %v3314_v42 = vrot.slane %v3313_v39, 4  ;;  %v3336_v43 = vmax.f32 %v3334_v33, %v3335_v37  ;;  %v3342_v46 = vrot.slane %v3341_v45, 4  ;;  %4354 = vmatpush1.bf16.msra.mxu0 %v9045_v26  ;;  %v8907_v33 = vld [vmem:[#allocation16 + $0x608] ss:$16 sps:$4 sm:$0xff]   ;;  %v8913_v37 = vld [vmem:[#allocation16 + $0x62c] ss:$16 sps:$4 sm:$0xff]  }
 0x536   : > { %4405 = vmatprep.subr.bf16.mxu0 %v9054_v27  ;;  %v8984_v26 = vld [vmem:[#allocation16 + $0x264] ss:$16 sps:$4 sm:$0xff]   ;;  %v3203_v27 = vrot.slane %v10651_v58, %v10579_v34 }
 0x537   : > { %v3309_v32 = vrot.slane %v3308_v41, 2  ;;  %v3315_v48 = vmax.f32 %v3313_v39, %v3314_v42  ;;  %v3337_v49 = vrot.slane %v3336_v43, 2  ;;  %v3343_v50 = vmax.f32 %v3341_v45, %v3342_v46  ;;  %v8916_v39 = vld [vmem:[#allocation16 + $0x64c] ss:$16 sps:$4 sm:$0xff]   ;;  %v8914_v45 = vld [vmem:[#allocation16 + $0x648] ss:$16 sps:$4 sm:$0xff]  }
 0x538   : > { %v8917_v42 = vld [vmem:[#allocation16 + $0x668] ss:$16 sps:$4 sm:$0xff]  }
 0x539   : > { %v3310_v53 = vmax.f32 %v3308_v41, %v3309_v32  ;;  %v3316_v56 = vrot.slane %v3315_v48, 2  ;;  %v3338_v57 = vmax.f32 %v3336_v43, %v3337_v49  ;;  %v3344_v59 = vrot.slane %v3343_v50, 2  ;;  %v8922_v32 = vld [vmem:[#allocation16 + $0x68c] ss:$16 sps:$4 sm:$0xff]  }
 0x53b   : > { %v3311_v61 = vrot.slane %v3310_v53, 1  ;;  %v3317_v62 = vmax.f32 %v3315_v48, %v3316_v56  ;;  %v3339_v63 = vrot.slane %v3338_v57, 1  ;;  %v3345_v1 = vmax.f32 %v3343_v50, %v3344_v59  ;;  %v8928_v56 = vld [vmem:[#allocation16 + $0x6cc] ss:$16 sps:$4 sm:$0xff]   ;;  %v8929_v59 = vld [vmem:[#allocation16 + $0x6e8] ss:$16 sps:$4 sm:$0xff]  }
 0x53d   : > { %v3318_v4 = vrot.slane %v3317_v62, 1  ;;  %v3346_v5 = vrot.slane %v3345_v1, 1  ;;  %v3312_v6 = vmax.f32 %v3310_v53, %v3311_v61  ;;  %v3340_v8 = vmax.f32 %v3338_v57, %v3339_v63  ;;  %v8923_v53 = vld [vmem:[#allocation16 + $0x6a8] ss:$16 sps:$4 sm:$0xff]  }
 0x53e   : > { %v8926_v57 = vld [vmem:[#allocation16 + $0x6c8] ss:$16 sps:$4 sm:$0xff]  }
 0x53f   : > { %v3319_v7 = vmax.f32 %v3317_v62, %v3318_v4  ;;  %v3347_v16 = vmax.f32 %v3345_v1, %v3346_v5  ;;  %v8935_v61 = vld [vmem:[#allocation16 + $0x728] ss:$16 sps:$4 sm:$0xff]   ;;  %v8940_v62 = vld [vmem:[#allocation16 + $0x74c] ss:$16 sps:$4 sm:$0xff]  }
 0x540   : > { %v8938_v63 = vld [vmem:[#allocation16 + $0x748] ss:$16 sps:$4 sm:$0xff]   ;;  %v8943_v1 = vld [vmem:[#allocation16 + $0x76c] ss:$16 sps:$4 sm:$0xff]  }
 0x541   : > { %v8170_v10 = vpack.c.bf16 %v3319_v7, %v3312_v6  ;;  %v8172_v11 = vpack.c.bf16 %v3347_v16, %v3340_v8  ;;  %v8944_v4 = vld [vmem:[#allocation16 + $0x788] ss:$16 sps:$4 sm:$0xff]   ;;  %v8949_v5 = vld [vmem:[#allocation16 + $0x7ac] ss:$16 sps:$4 sm:$0xff]  }
 0x542   : > { %v10699_v6 = vld [vmem:[#allocation4 + $0x8] sm:$0x88]  ;;  %v8952_v8 = vld [vmem:[#allocation16 + $0x7cc] ss:$16 sps:$4 sm:$0xff]  }
 0x543   : > { %v3393_v12 = vunpack.c.l.b16 %v8170_v10  ;;  %v3394_v13 = vunpack.c.h.b16 %v8170_v10  ;;  %v3397_v15 = vunpack.c.l.b16 %v8172_v11  ;;  %v3398_v17 = vunpack.c.h.b16 %v8172_v11  ;;  %v8947_v7 = vld [vmem:[#allocation16 + $0x7a8] ss:$16 sps:$4 sm:$0xff]  }
 0x545   : > { %v3401_v22 = vsel %vm903_vm4, %v3397_v15, %v3393_v12  ;;  %v3402_v23 = vsel %vm903_vm4, %v3398_v17, %v3394_v13  ;;  %v8956_v12 = vld [vmem:[#allocation16 + $0x7e8] ss:$16 sps:$4 sm:$0xff]   ;;  %v8964_v13 = vld [vmem:[#allocation16 + $0x204] ss:$16 sps:$4 sm:$0xff]  }
 0x546   : > { %v3404_v24 = vpack.c.b16 %v3402_v23, %v3401_v22  ;;  %v8970_v23 = vld [vmem:[#allocation16 + $0x220] ss:$16 sps:$4 sm:$0xff]  }
 0x548   : > { %3408 = vst [vmem:[#allocation4 + $0x18] sm:$0x11] %v3404_v24  ;;  %v8978_v24 = vld [vmem:[#allocation16 + $0x244] ss:$16 sps:$4 sm:$0xff]  }
 0x54f   : > { %v10680_v28 = vld [vmem:[#allocation4 + $0x18] sm:$0x33] }
 0x550   : > { %v10684_v31 = vcombine.high %v10680_v28, %v10680_v28  ;;  %v10688_v35 = vcombine.low %v10680_v28, %v10680_v28  ;;  %v7808_v16 = vcombine.high %v10699_v6, %v10680_v28 }
 0x552   : > { %4396 = vmatprep.mubr.bf16.mxu1 %v10684_v31  ;;  %v4522_v10 = vshrl.u32 %v7808_v16, 16  ;;  %v4525_v11 = vshll.u32 %v7808_v16, 16 }
 0x553   : > { %4397 = vmatmul.mubr.bf16.vlgmr.msra.gmra.mrb[16].mxu1 %v10688_v35 }
 0x554   : > { %4447 = vmatpush1.bf16.msra.mxu1 %v8907_v33  ;;  %4478 = vmatprep.mubr.bf16.mxu1 %v10684_v31  ;;  %v4524_v15 = vrot.slane %v4522_v10, 3  ;;  %v4527_v17 = vrot.slane %v4525_v11, 4 }
 0x555   : > { %4448 = vmatprep.subr.bf16.mxu1 %v8913_v37  ;;  %v3207_v37 = vrot.slane %v10651_v58, %v10582_v36  ;;  %v8994_v58 = vld [vmem:[#allocation16 + $0x2a0] ss:$16 sps:$4 sm:$0xff]  }
 0x556   : > { %v10703_v22 = vor.u32 %v4527_v17, %v4524_v15  ;;  %v9020_v15 = vld [vmem:[#allocation16 + $0x324] ss:$16 sps:$4 sm:$0xff]  }
 0x558   : > { %4449 = vmatpush1.bf16.msra.mxu1 %v8911_v40  ;;  %v8982_v40 = vld [vmem:[#allocation16 + $0x260] ss:$16 sps:$4 sm:$0xff]  }
 0x559   : > { %4450 = vmatprep.subr.bf16.mxu1 %v8916_v39 }
 0x55c   : > { %4451 = vmatpush1.bf16.msra.mxu1 %v8914_v45  ;;  %v2664_v41 = vpop.f32.mrb[8].mxu0 }
 0x55d   : > { %v10694_v43 = vadd.f32 %v2664_v41, %v10646_v29  ;;  %v2666_v46 = vpop.f32.mrb[9].mxu0  ;;  %4452 = vmatprep.subr.bf16.mxu1 %v8919_v54  ;;  %v8931_v29 = vld [vmem:[#allocation16 + $0x6ec] ss:$16 sps:$4 sm:$0xff]   ;;  %v8990_v54 = vld [vmem:[#allocation16 + $0x284] ss:$16 sps:$4 sm:$0xff]  }
 0x55e   : > { %v10697_v48 = vadd.f32 %v2666_v46, %v10648_v30  ;;  %v2668_v49 = vpop.f32.mrb[10].mxu0  ;;  %v8932_v30 = vld [vmem:[#allocation16 + $0x708] ss:$16 sps:$4 sm:$0xff]  }
 0x55f   : > { %v2669_v50 = vpop.f32.mrb[11].mxu0 }
 0x560   : > { %4453 = vmatpush1.bf16.msra.mxu1 %v8917_v42  ;;  %v8988_v50 = vld [vmem:[#allocation16 + $0x280] ss:$16 sps:$4 sm:$0xff]  }
 0x561   : > { %4454 = vmatprep.subr.bf16.mxu1 %v8922_v32 }
 0x564   : > { %4455 = vmatpush1.bf16.msra.mxu1 %v8920_v51 }
 0x565   : > { %4456 = vmatprep.subr.bf16.mxu1 %v8925_v52  ;;  %v8996_v52 = vld [vmem:[#allocation16 + $0x2a4] ss:$16 sps:$4 sm:$0xff]  }
 0x568   : > { %4457 = vmatpush1.bf16.msra.mxu1 %v8923_v53 }
 0x569   : > { %4458 = vmatprep.subr.bf16.mxu1 %v8928_v56 }
 0x56c   : > { %4459 = vmatpush1.bf16.msra.mxu1 %v8926_v57 }
 0x56d   : > { %4460 = vmatprep.subr.bf16.mxu1 %v8931_v29 }
 0x570   : > { %4461 = vmatpush1.bf16.msra.mxu1 %v8929_v59  ;;  %v9000_v59 = vld [vmem:[#allocation16 + $0x2c0] ss:$16 sps:$4 sm:$0xff]  }
 0x571   : > { %4462 = vmatprep.subr.bf16.mxu1 %v8934_v19  ;;  %v9008_v19 = vld [vmem:[#allocation16 + $0x2e4] ss:$16 sps:$4 sm:$0xff]  }
 0x574   : > { %4463 = vmatpush1.bf16.msra.mxu1 %v8932_v30 }
 0x575   : > { %4464 = vmatprep.subr.bf16.mxu1 %v8937_v60 }
 0x578   : > { %4465 = vmatpush1.bf16.msra.mxu1 %v8935_v61 }
 0x579   : > { %4466 = vmatprep.subr.bf16.mxu1 %v8940_v62 }
 0x57c   : > { %4467 = vmatpush1.bf16.msra.mxu1 %v8938_v63 }
 0x57d   : > { %4468 = vmatprep.subr.bf16.mxu1 %v8943_v1 }
 0x580   : > { %4469 = vmatpush1.bf16.msra.mxu1 %v8941_v2  ;;  %v9006_v2 = vld [vmem:[#allocation16 + $0x2e0] ss:$16 sps:$4 sm:$0xff]  }
 0x581   : > { %4470 = vmatprep.subr.bf16.mxu1 %v8946_v3 }
 0x584   : > { %4471 = vmatpush1.bf16.msra.mxu1 %v8944_v4 }
 0x585   : > { %4472 = vmatprep.subr.bf16.mxu1 %v8949_v5 }
 0x588   : > { %4473 = vmatpush1.bf16.msra.mxu1 %v8947_v7 }
 0x589   : > { %4474 = vmatprep.subr.bf16.mxu1 %v8952_v8 }
 0x58c   : > { %4475 = vmatpush1.bf16.msra.mxu1 %v8950_v9 }
 0x58d   : > { %4476 = vmatprep.subr.bf16.mxu1 %v8958_v14  ;;  %v9012_v14 = vld [vmem:[#allocation16 + $0x300] ss:$16 sps:$4 sm:$0xff]  }
 0x590   : > { %4477 = vmatpush1.bf16.msra.mxu1 %v8956_v12 }
 0x591   : > { %5214 = vmatprep.subr.bf16.mxu1 %v8964_v13 }
 0x593   : > { %4479 = vmatmul.mubr.bf16.vlgmr.msra.gmra.mrb[20].mxu1 %v10688_v35 }
 0x594   : > { %5215 = vmatpush1.bf16.msra.mxu1 %v8962_v20  ;;  %5246 = vmatprep.mubr.bf16.mxu1 %v10703_v22 }
 0x595   : > { %5216 = vmatprep.subr.bf16.mxu1 %v8972_v21 }
 0x598   : > { %5217 = vmatpush1.bf16.msra.mxu1 %v8970_v23 }
 0x599   : > { %5218 = vmatprep.subr.bf16.mxu1 %v8978_v24  ;;  %v9018_v24 = vld [vmem:[#allocation16 + $0x320] ss:$16 sps:$4 sm:$0xff]  }
 0x59c   : > { %5219 = vmatpush1.bf16.msra.mxu1 %v8976_v25  ;;  %v3146_v33 = vpop.f32.mrb[12].mxu0 }
 0x59d   : > { %v3194_v39 = vadd.f32 %v3146_v33, %v10694_v43  ;;  %v3148_v45 = vpop.f32.mrb[13].mxu0  ;;  %5220 = vmatprep.subr.bf16.mxu1 %v8984_v26  ;;  %v9002_v43 = vld [vmem:[#allocation16 + $0x2c4] ss:$16 sps:$4 sm:$0xff]  }
 0x59e   : > { %v3195_v41 = vadd.f32 %v3148_v45, %v10697_v48  ;;  %v3150_v42 = vpop.f32.mrb[14].mxu0  ;;  %v9024_v45 = vld [vmem:[#allocation16 + $0x340] ss:$16 sps:$4 sm:$0xff]  }
 0x59f   : > { %v3220_v46 = vadd.f32 %v3203_v27, %v3194_v39  ;;  %v3151_v32 = vpop.f32.mrb[15].mxu0 }
 0x5a0   : > { %v3221_v49 = vadd.f32 %v3207_v37, %v3195_v41  ;;  %5221 = vmatpush1.bf16.msra.mxu1 %v8982_v40  ;;  %v9026_v37 = vld [vmem:[#allocation16 + $0x344] ss:$16 sps:$4 sm:$0xff]  }
 0x5a1   : > { %v3224_v51 = vmax.f32 %v3220_v46, 0.0  ;;  %5222 = vmatprep.subr.bf16.mxu1 %v8990_v54  ;;  %v9032_v32 = vld [vmem:[#allocation16 + $0x364] ss:$16 sps:$4 sm:$0xff]  }
 0x5a2   : > { %v3225_v53 = vmax.f32 %v3221_v49, 0.0 }
 0x5a4   : > { %v3232_v56 = vcombine.low %v3224_v51, %v3225_v53  ;;  %5223 = vmatpush1.bf16.msra.mxu1 %v8988_v50  ;;  %v9030_v51 = vld [vmem:[#allocation16 + $0x360] ss:$16 sps:$4 sm:$0xff]  }
 0x5a5   : > { %5224 = vmatprep.subr.bf16.mxu1 %v8996_v52 }
 0x5a6   : > { %v3240_v57 = vrot.slane %v3232_v56, %v10550_v47 }
 0x5a8   : > { %v3248_v29 = vcombine.low %v3240_v57, %v10661_v18  ;;  %v3249_v48 = vcombine.high %v3240_v57, %v10661_v18  ;;  %5225 = vmatpush1.bf16.msra.mxu1 %v8994_v58  ;;  %v9014_v18 = vld [vmem:[#allocation16 + $0x304] ss:$16 sps:$4 sm:$0xff]  }
 0x5a9   : > { %5226 = vmatprep.subr.bf16.mxu1 %v9002_v43  ;;  %v9038_v43 = vld [vmem:[#allocation16 + $0x384] ss:$16 sps:$4 sm:$0xff]  }
 0x5aa   : > { %v3257_v30 = vrot.slane %v3248_v29, %v10550_v47  ;;  %v3274_v60 = vrot.slane %v3249_v48, %v10550_v47 }
 0x5ac   : > { %v3265_v61 = vcombine.high %v3257_v30, %v3257_v30  ;;  %v3282_v62 = vcombine.high %v3274_v60, %v3274_v60  ;;  %v3292_v63 = vsel %vm804_vm3, %v3257_v30, -inf  ;;  %v3320_v1 = vsel %vm804_vm3, %v3274_v60, -inf  ;;  %5227 = vmatpush1.bf16.msra.mxu1 %v9000_v59  ;;  %v9036_v59 = vld [vmem:[#allocation16 + $0x380] ss:$16 sps:$4 sm:$0xff]  }
 0x5ad   : > { %v3293_v3 = vrot.slane %v3292_v63, 4  ;;  %v3321_v4 = vrot.slane %v3320_v1, 4  ;;  %5228 = vmatprep.subr.bf16.mxu1 %v9008_v19  ;;  %v9044_v19 = vld [vmem:[#allocation16 + $0x3a4] ss:$16 sps:$4 sm:$0xff]   ;;  %v9042_v30 = vld [vmem:[#allocation16 + $0x3a0] ss:$16 sps:$4 sm:$0xff]   ;;  %v7807_v60 = vcombine.low %v10699_v6, %v10680_v28 }
 0x5ae   : > { %v3299_v5 = vsel %vm804_vm3, %v3265_v61, -inf  ;;  %v3327_v7 = vsel %vm804_vm3, %v3282_v62, -inf  ;;  %v9050_v61 = vld [vmem:[#allocation16 + $0x3c4] ss:$16 sps:$4 sm:$0xff]   ;;  %v9048_v62 = vld [vmem:[#allocation16 + $0x3c0] ss:$16 sps:$4 sm:$0xff]  }
 0x5af   : > { %v3294_v8 = vmax.f32 %v3292_v63, %v3293_v3  ;;  %v3300_v16 = vrot.slane %v3299_v5, 4  ;;  %v3322_v9 = vmax.f32 %v3320_v1, %v3321_v4  ;;  %v3328_v47 = vrot.slane %v3327_v7, 4  ;;  %v9058_v1 = vld [vmem:[#allocation16 + $0x3e4] ss:$16 sps:$4 sm:$0xff]   ;;  %v9061_v28 = vld [vmem:[#allocation16 + $0x42c] ss:$16 sps:$4 sm:$0xff]  }
 0x5b0   : > { %5229 = vmatpush1.bf16.msra.mxu1 %v9006_v2  ;;  %v4514_v2 = vshrl.u32 %v7807_v60, 16  ;;  %v4517_v3 = vshll.u32 %v7807_v60, 16  ;;  %v9056_v6 = vld [vmem:[#allocation16 + $0x3e0] ss:$16 sps:$4 sm:$0xff]   ;;  %v9119_v60 = vld [vmem:[#allocation16 + $0x568] ss:$16 sps:$4 sm:$0xff]  }
 0x5b1   : > { %v3295_v10 = vrot.slane %v3294_v8, 2  ;;  %v3301_v11 = vmax.f32 %v3299_v5, %v3300_v16  ;;  %v3323_v12 = vrot.slane %v3322_v9, 2  ;;  %v3329_v13 = vmax.f32 %v3327_v7, %v3328_v47  ;;  %5230 = vmatprep.subr.bf16.mxu1 %v9014_v18  ;;  %v9052_v18 = vld [vmem:[#allocation16 + $0x408] ss:$16 sps:$4 sm:$0xff]   ;;  %v9064_v16 = vld [vmem:[#allocation16 + $0x20c] ss:$16 sps:$4 sm:$0xff]  }
 0x5b2   : > { %v4516_v7 = vrot.slane %v4514_v2, 3  ;;  %v9067_v47 = vld [vmem:[#allocation16 + $0x44c] ss:$16 sps:$4 sm:$0xff]   ;;  %v9125_v2 = vld [vmem:[#allocation16 + $0x588] ss:$16 sps:$4 sm:$0xff]  }
 0x5b3   : > { %v3296_v17 = vmax.f32 %v3294_v8, %v3295_v10  ;;  %v3302_v20 = vrot.slane %v3301_v11, 2  ;;  %v3324_v21 = vmax.f32 %v3322_v9, %v3323_v12  ;;  %v3330_v23 = vrot.slane %v3329_v13, 2  ;;  %v9059_v9 = vld [vmem:[#allocation16 + $0x428] ss:$16 sps:$4 sm:$0xff]  }
 0x5b4   : > { %5231 = vmatpush1.bf16.msra.mxu1 %v9012_v14  ;;  %v4519_v8 = vrot.slane %v4517_v3, 4  ;;  %v9062_v14 = vld [vmem:[#allocation16 + $0x208] ss:$16 sps:$4 sm:$0xff]   ;;  %v9133_v3 = vld [vmem:[#allocation16 + $0x5ac] ss:$16 sps:$4 sm:$0xff]  }
 0x5b5   : > { %v3297_v25 = vrot.slane %v3296_v17, 1  ;;  %v3303_v26 = vmax.f32 %v3301_v11, %v3302_v20  ;;  %v3325_v27 = vrot.slane %v3324_v21, 1  ;;  %v3331_v33 = vmax.f32 %v3329_v13, %v3330_v23  ;;  %5232 = vmatprep.subr.bf16.mxu1 %v9020_v15  ;;  %v9070_v11 = vld [vmem:[#allocation16 + $0x22c] ss:$16 sps:$4 sm:$0xff]   ;;  %v9065_v12 = vld [vmem:[#allocation16 + $0x448] ss:$16 sps:$4 sm:$0xff]  }
 0x5b6   : > { %v10739_v10 = vor.u32 %v4519_v8, %v4516_v7  ;;  %v9073_v13 = vld [vmem:[#allocation16 + $0x46c] ss:$16 sps:$4 sm:$0xff]   ;;  %v9068_v15 = vld [vmem:[#allocation16 + $0x228] ss:$16 sps:$4 sm:$0xff]  }
 0x5b7   : > { %v3304_v40 = vrot.slane %v3303_v26, 1  ;;  %v3332_v39 = vrot.slane %v3331_v33, 1  ;;  %v3298_v54 = vmax.f32 %v3296_v17, %v3297_v25  ;;  %v3326_v42 = vmax.f32 %v3324_v21, %v3325_v27  ;;  %v9076_v17 = vld [vmem:[#allocation16 + $0x24c] ss:$16 sps:$4 sm:$0xff]   ;;  %v9071_v20 = vld [vmem:[#allocation16 + $0x468] ss:$16 sps:$4 sm:$0xff]  }
 0x5b8   : > { %5233 = vmatpush1.bf16.msra.mxu1 %v9018_v24  ;;  %v9079_v21 = vld [vmem:[#allocation16 + $0x48c] ss:$16 sps:$4 sm:$0xff]   ;;  %v9074_v23 = vld [vmem:[#allocation16 + $0x248] ss:$16 sps:$4 sm:$0xff]  }
 0x5b9   : > { %v3305_v41 = vmax.f32 %v3303_v26, %v3304_v40  ;;  %v3333_v46 = vmax.f32 %v3331_v33, %v3332_v39  ;;  %5234 = vmatprep.subr.bf16.mxu1 %v9026_v37  ;;  %v9082_v24 = vld [vmem:[#allocation16 + $0x26c] ss:$16 sps:$4 sm:$0xff]   ;;  %v9077_v25 = vld [vmem:[#allocation16 + $0x488] ss:$16 sps:$4 sm:$0xff]  }
 0x5ba   : > { %v9085_v26 = vld [vmem:[#allocation16 + $0x4ac] ss:$16 sps:$4 sm:$0xff]   ;;  %v9080_v27 = vld [vmem:[#allocation16 + $0x268] ss:$16 sps:$4 sm:$0xff]  }
 0x5bb   : > { %v8169_v49 = vpack.c.bf16 %v3305_v41, %v3298_v54  ;;  %v8171_v50 = vpack.c.bf16 %v3333_v46, %v3326_v42  ;;  %v9088_v33 = vld [vmem:[#allocation16 + $0x28c] ss:$16 sps:$4 sm:$0xff]   ;;  %v9086_v40 = vld [vmem:[#allocation16 + $0x288] ss:$16 sps:$4 sm:$0xff]  }
 0x5bc   : > { %5235 = vmatpush1.bf16.msra.mxu1 %v9024_v45  ;;  %v9091_v37 = vld [vmem:[#allocation16 + $0x4cc] ss:$16 sps:$4 sm:$0xff]   ;;  %v9089_v45 = vld [vmem:[#allocation16 + $0x4c8] ss:$16 sps:$4 sm:$0xff]  }
 0x5bd   : > { %v3391_v52 = vunpack.c.l.b16 %v8169_v49  ;;  %v3392_v53 = vunpack.c.h.b16 %v8169_v49  ;;  %v3395_v56 = vunpack.c.l.b16 %v8171_v50  ;;  %v3396_v58 = vunpack.c.h.b16 %v8171_v50  ;;  %5236 = vmatprep.subr.bf16.mxu1 %v9032_v32  ;;  %v9094_v39 = vld [vmem:[#allocation16 + $0x2ac] ss:$16 sps:$4 sm:$0xff]   ;;  %v9092_v41 = vld [vmem:[#allocation16 + $0x2a8] ss:$16 sps:$4 sm:$0xff]  }
 0x5be   : > { %v9097_v54 = vld [vmem:[#allocation16 + $0x4ec] ss:$16 sps:$4 sm:$0xff]   ;;  %v9095_v46 = vld [vmem:[#allocation16 + $0x4e8] ss:$16 sps:$4 sm:$0xff]  }
 0x5bf   : > { %v3399_v57 = vsel %vm903_vm4, %v3395_v56, %v3391_v52  ;;  %v3400_v29 = vsel %vm903_vm4, %v3396_v58, %v3392_v53  ;;  %v9100_v42 = vld [vmem:[#allocation16 + $0x2cc] ss:$16 sps:$4 sm:$0xff]   ;;  %v9098_v49 = vld [vmem:[#allocation16 + $0x2c8] ss:$16 sps:$4 sm:$0xff]  }
 0x5c0   : > { %v3403_v48 = vpack.c.b16 %v3400_v29, %v3399_v57  ;;  %5237 = vmatpush1.bf16.msra.mxu1 %v9030_v51  ;;  %v9103_v32 = vld [vmem:[#allocation16 + $0x50c] ss:$16 sps:$4 sm:$0xff]   ;;  %v9101_v51 = vld [vmem:[#allocation16 + $0x508] ss:$16 sps:$4 sm:$0xff]  }
 0x5c1   : > { %5238 = vmatprep.subr.bf16.mxu1 %v9038_v43  ;;  %v9106_v50 = vld [vmem:[#allocation16 + $0x2ec] ss:$16 sps:$4 sm:$0xff]   ;;  %v9104_v53 = vld [vmem:[#allocation16 + $0x2e8] ss:$16 sps:$4 sm:$0xff]  }
 0x5c2   : > { %3407 = vst [vmem:[#allocation4 + $0x10] sm:$0x11] %v3403_v48  ;;  %v9109_v52 = vld [vmem:[#allocation16 + $0x52c] ss:$16 sps:$4 sm:$0xff]   ;;  %v9107_v58 = vld [vmem:[#allocation16 + $0x528] ss:$16 sps:$4 sm:$0xff]  }
 0x5c3   : > { %v9112_v56 = vld [vmem:[#allocation16 + $0x30c] ss:$16 sps:$4 sm:$0xff]   ;;  %v9110_v57 = vld [vmem:[#allocation16 + $0x308] ss:$16 sps:$4 sm:$0xff]  }
 0x5c4   : > { %5239 = vmatpush1.bf16.msra.mxu1 %v9036_v59  ;;  %v9115_v43 = vld [vmem:[#allocation16 + $0x54c] ss:$16 sps:$4 sm:$0xff]   ;;  %v9113_v48 = vld [vmem:[#allocation16 + $0x548] ss:$16 sps:$4 sm:$0xff]  }
 0x5c5   : > { %5240 = vmatprep.subr.bf16.mxu1 %v9044_v19  ;;  %v9118_v29 = vld [vmem:[#allocation16 + $0x32c] ss:$16 sps:$4 sm:$0xff]   ;;  %v9116_v19 = vld [vmem:[#allocation16 + $0x328] ss:$16 sps:$4 sm:$0xff]  }
 0x5c6   : > { %v9121_v59 = vld [vmem:[#allocation16 + $0x56c] ss:$16 sps:$4 sm:$0xff]   ;;  %v9131_v7 = vld [vmem:[#allocation16 + $0x5a8] ss:$16 sps:$4 sm:$0xff]  }
 0x5c7   : > { %v9139_v8 = vld [vmem:[#allocation16 + $0x5cc] ss:$16 sps:$4 sm:$0xff]  }
 0x5c8   : > { %5241 = vmatpush1.bf16.msra.mxu1 %v9042_v30  ;;  %v9124_v30 = vld [vmem:[#allocation16 + $0x34c] ss:$16 sps:$4 sm:$0xff]  }
 0x5c9   : > { %5242 = vmatprep.subr.bf16.mxu1 %v9050_v61  ;;  %v10726_v63 = vld [vmem:[#allocation4 + $0x10] sm:$0x33] }
 0x5ca   : > { %v10730_v4 = vcombine.high %v10726_v63, %v10726_v63  ;;  %v10734_v5 = vcombine.low %v10726_v63, %v10726_v63  ;;  %v9127_v61 = vld [vmem:[#allocation16 + $0x58c] ss:$16 sps:$4 sm:$0xff]  }
 0x5cc   : > { %5243 = vmatpush1.bf16.msra.mxu1 %v9048_v62  ;;  %4355 = vmatprep.mubr.bf16.mxu0 %v10730_v4  ;;  %v9122_v62 = vld [vmem:[#allocation16 + $0x348] ss:$16 sps:$4 sm:$0xff]  }
 0x5cd   : > { %4356 = vmatmul.mubr.bf16.vlgmr.msra.gmra.mrb[16].mxu0 %v10734_v5  ;;  %5244 = vmatprep.subr.bf16.mxu1 %v9058_v1  ;;  %v9130_v1 = vld [vmem:[#allocation16 + $0x36c] ss:$16 sps:$4 sm:$0xff]  }
 0x5ce   : > { %4406 = vmatpush1.bf16.msra.mxu0 %v9052_v18  ;;  %4437 = vmatprep.mubr.bf16.mxu0 %v10730_v4  ;;  %v9128_v18 = vld [vmem:[#allocation16 + $0x368] ss:$16 sps:$4 sm:$0xff]  }
 0x5cf   : > { %4407 = vmatprep.subr.bf16.mxu0 %v9061_v28  ;;  %v9136_v28 = vld [vmem:[#allocation16 + $0x38c] ss:$16 sps:$4 sm:$0xff]  }
 0x5d0   : > { %5245 = vmatpush1.bf16.msra.mxu1 %v9056_v6  ;;  %v10743_v6 = vld [vmem:[#allocation4] sm:$0x88] }
 0x5d1   : > { %5296 = vmatprep.subr.bf16.mxu1 %v9064_v16  ;;  %v9134_v16 = vld [vmem:[#allocation16 + $0x388] ss:$16 sps:$4 sm:$0xff]  }
 0x5d2   : > { %4408 = vmatpush1.bf16.msra.mxu0 %v9059_v9  ;;  %v7806_v9 = vcombine.high %v10743_v6, %v10726_v63 }
 0x5d3   : > { %5247 = vmatmul.mubr.bf16.vlgmr.msra.gmra.mrb[24].mxu1 %v10739_v10  ;;  %4409 = vmatprep.subr.bf16.mxu0 %v9067_v47  ;;  %v9142_v47 = vld [vmem:[#allocation16 + $0x3ac] ss:$16 sps:$4 sm:$0xff]  }
 0x5d4   : > { %5297 = vmatpush1.bf16.msra.mxu1 %v9062_v14  ;;  %5328 = vmatprep.mubr.bf16.mxu1 %v10703_v22  ;;  %v9083_v22 = vld [vmem:[#allocation16 + $0x4a8] ss:$16 sps:$4 sm:$0xff]  }
 0x5d5   : > { %5298 = vmatprep.subr.bf16.mxu1 %v9070_v11  ;;  %v9137_v14 = vld [vmem:[#allocation16 + $0x5c8] ss:$16 sps:$4 sm:$0xff]   ;;  %v9145_v11 = vld [vmem:[#allocation16 + $0x5ec] ss:$16 sps:$4 sm:$0xff]  }
 0x5d6   : > { %4410 = vmatpush1.bf16.msra.mxu0 %v9065_v12  ;;  %v9140_v12 = vld [vmem:[#allocation16 + $0x3a8] ss:$16 sps:$4 sm:$0xff]  }
 0x5d7   : > { %4411 = vmatprep.subr.bf16.mxu0 %v9073_v13  ;;  %v4506_v13 = vshrl.u32 %v7806_v9, 16 }
 0x5d8   : > { %5299 = vmatpush1.bf16.msra.mxu1 %v9068_v15  ;;  %v4509_v15 = vshll.u32 %v7806_v9, 16 }
 0x5d9   : > { %5300 = vmatprep.subr.bf16.mxu1 %v9076_v17  ;;  %v9148_v17 = vld [vmem:[#allocation16 + $0x3cc] ss:$16 sps:$4 sm:$0xff]  }
 0x5da   : > { %4412 = vmatpush1.bf16.msra.mxu0 %v9071_v20  ;;  %v9143_v20 = vld [vmem:[#allocation16 + $0x5e8] ss:$16 sps:$4 sm:$0xff]  }
 0x5db   : > { %4413 = vmatprep.subr.bf16.mxu0 %v9079_v21  ;;  %v9151_v21 = vld [vmem:[#allocation16 + $0x4] ss:$16 sps:$4 sm:$0xff]  }
 0x5dc   : > { %5301 = vmatpush1.bf16.msra.mxu1 %v9074_v23  ;;  %v9146_v23 = vld [vmem:[#allocation16 + $0x3c8] ss:$16 sps:$4 sm:$0xff]  }
 0x5dd   : > { %5302 = vmatprep.subr.bf16.mxu1 %v9082_v24  ;;  %v4508_v24 = vrot.slane %v4506_v13, 3  ;;  %v9210_v13 = vld [vmem:[#allocation16 + $0xb04] ss:$16 sps:$4 sm:$0xff]  }
 0x5de   : > { %4414 = vmatpush1.bf16.msra.mxu0 %v9077_v25  ;;  %v4511_v25 = vrot.slane %v4509_v15, 4  ;;  %v9205_v15 = vld [vmem:[#allocation16 + $0x120] ss:$16 sps:$4 sm:$0xff]  }
 0x5df   : > { %4415 = vmatprep.subr.bf16.mxu0 %v9085_v26  ;;  %v9156_v26 = vld [vmem:[#allocation16 + $0x3ec] ss:$16 sps:$4 sm:$0xff]  }
 0x5e0   : > { %5303 = vmatpush1.bf16.msra.mxu1 %v9080_v27  ;;  %v9149_v27 = vld [vmem:[#allocation16] ss:$16 sps:$4 sm:$0xff]  }
 0x5e1   : > { %5304 = vmatprep.subr.bf16.mxu1 %v9088_v33  ;;  %v5489_v33 = vshll.u32 %v10684_v31, 16 }
 0x5e2   : > { %4416 = vmatpush1.bf16.msra.mxu0 %v9083_v22  ;;  %v9159_v22 = vld [vmem:[#allocation16 + $0x24] ss:$16 sps:$4 sm:$0xff]  }
 0x5e3   : > { %4417 = vmatprep.subr.bf16.mxu0 %v9091_v37  ;;  %v10748_v37 = vor.u32 %v4511_v25, %v4508_v24  ;;  %v9219_v24 = vld [vmem:[#allocation16 + $0x164] ss:$16 sps:$4 sm:$0xff]   ;;  %v9214_v25 = vld [vmem:[#allocation16 + $0xb20] ss:$16 sps:$4 sm:$0xff]  }
 0x5e4   : > { %5305 = vmatpush1.bf16.msra.mxu1 %v9086_v40  ;;  %v9154_v40 = vld [vmem:[#allocation16 + $0x3e8] ss:$16 sps:$4 sm:$0xff]  }
 0x5e5   : > { %5306 = vmatprep.subr.bf16.mxu1 %v9094_v39  ;;  %v9162_v39 = vld [vmem:[#allocation16 + $0xa04] ss:$16 sps:$4 sm:$0xff]  }
 0x5e6   : > { %4418 = vmatpush1.bf16.msra.mxu0 %v9089_v45  ;;  %v9157_v45 = vld [vmem:[#allocation16 + $0x20] ss:$16 sps:$4 sm:$0xff]  }
 0x5e7   : > { %4419 = vmatprep.subr.bf16.mxu0 %v9097_v54  ;;  %v5491_v54 = vrot.slane %v5489_v33, 1  ;;  %v9225_v33 = vld [vmem:[#allocation16 + $0x184] ss:$16 sps:$4 sm:$0xff]  }
 0x5e8   : > { %5307 = vmatpush1.bf16.msra.mxu1 %v9092_v41  ;;  %v9165_v41 = vld [vmem:[#allocation16 + $0x44] ss:$16 sps:$4 sm:$0xff]  }
 0x5e9   : > { %5308 = vmatprep.subr.bf16.mxu1 %v9100_v42  ;;  %v9160_v42 = vld [vmem:[#allocation16 + $0xa00] ss:$16 sps:$4 sm:$0xff]  }
 0x5ea   : > { %4420 = vmatpush1.bf16.msra.mxu0 %v9095_v46  ;;  %v5487_v46 = vshrl.u32 %v10684_v31, 16  ;;  %v9177_v31 = vld [vmem:[#allocation16 + $0x84] ss:$16 sps:$4 sm:$0xff]  }
 0x5eb   : > { %4421 = vmatprep.subr.bf16.mxu0 %v9103_v32  ;;  %v9168_v32 = vld [vmem:[#allocation16 + $0xa24] ss:$16 sps:$4 sm:$0xff]  }
 0x5ec   : > { %5309 = vmatpush1.bf16.msra.mxu1 %v9098_v49  ;;  %v10753_v49 = vor.u32 %v5491_v54, %v5487_v46  ;;  %v9226_v54 = vld [vmem:[#allocation16 + $0xb60] ss:$16 sps:$4 sm:$0xff]   ;;  %v7805_v46 = vcombine.low %v10743_v6, %v10726_v63 }
 0x5ed   : > { %5310 = vmatprep.subr.bf16.mxu1 %v9106_v50  ;;  %v9163_v50 = vld [vmem:[#allocation16 + $0x40] ss:$16 sps:$4 sm:$0xff]  }
 0x5ee   : > { %4422 = vmatpush1.bf16.msra.mxu0 %v9101_v51  ;;  %v9171_v51 = vld [vmem:[#allocation16 + $0x64] ss:$16 sps:$4 sm:$0xff]  }
 0x5ef   : > { %4423 = vmatprep.subr.bf16.mxu0 %v9109_v52  ;;  %v9166_v52 = vld [vmem:[#allocation16 + $0xa20] ss:$16 sps:$4 sm:$0xff]  }
 0x5f0   : > { %5311 = vmatpush1.bf16.msra.mxu1 %v9104_v53  ;;  %v9174_v53 = vld [vmem:[#allocation16 + $0xa44] ss:$16 sps:$4 sm:$0xff]  }
 0x5f1   : > { %5312 = vmatprep.subr.bf16.mxu1 %v9112_v56  ;;  %v9169_v56 = vld [vmem:[#allocation16 + $0x60] ss:$16 sps:$4 sm:$0xff]  }
 0x5f2   : > { %4424 = vmatpush1.bf16.msra.mxu0 %v9107_v58  ;;  %v9172_v58 = vld [vmem:[#allocation16 + $0xa40] ss:$16 sps:$4 sm:$0xff]  }
 0x5f3   : > { %4425 = vmatprep.subr.bf16.mxu0 %v9115_v43  ;;  %v9180_v43 = vld [vmem:[#allocation16 + $0xa64] ss:$16 sps:$4 sm:$0xff]  }
 0x5f4   : > { %5313 = vmatpush1.bf16.msra.mxu1 %v9110_v57  ;;  %v9175_v57 = vld [vmem:[#allocation16 + $0x80] ss:$16 sps:$4 sm:$0xff]  }
 0x5f5   : > { %5314 = vmatprep.subr.bf16.mxu1 %v9118_v29  ;;  %v9178_v29 = vld [vmem:[#allocation16 + $0xa60] ss:$16 sps:$4 sm:$0xff]  }
 0x5f6   : > { %4426 = vmatpush1.bf16.msra.mxu0 %v9113_v48  ;;  %v9186_v48 = vld [vmem:[#allocation16 + $0xa84] ss:$16 sps:$4 sm:$0xff]  }
 0x5f7   : > { %4427 = vmatprep.subr.bf16.mxu0 %v9121_v59  ;;  %v9181_v59 = vld [vmem:[#allocation16 + $0xa0] ss:$16 sps:$4 sm:$0xff]  }
 0x5f8   : > { %5315 = vmatpush1.bf16.msra.mxu1 %v9116_v19  ;;  %v9189_v19 = vld [vmem:[#allocation16 + $0xc4] ss:$16 sps:$4 sm:$0xff]  }
 0x5f9   : > { %5316 = vmatprep.subr.bf16.mxu1 %v9124_v30  ;;  %v9184_v30 = vld [vmem:[#allocation16 + $0xa80] ss:$16 sps:$4 sm:$0xff]  }
 0x5fa   : > { %4428 = vmatpush1.bf16.msra.mxu0 %v9119_v60  ;;  %v9192_v60 = vld [vmem:[#allocation16 + $0xaa4] ss:$16 sps:$4 sm:$0xff]  }
 0x5fb   : > { %4429 = vmatprep.subr.bf16.mxu0 %v9127_v61  ;;  %v9187_v61 = vld [vmem:[#allocation16 + $0xc0] ss:$16 sps:$4 sm:$0xff]  }
 0x5fc   : > { %5317 = vmatpush1.bf16.msra.mxu1 %v9122_v62  ;;  %v9195_v62 = vld [vmem:[#allocation16 + $0xe4] ss:$16 sps:$4 sm:$0xff]  }
 0x5fd   : > { %5318 = vmatprep.subr.bf16.mxu1 %v9130_v1  ;;  %v9190_v1 = vld [vmem:[#allocation16 + $0xaa0] ss:$16 sps:$4 sm:$0xff]  }
 0x5fe   : > { %4430 = vmatpush1.bf16.msra.mxu0 %v9125_v2  ;;  %v9198_v2 = vld [vmem:[#allocation16 + $0xac4] ss:$16 sps:$4 sm:$0xff]  }
 0x5ff   : > { %4431 = vmatprep.subr.bf16.mxu0 %v9133_v3 }
 0x600   : > { %5319 = vmatpush1.bf16.msra.mxu1 %v9128_v18  ;;  %v9193_v18 = vld [vmem:[#allocation16 + $0xe0] ss:$16 sps:$4 sm:$0xff]  }
 0x601   : > { %5320 = vmatprep.subr.bf16.mxu1 %v9136_v28 }
 0x602   : > { %4432 = vmatpush1.bf16.msra.mxu0 %v9131_v7  ;;  %v9201_v7 = vld [vmem:[#allocation16 + $0x104] ss:$16 sps:$4 sm:$0xff]  }
 0x603   : > { %4433 = vmatprep.subr.bf16.mxu0 %v9139_v8 }
 0x604   : > { %5321 = vmatpush1.bf16.msra.mxu1 %v9134_v16  ;;  %v9196_v16 = vld [vmem:[#allocation16 + $0xac0] ss:$16 sps:$4 sm:$0xff]  }
 0x605   : > { %5322 = vmatprep.subr.bf16.mxu1 %v9142_v47  ;;  %v9204_v47 = vld [vmem:[#allocation16 + $0xae4] ss:$16 sps:$4 sm:$0xff]  }
 0x606   : > { %4434 = vmatpush1.bf16.msra.mxu0 %v9137_v14  ;;  %v9199_v14 = vld [vmem:[#allocation16 + $0x100] ss:$16 sps:$4 sm:$0xff]  }
 0x607   : > { %4435 = vmatprep.subr.bf16.mxu0 %v9145_v11  ;;  %v9207_v11 = vld [vmem:[#allocation16 + $0x124] ss:$16 sps:$4 sm:$0xff]  }
 0x608   : > { %5323 = vmatpush1.bf16.msra.mxu1 %v9140_v12  ;;  %v9202_v12 = vld [vmem:[#allocation16 + $0xae0] ss:$16 sps:$4 sm:$0xff]  }
 0x609   : > { %5324 = vmatprep.subr.bf16.mxu1 %v9148_v17  ;;  %v9213_v17 = vld [vmem:[#allocation16 + $0x144] ss:$16 sps:$4 sm:$0xff]  }
 0x60a   : > { %4436 = vmatpush1.bf16.msra.mxu0 %v9143_v20  ;;  %v9208_v20 = vld [vmem:[#allocation16 + $0xb00] ss:$16 sps:$4 sm:$0xff]  }
 0x60b   : > { %5173 = vmatprep.subr.bf16.mxu0 %v9151_v21  ;;  %v9216_v21 = vld [vmem:[#allocation16 + $0xb24] ss:$16 sps:$4 sm:$0xff]  }
 0x60c   : > { %5325 = vmatpush1.bf16.msra.mxu1 %v9146_v23  ;;  %v9211_v23 = vld [vmem:[#allocation16 + $0x140] ss:$16 sps:$4 sm:$0xff]  }
 0x60d   : > { %4438 = vmatmul.mubr.bf16.vlgmr.msra.gmra.mrb[20].mxu0 %v10734_v5  ;;  %5326 = vmatprep.subr.bf16.mxu1 %v9156_v26  ;;  %v9222_v26 = vld [vmem:[#allocation16 + $0xb44] ss:$16 sps:$4 sm:$0xff]  }
 0x60e   : > { %5174 = vmatpush1.bf16.msra.mxu0 %v9149_v27  ;;  %5205 = vmatprep.mubr.bf16.mxu0 %v10748_v37  ;;  %v9217_v27 = vld [vmem:[#allocation16 + $0x160] ss:$16 sps:$4 sm:$0xff]  }
 0x60f   : > { %5175 = vmatprep.subr.bf16.mxu0 %v9159_v22  ;;  %v9220_v22 = vld [vmem:[#allocation16 + $0xb40] ss:$16 sps:$4 sm:$0xff]  }
 0x610   : > { %5327 = vmatpush1.bf16.msra.mxu1 %v9154_v40  ;;  %v9228_v40 = vld [vmem:[#allocation16 + $0xb64] ss:$16 sps:$4 sm:$0xff]  }
 0x611   : > { %6178 = vmatprep.subr.bf16.mxu1 %v9162_v39  ;;  %v9223_v39 = vld [vmem:[#allocation16 + $0x180] ss:$16 sps:$4 sm:$0xff]  }
 0x612   : > { %5176 = vmatpush1.bf16.msra.mxu0 %v9157_v45  ;;  %v9231_v45 = vld [vmem:[#allocation16 + $0x1a4] ss:$16 sps:$4 sm:$0xff]  }
 0x613   : > { %5329 = vmatmul.mubr.bf16.vlgmr.msra.gmra.mrb[28].mxu1 %v10739_v10  ;;  %5177 = vmatprep.subr.bf16.mxu0 %v9165_v41  ;;  %v9183_v10 = vld [vmem:[#allocation16 + $0xa4] ss:$16 sps:$4 sm:$0xff]  }
 0x614   : > { %6179 = vmatpush1.bf16.msra.mxu1 %v9160_v42  ;;  %6210 = vmatprep.mubr.bf16.mxu1 %v10753_v49  ;;  %v9234_v41 = vld [vmem:[#allocation16 + $0xb84] ss:$16 sps:$4 sm:$0xff]   ;;  %v9229_v42 = vld [vmem:[#allocation16 + $0x1a0] ss:$16 sps:$4 sm:$0xff]  }
 0x615   : > { %6180 = vmatprep.subr.bf16.mxu1 %v9168_v32  ;;  %v9237_v32 = vld [vmem:[#allocation16 + $0x1c4] ss:$16 sps:$4 sm:$0xff]  }
 0x616   : > { %5178 = vmatpush1.bf16.msra.mxu0 %v9163_v50  ;;  %v9232_v50 = vld [vmem:[#allocation16 + $0xb80] ss:$16 sps:$4 sm:$0xff]  }
 0x617   : > { %5179 = vmatprep.subr.bf16.mxu0 %v9171_v51  ;;  %v9240_v51 = vld [vmem:[#allocation16 + $0xba4] ss:$16 sps:$4 sm:$0xff]  }
 0x618   : > { %6181 = vmatpush1.bf16.msra.mxu1 %v9166_v52  ;;  %v9235_v52 = vld [vmem:[#allocation16 + $0x1c0] ss:$16 sps:$4 sm:$0xff]  }
 0x619   : > { %6182 = vmatprep.subr.bf16.mxu1 %v9174_v53  ;;  %v9243_v53 = vld [vmem:[#allocation16 + $0x1e4] ss:$16 sps:$4 sm:$0xff]  }
 0x61a   : > { %5180 = vmatpush1.bf16.msra.mxu0 %v9169_v56  ;;  %v4498_v56 = vshrl.u32 %v7805_v46, 16 }
 0x61b   : > { %5181 = vmatprep.subr.bf16.mxu0 %v9177_v31  ;;  %v4501_v31 = vshll.u32 %v7805_v46, 16  ;;  %v9292_v46 = vld [vmem:[#allocation16 + $0xac8] ss:$16 sps:$4 sm:$0xff]  }
 0x61c   : > { %6183 = vmatpush1.bf16.msra.mxu1 %v9172_v58  ;;  %v9238_v58 = vld [vmem:[#allocation16 + $0xba0] ss:$16 sps:$4 sm:$0xff]   ;;  %v4500_v63 = vrot.slane %v4498_v56, 3  ;;  %v9306_v56 = vld [vmem:[#allocation16 + $0xb0c] ss:$16 sps:$4 sm:$0xff]  }
 0x61d   : > { %6184 = vmatprep.subr.bf16.mxu1 %v9180_v43  ;;  %v9246_v43 = vld [vmem:[#allocation16 + $0xbc4] ss:$16 sps:$4 sm:$0xff]   ;;  %v4503_v6 = vrot.slane %v4501_v31, 4  ;;  %v9301_v31 = vld [vmem:[#allocation16 + $0x128] ss:$16 sps:$4 sm:$0xff]  }
 0x61e   : > { %5182 = vmatpush1.bf16.msra.mxu0 %v9175_v57  ;;  %v9241_v57 = vld [vmem:[#allocation16 + $0x1e0] ss:$16 sps:$4 sm:$0xff]  }
 0x61f   : > { %5183 = vmatprep.subr.bf16.mxu0 %v9183_v10  ;;  %v9249_v10 = vld [vmem:[#allocation16 + $0xc] ss:$16 sps:$4 sm:$0xff]  }
 0x620   : > { %6185 = vmatpush1.bf16.msra.mxu1 %v9178_v29  ;;  %v9244_v29 = vld [vmem:[#allocation16 + $0xbc0] ss:$16 sps:$4 sm:$0xff]  }
 0x621   : > { %6186 = vmatprep.subr.bf16.mxu1 %v9186_v48  ;;  %v9252_v48 = vld [vmem:[#allocation16 + $0xbe4] ss:$16 sps:$4 sm:$0xff]  }
 0x622   : > { %5184 = vmatpush1.bf16.msra.mxu0 %v9181_v59  ;;  %v5482_v59 = vshll.u32 %v10688_v35, 16 }
 0x623   : > { %5185 = vmatprep.subr.bf16.mxu0 %v9189_v19  ;;  %v9247_v19 = vld [vmem:[#allocation16 + $0x8] ss:$16 sps:$4 sm:$0xff]  }
 0x624   : > { %6187 = vmatpush1.bf16.msra.mxu1 %v9184_v30  ;;  %v10764_v30 = vor.u32 %v4503_v6, %v4500_v63  ;;  %v9307_v63 = vld [vmem:[#allocation16 + $0x148] ss:$16 sps:$4 sm:$0xff]   ;;  %v9315_v6 = vld [vmem:[#allocation16 + $0x16c] ss:$16 sps:$4 sm:$0xff]  }
 0x625   : > { %6188 = vmatprep.subr.bf16.mxu1 %v9192_v60  ;;  %v9255_v60 = vld [vmem:[#allocation16 + $0x2c] ss:$16 sps:$4 sm:$0xff]  }
 0x626   : > { %5186 = vmatpush1.bf16.msra.mxu0 %v9187_v61  ;;  %v10757_v3 = vpop.f32.mrb[16].mxu1  ;;  %v9250_v61 = vld [vmem:[#allocation16 + $0xbe0] ss:$16 sps:$4 sm:$0xff]  }
 0x627   : > { %v10759_v28 = vpop.f32.mrb[17].mxu1  ;;  %5187 = vmatprep.subr.bf16.mxu0 %v9195_v62  ;;  %v5484_v62 = vrot.slane %v5482_v59, 1  ;;  %v9321_v59 = vld [vmem:[#allocation16 + $0x18c] ss:$16 sps:$4 sm:$0xff]  }
 0x628   : > { %6189 = vmatpush1.bf16.msra.mxu1 %v9190_v1  ;;  %v4402_v8 = vpop.f32.mrb[18].mxu1  ;;  %v9258_v1 = vld [vmem:[#allocation16 + $0xa0c] ss:$16 sps:$4 sm:$0xff]  }
 0x629   : > { %v4403_v9 = vpop.f32.mrb[19].mxu1  ;;  %6190 = vmatprep.subr.bf16.mxu1 %v9198_v2  ;;  %v9253_v2 = vld [vmem:[#allocation16 + $0x28] ss:$16 sps:$4 sm:$0xff]  }
 0x62a   : > { %5188 = vmatpush1.bf16.msra.mxu0 %v9193_v18  ;;  %v5480_v18 = vshrl.u32 %v10688_v35, 16  ;;  %v9256_v8 = vld [vmem:[#allocation16 + $0xa08] ss:$16 sps:$4 sm:$0xff]   ;;  %v9264_v9 = vld [vmem:[#allocation16 + $0xa2c] ss:$16 sps:$4 sm:$0xff]  }
 0x62b   : > { %5189 = vmatprep.subr.bf16.mxu0 %v9201_v7  ;;  %v9261_v7 = vld [vmem:[#allocation16 + $0x4c] ss:$16 sps:$4 sm:$0xff]   ;;  %v9265_v35 = vld [vmem:[#allocation16 + $0x68] ss:$16 sps:$4 sm:$0xff]  }
 0x62c   : > { %6191 = vmatpush1.bf16.msra.mxu1 %v9196_v16  ;;  %v10769_v16 = vor.u32 %v5484_v62, %v5480_v18  ;;  %v9327_v62 = vld [vmem:[#allocation16 + $0x1ac] ss:$16 sps:$4 sm:$0xff]   ;;  %v9325_v18 = vld [vmem:[#allocation16 + $0x1a8] ss:$16 sps:$4 sm:$0xff]  }
 0x62d   : > { %6192 = vmatprep.subr.bf16.mxu1 %v9204_v47  ;;  %v9259_v47 = vld [vmem:[#allocation16 + $0x48] ss:$16 sps:$4 sm:$0xff]  }
 0x62e   : > { %5190 = vmatpush1.bf16.msra.mxu0 %v9199_v14  ;;  %v9267_v14 = vld [vmem:[#allocation16 + $0x6c] ss:$16 sps:$4 sm:$0xff]  }
 0x62f   : > { %5191 = vmatprep.subr.bf16.mxu0 %v9207_v11  ;;  %v9270_v11 = vld [vmem:[#allocation16 + $0xa4c] ss:$16 sps:$4 sm:$0xff]  }
 0x630   : > { %6193 = vmatpush1.bf16.msra.mxu1 %v9202_v12  ;;  %v9273_v12 = vld [vmem:[#allocation16 + $0x8c] ss:$16 sps:$4 sm:$0xff]  }
 0x631   : > { %6194 = vmatprep.subr.bf16.mxu1 %v9210_v13  ;;  %v9268_v13 = vld [vmem:[#allocation16 + $0xa48] ss:$16 sps:$4 sm:$0xff]  }
 0x632   : > { %5192 = vmatpush1.bf16.msra.mxu0 %v9205_v15  ;;  %v9276_v15 = vld [vmem:[#allocation16 + $0xa6c] ss:$16 sps:$4 sm:$0xff]  }
 0x633   : > { %5193 = vmatprep.subr.bf16.mxu0 %v9213_v17  ;;  %v9271_v17 = vld [vmem:[#allocation16 + $0x88] ss:$16 sps:$4 sm:$0xff]  }
 0x634   : > { %6195 = vmatpush1.bf16.msra.mxu1 %v9208_v20  ;;  %v9279_v20 = vld [vmem:[#allocation16 + $0xac] ss:$16 sps:$4 sm:$0xff]  }
 0x635   : > { %6196 = vmatprep.subr.bf16.mxu1 %v9216_v21  ;;  %v9274_v21 = vld [vmem:[#allocation16 + $0xa68] ss:$16 sps:$4 sm:$0xff]  }
 0x636   : > { %5194 = vmatpush1.bf16.msra.mxu0 %v9211_v23  ;;  %v9282_v23 = vld [vmem:[#allocation16 + $0xa8c] ss:$16 sps:$4 sm:$0xff]  }
 0x637   : > { %5195 = vmatprep.subr.bf16.mxu0 %v9219_v24  ;;  %v9285_v24 = vld [vmem:[#allocation16 + $0xcc] ss:$16 sps:$4 sm:$0xff]  }
 0x638   : > { %6197 = vmatpush1.bf16.msra.mxu1 %v9214_v25  ;;  %v9280_v25 = vld [vmem:[#allocation16 + $0xa88] ss:$16 sps:$4 sm:$0xff]  }
 0x639   : > { %6198 = vmatprep.subr.bf16.mxu1 %v9222_v26  ;;  %v9288_v26 = vld [vmem:[#allocation16 + $0xaac] ss:$16 sps:$4 sm:$0xff]  }
 0x63a   : > { %5196 = vmatpush1.bf16.msra.mxu0 %v9217_v27  ;;  %v9283_v27 = vld [vmem:[#allocation16 + $0xc8] ss:$16 sps:$4 sm:$0xff]  }
 0x63b   : > { %5197 = vmatprep.subr.bf16.mxu0 %v9225_v33  ;;  %v9291_v33 = vld [vmem:[#allocation16 + $0xec] ss:$16 sps:$4 sm:$0xff]  }
 0x63c   : > { %6199 = vmatpush1.bf16.msra.mxu1 %v9220_v22  ;;  %v9286_v22 = vld [vmem:[#allocation16 + $0xaa8] ss:$16 sps:$4 sm:$0xff]  }
 0x63d   : > { %6200 = vmatprep.subr.bf16.mxu1 %v9228_v40  ;;  %v9294_v40 = vld [vmem:[#allocation16 + $0xacc] ss:$16 sps:$4 sm:$0xff]  }
 0x63e   : > { %5198 = vmatpush1.bf16.msra.mxu0 %v9223_v39 }
 0x63f   : > { %5199 = vmatprep.subr.bf16.mxu0 %v9231_v45  ;;  %v9289_v45 = vld [vmem:[#allocation16 + $0xe8] ss:$16 sps:$4 sm:$0xff]  }
 0x640   : > { %6201 = vmatpush1.bf16.msra.mxu1 %v9226_v54 }
 0x641   : > { %6202 = vmatprep.subr.bf16.mxu1 %v9234_v41  ;;  %v9297_v41 = vld [vmem:[#allocation16 + $0x10c] ss:$16 sps:$4 sm:$0xff]  }
 0x642   : > { %5200 = vmatpush1.bf16.msra.mxu0 %v9229_v42 }
 0x643   : > { %5201 = vmatprep.subr.bf16.mxu0 %v9237_v32 }
 0x644   : > { %6203 = vmatpush1.bf16.msra.mxu1 %v9232_v50  ;;  %v9300_v50 = vld [vmem:[#allocation16 + $0xaec] ss:$16 sps:$4 sm:$0xff]  }
 0x645   : > { %6204 = vmatprep.subr.bf16.mxu1 %v9240_v51  ;;  %v9295_v51 = vld [vmem:[#allocation16 + $0x108] ss:$16 sps:$4 sm:$0xff]  }
 0x646   : > { %5202 = vmatpush1.bf16.msra.mxu0 %v9235_v52  ;;  %v9303_v52 = vld [vmem:[#allocation16 + $0x12c] ss:$16 sps:$4 sm:$0xff]  }
 0x647   : > { %5203 = vmatprep.subr.bf16.mxu0 %v9243_v53  ;;  %v9298_v53 = vld [vmem:[#allocation16 + $0xae8] ss:$16 sps:$4 sm:$0xff]  }
 0x648   : > { %6205 = vmatpush1.bf16.msra.mxu1 %v9238_v58  ;;  %v9309_v58 = vld [vmem:[#allocation16 + $0x14c] ss:$16 sps:$4 sm:$0xff]  }
 0x649   : > { %6206 = vmatprep.subr.bf16.mxu1 %v9246_v43  ;;  %v9304_v43 = vld [vmem:[#allocation16 + $0xb08] ss:$16 sps:$4 sm:$0xff]  }
 0x64a   : > { %5204 = vmatpush1.bf16.msra.mxu0 %v9241_v57  ;;  %v9312_v57 = vld [vmem:[#allocation16 + $0xb2c] ss:$16 sps:$4 sm:$0xff]  }
 0x64b   : > { %5255 = vmatprep.subr.bf16.mxu0 %v9249_v10  ;;  %v9310_v10 = vld [vmem:[#allocation16 + $0xb28] ss:$16 sps:$4 sm:$0xff]  }
 0x64c   : > { %6207 = vmatpush1.bf16.msra.mxu1 %v9244_v29  ;;  %v9318_v29 = vld [vmem:[#allocation16 + $0xb4c] ss:$16 sps:$4 sm:$0xff]  }
 0x64d   : > { %5206 = vmatmul.mubr.bf16.vlgmr.msra.gmra.mrb[24].mxu0 %v10764_v30  ;;  %6208 = vmatprep.subr.bf16.mxu1 %v9252_v48  ;;  %v9313_v48 = vld [vmem:[#allocation16 + $0x168] ss:$16 sps:$4 sm:$0xff]  }
 0x64e   : > { %5256 = vmatpush1.bf16.msra.mxu0 %v9247_v19  ;;  %5287 = vmatprep.mubr.bf16.mxu0 %v10748_v37  ;;  %v9262_v37 = vld [vmem:[#allocation16 + $0xa28] ss:$16 sps:$4 sm:$0xff]  }
 0x64f   : > { %5257 = vmatprep.subr.bf16.mxu0 %v9255_v60  ;;  %v9316_v19 = vld [vmem:[#allocation16 + $0xb48] ss:$16 sps:$4 sm:$0xff]   ;;  %v9324_v60 = vld [vmem:[#allocation16 + $0xb6c] ss:$16 sps:$4 sm:$0xff]  }
 0x650   : > { %6209 = vmatpush1.bf16.msra.mxu1 %v9250_v61  ;;  %v9319_v61 = vld [vmem:[#allocation16 + $0x188] ss:$16 sps:$4 sm:$0xff]  }
 0x651   : > { %6260 = vmatprep.subr.bf16.mxu1 %v9258_v1  ;;  %v9322_v1 = vld [vmem:[#allocation16 + $0xb68] ss:$16 sps:$4 sm:$0xff]  }
 0x652   : > { %5258 = vmatpush1.bf16.msra.mxu0 %v9253_v2  ;;  %v9330_v2 = vld [vmem:[#allocation16 + $0xb8c] ss:$16 sps:$4 sm:$0xff]  }
 0x653   : > { %6211 = vmatmul.mubr.bf16.vlgmr.msra.gmra.mrb[32].mxu1 %v10769_v16  ;;  %5259 = vmatprep.subr.bf16.mxu0 %v9261_v7  ;;  %v9333_v7 = vld [vmem:[#allocation16 + $0x1cc] ss:$16 sps:$4 sm:$0xff]  }
 0x654   : > { %6261 = vmatpush1.bf16.msra.mxu1 %v9256_v8  ;;  %6292 = vmatprep.mubr.bf16.mxu1 %v10753_v49  ;;  %v9277_v49 = vld [vmem:[#allocation16 + $0xa8] ss:$16 sps:$4 sm:$0xff]  }
 0x655   : > { %6262 = vmatprep.subr.bf16.mxu1 %v9264_v9  ;;  %v9328_v8 = vld [vmem:[#allocation16 + $0xb88] ss:$16 sps:$4 sm:$0xff]   ;;  %v9336_v9 = vld [vmem:[#allocation16 + $0xbac] ss:$16 sps:$4 sm:$0xff]  }
 0x656   : > { %5260 = vmatpush1.bf16.msra.mxu0 %v9259_v47  ;;  %v9331_v47 = vld [vmem:[#allocation16 + $0x1c8] ss:$16 sps:$4 sm:$0xff]  }
 0x657   : > { %5261 = vmatprep.subr.bf16.mxu0 %v9267_v14  ;;  %v9339_v14 = vld [vmem:[#allocation16 + $0x1ec] ss:$16 sps:$4 sm:$0xff]  }
 0x658   : > { %6263 = vmatpush1.bf16.msra.mxu1 %v9262_v37  ;;  %v9334_v37 = vld [vmem:[#allocation16 + $0xba8] ss:$16 sps:$4 sm:$0xff]  }
 0x659   : > { %6264 = vmatprep.subr.bf16.mxu1 %v9270_v11  ;;  %v5475_v11 = vshll.u32 %v10730_v4, 16 }
 0x65a   : > { %5262 = vmatpush1.bf16.msra.mxu0 %v9265_v35  ;;  %v9342_v35 = vld [vmem:[#allocation16 + $0xbcc] ss:$16 sps:$4 sm:$0xff]  }
 0x65b   : > { %5263 = vmatprep.subr.bf16.mxu0 %v9273_v12  ;;  %v9337_v12 = vld [vmem:[#allocation16 + $0x1e8] ss:$16 sps:$4 sm:$0xff]  }
 0x65c   : > { %6265 = vmatpush1.bf16.msra.mxu1 %v9268_v13  ;;  %v9345_v13 = vld [vmem:[#allocation16 + $0x804] ss:$16 sps:$4 sm:$0xff]  }
 0x65d   : > { %6266 = vmatprep.subr.bf16.mxu1 %v9276_v15  ;;  %v9340_v15 = vld [vmem:[#allocation16 + $0xbc8] ss:$16 sps:$4 sm:$0xff]  }
 0x65e   : > { %5264 = vmatpush1.bf16.msra.mxu0 %v9271_v17  ;;  %v5477_v17 = vrot.slane %v5475_v11, 1  ;;  %v9394_v11 = vld [vmem:[#allocation16 + $0x808] ss:$16 sps:$4 sm:$0xff]  }
 0x65f   : > { %5265 = vmatprep.subr.bf16.mxu0 %v9279_v20  ;;  %v9348_v20 = vld [vmem:[#allocation16 + $0xbec] ss:$16 sps:$4 sm:$0xff]  }
 0x660   : > { %6267 = vmatpush1.bf16.msra.mxu1 %v9274_v21  ;;  %v9343_v21 = vld [vmem:[#allocation16 + $0x800] ss:$16 sps:$4 sm:$0xff]  }
 0x661   : > { %6268 = vmatprep.subr.bf16.mxu1 %v9282_v23  ;;  %v5473_v23 = vshrl.u32 %v10730_v4, 16  ;;  %v9357_v4 = vld [vmem:[#allocation16 + $0x864] ss:$16 sps:$4 sm:$0xff]  }
 0x662   : > { %5266 = vmatpush1.bf16.msra.mxu0 %v9277_v49  ;;  %v9351_v49 = vld [vmem:[#allocation16 + $0x824] ss:$16 sps:$4 sm:$0xff]  }
 0x663   : > { %5267 = vmatprep.subr.bf16.mxu0 %v9285_v24  ;;  %v10779_v24 = vor.u32 %v5477_v17, %v5473_v23  ;;  %v9400_v17 = vld [vmem:[#allocation16 + $0x848] ss:$16 sps:$4 sm:$0xff]  }
 0x664   : > { %6269 = vmatpush1.bf16.msra.mxu1 %v9280_v25  ;;  %v9346_v25 = vld [vmem:[#allocation16 + $0xbe8] ss:$16 sps:$4 sm:$0xff]  }
 0x665   : > { %6270 = vmatprep.subr.bf16.mxu1 %v9288_v26  ;;  %v9349_v26 = vld [vmem:[#allocation16 + $0x820] ss:$16 sps:$4 sm:$0xff]   ;;  %v9406_v23 = vld [vmem:[#allocation16 + $0x888] ss:$16 sps:$4 sm:$0xff]  }
 0x666   : > { %v10773_v39 = vpop.f32.mrb[20].mxu1  ;;  %5268 = vmatpush1.bf16.msra.mxu0 %v9283_v27  ;;  %v9354_v27 = vld [vmem:[#allocation16 + $0x844] ss:$16 sps:$4 sm:$0xff]  }
 0x667   : > { %v10775_v54 = vpop.f32.mrb[21].mxu1  ;;  %5269 = vmatprep.subr.bf16.mxu0 %v9291_v33  ;;  %v9352_v33 = vld [vmem:[#allocation16 + $0x840] ss:$16 sps:$4 sm:$0xff]  }
 0x668   : > { %v4484_v42 = vpop.f32.mrb[22].mxu1  ;;  %6271 = vmatpush1.bf16.msra.mxu1 %v9286_v22  ;;  %v9355_v22 = vld [vmem:[#allocation16 + $0x860] ss:$16 sps:$4 sm:$0xff]  }
 0x669   : > { %v4485_v32 = vpop.f32.mrb[23].mxu1  ;;  %6272 = vmatprep.subr.bf16.mxu1 %v9294_v40  ;;  %v9360_v40 = vld [vmem:[#allocation16 + $0x884] ss:$16 sps:$4 sm:$0xff]  }
 0x66a   : > { %5270 = vmatpush1.bf16.msra.mxu0 %v9289_v45  ;;  %v9363_v45 = vld [vmem:[#allocation16 + $0x8a4] ss:$16 sps:$4 sm:$0xff]  }
 0x66b   : > { %5271 = vmatprep.subr.bf16.mxu0 %v9297_v41  ;;  %v9361_v41 = vld [vmem:[#allocation16 + $0x8a0] ss:$16 sps:$4 sm:$0xff]   ;;  %v9366_v42 = vld [vmem:[#allocation16 + $0x8c4] ss:$16 sps:$4 sm:$0xff]  }
 0x66c   : > { %6273 = vmatpush1.bf16.msra.mxu1 %v9292_v46 }
 0x66d   : > { %6274 = vmatprep.subr.bf16.mxu1 %v9300_v50 }
 0x66e   : > { %5272 = vmatpush1.bf16.msra.mxu0 %v9295_v51 }
 0x66f   : > { %5273 = vmatprep.subr.bf16.mxu0 %v9303_v52  ;;  %v9364_v52 = vld [vmem:[#allocation16 + $0x8c0] ss:$16 sps:$4 sm:$0xff]  }
 0x670   : > { %6275 = vmatpush1.bf16.msra.mxu1 %v9298_v53 }
 0x671   : > { %6276 = vmatprep.subr.bf16.mxu1 %v9306_v56  ;;  %v9369_v56 = vld [vmem:[#allocation16 + $0x8e4] ss:$16 sps:$4 sm:$0xff]  }
 0x672   : > { %5274 = vmatpush1.bf16.msra.mxu0 %v9301_v31 }
 0x673   : > { %5275 = vmatprep.subr.bf16.mxu0 %v9309_v58  ;;  %v9367_v58 = vld [vmem:[#allocation16 + $0x8e0] ss:$16 sps:$4 sm:$0xff]  }
 0x674   : > { %6277 = vmatpush1.bf16.msra.mxu1 %v9304_v43 }
 0x675   : > { %6278 = vmatprep.subr.bf16.mxu1 %v9312_v57  ;;  %v9372_v57 = vld [vmem:[#allocation16 + $0x904] ss:$16 sps:$4 sm:$0xff]  }
 0x676   : > { %5276 = vmatpush1.bf16.msra.mxu0 %v9307_v63 }
 0x677   : > { %5277 = vmatprep.subr.bf16.mxu0 %v9315_v6  ;;  %v9370_v6 = vld [vmem:[#allocation16 + $0x900] ss:$16 sps:$4 sm:$0xff]  }
 0x678   : > { %6279 = vmatpush1.bf16.msra.mxu1 %v9310_v10  ;;  %v9373_v10 = vld [vmem:[#allocation16 + $0x920] ss:$16 sps:$4 sm:$0xff]  }
 0x679   : > { %6280 = vmatprep.subr.bf16.mxu1 %v9318_v29  ;;  %v9378_v29 = vld [vmem:[#allocation16 + $0x944] ss:$16 sps:$4 sm:$0xff]  }
 0x67a   : > { %5278 = vmatpush1.bf16.msra.mxu0 %v9313_v48  ;;  %v9376_v48 = vld [vmem:[#allocation16 + $0x940] ss:$16 sps:$4 sm:$0xff]  }
 0x67b   : > { %5279 = vmatprep.subr.bf16.mxu0 %v9321_v59  ;;  %v9381_v59 = vld [vmem:[#allocation16 + $0x964] ss:$16 sps:$4 sm:$0xff]  }
 0x67c   : > { %6281 = vmatpush1.bf16.msra.mxu1 %v9316_v19  ;;  %v9379_v19 = vld [vmem:[#allocation16 + $0x960] ss:$16 sps:$4 sm:$0xff]  }
 0x67d   : > { %6282 = vmatprep.subr.bf16.mxu1 %v9324_v60  ;;  %v9384_v60 = vld [vmem:[#allocation16 + $0x984] ss:$16 sps:$4 sm:$0xff]  }
 0x67e   : > { %5280 = vmatpush1.bf16.msra.mxu0 %v9319_v61  ;;  %v9382_v61 = vld [vmem:[#allocation16 + $0x980] ss:$16 sps:$4 sm:$0xff]  }
 0x67f   : > { %5281 = vmatprep.subr.bf16.mxu0 %v9327_v62  ;;  %v9387_v62 = vld [vmem:[#allocation16 + $0x9a4] ss:$16 sps:$4 sm:$0xff]  }
 0x680   : > { %6283 = vmatpush1.bf16.msra.mxu1 %v9322_v1  ;;  %v9385_v1 = vld [vmem:[#allocation16 + $0x9a0] ss:$16 sps:$4 sm:$0xff]  }
 0x681   : > { %6284 = vmatprep.subr.bf16.mxu1 %v9330_v2  ;;  %v9390_v2 = vld [vmem:[#allocation16 + $0x9c4] ss:$16 sps:$4 sm:$0xff]  }
 0x682   : > { %5282 = vmatpush1.bf16.msra.mxu0 %v9325_v18  ;;  %v9388_v18 = vld [vmem:[#allocation16 + $0x9c0] ss:$16 sps:$4 sm:$0xff]  }
 0x683   : > { %5283 = vmatprep.subr.bf16.mxu0 %v9333_v7  ;;  %v9393_v7 = vld [vmem:[#allocation16 + $0x9e4] ss:$16 sps:$4 sm:$0xff]  }
 0x684   : > { %6285 = vmatpush1.bf16.msra.mxu1 %v9328_v8  ;;  %v5468_v8 = vshll.u32 %v10734_v5, 16 }
 0x685   : > { %6286 = vmatprep.subr.bf16.mxu1 %v9336_v9  ;;  %v9391_v9 = vld [vmem:[#allocation16 + $0x9e0] ss:$16 sps:$4 sm:$0xff]  }
 0x686   : > { %5284 = vmatpush1.bf16.msra.mxu0 %v9331_v47  ;;  %v5470_v47 = vrot.slane %v5468_v8, 1  ;;  %v9451_v8 = vld [vmem:[#allocation19 + $0x30] ss:$8 sps:$4 sm:$0xff]  }
 0x687   : > { %5285 = vmatprep.subr.bf16.mxu0 %v9339_v14  ;;  %v9396_v14 = vld [vmem:[#allocation16 + $0x80c] ss:$16 sps:$4 sm:$0xff]  }
 0x688   : > { %6287 = vmatpush1.bf16.msra.mxu1 %v9334_v37  ;;  %v5466_v37 = vshrl.u32 %v10734_v5, 16  ;;  %v9403_v5 = vld [vmem:[#allocation16 + $0x868] ss:$16 sps:$4 sm:$0xff]  }
 0x689   : > { %6288 = vmatprep.subr.bf16.mxu1 %v9342_v35 }
 0x68a   : > { %5286 = vmatpush1.bf16.msra.mxu0 %v9337_v12  ;;  %v10796_v35 = vor.u32 %v5470_v47, %v5466_v37  ;;  %v9399_v12 = vld [vmem:[#allocation16 + $0x82c] ss:$16 sps:$4 sm:$0xff]  }
 0x68b   : > { %6137 = vmatprep.subr.bf16.mxu0 %v9345_v13  ;;  %v9397_v13 = vld [vmem:[#allocation16 + $0x828] ss:$16 sps:$4 sm:$0xff]   ;;  %v9454_v47 = vld [vmem:[#allocation19 + $0x40] ss:$8 sps:$4 sm:$0xff]   ;;  %v9457_v37 = vld [vmem:[#allocation19 + $0x50] ss:$8 sps:$4 sm:$0xff]  }
 0x68c   : > { %6289 = vmatpush1.bf16.msra.mxu1 %v9340_v15  ;;  %v9402_v15 = vld [vmem:[#allocation16 + $0x84c] ss:$16 sps:$4 sm:$0xff]  }
 0x68d   : > { %5288 = vmatmul.mubr.bf16.vlgmr.msra.gmra.mrb[28].mxu0 %v10764_v30  ;;  %6290 = vmatprep.subr.bf16.mxu1 %v9348_v20  ;;  %v9358_v30 = vld [vmem:[#allocation16 + $0x880] ss:$16 sps:$4 sm:$0xff]   ;;  %v9405_v20 = vld [vmem:[#allocation16 + $0x86c] ss:$16 sps:$4 sm:$0xff]  }
 0x68e   : > { %6138 = vmatpush1.bf16.msra.mxu0 %v9343_v21  ;;  %6169 = vmatprep.mubr.bf16.mxu0 %v10779_v24  ;;  %v9408_v21 = vld [vmem:[#allocation16 + $0x88c] ss:$16 sps:$4 sm:$0xff]  }
 0x68f   : > { %6139 = vmatprep.subr.bf16.mxu0 %v9351_v49  ;;  %v9411_v49 = vld [vmem:[#allocation16 + $0x8ac] ss:$16 sps:$4 sm:$0xff]  }
 0x690   : > { %6291 = vmatpush1.bf16.msra.mxu1 %v9346_v25  ;;  %v9409_v25 = vld [vmem:[#allocation16 + $0x8a8] ss:$16 sps:$4 sm:$0xff]  }
 0x692   : > { %6140 = vmatpush1.bf16.msra.mxu0 %v9349_v26  ;;  %v9414_v26 = vld [vmem:[#allocation16 + $0x8cc] ss:$16 sps:$4 sm:$0xff]  }
 0x693   : > { %6293 = vmatmul.mubr.bf16.vlgmr.msra.gmra.mrb[36].mxu1 %v10769_v16  ;;  %6141 = vmatprep.subr.bf16.mxu0 %v9354_v27 }
 0x696   : > { %6142 = vmatpush1.bf16.msra.mxu0 %v9352_v33 }
 0x697   : > { %6143 = vmatprep.subr.bf16.mxu0 %v9357_v4 }
 0x69a   : > { %6144 = vmatpush1.bf16.msra.mxu0 %v9355_v22 }
 0x69b   : > { %6145 = vmatprep.subr.bf16.mxu0 %v9360_v40  ;;  %v9412_v40 = vld [vmem:[#allocation16 + $0x8c8] ss:$16 sps:$4 sm:$0xff]  }
 0x69e   : > { %6146 = vmatpush1.bf16.msra.mxu0 %v9358_v30 }
 0x69f   : > { %6147 = vmatprep.subr.bf16.mxu0 %v9363_v45  ;;  %v9417_v45 = vld [vmem:[#allocation16 + $0x8ec] ss:$16 sps:$4 sm:$0xff]  }
 0x6a0   : > { %v4357_v46 = vpop.f32.mrb[16].mxu0 }
 0x6a1   : > { %v10785_v32 = vadd.f32 %v10757_v3, %v4357_v46  ;;  %v4359_v50 = vpop.f32.mrb[17].mxu0 }
 0x6a2   : > { %v10788_v16 = vadd.f32 %v10759_v28, %v4359_v50  ;;  %6148 = vmatpush1.bf16.msra.mxu0 %v9361_v41  ;;  %v4361_v51 = vpop.f32.mrb[18].mxu0  ;;  %v9375_v28 = vld [vmem:[#allocation16 + $0x924] ss:$16 sps:$4 sm:$0xff]   ;;  %v9420_v50 = vld [vmem:[#allocation16 + $0x90c] ss:$16 sps:$4 sm:$0xff]  }
 0x6a3   : > { %v4362_v53 = vpop.f32.mrb[19].mxu0  ;;  %6149 = vmatprep.subr.bf16.mxu0 %v9366_v42  ;;  %v9415_v42 = vld [vmem:[#allocation16 + $0x8e8] ss:$16 sps:$4 sm:$0xff]  }
 0x6a4   : > { %v9421_v53 = vld [vmem:[#allocation16 + $0x928] ss:$16 sps:$4 sm:$0xff]  }
 0x6a6   : > { %v10790_v31 = vpop.f32.mrb[24].mxu1  ;;  %6150 = vmatpush1.bf16.msra.mxu0 %v9364_v52  ;;  %v9418_v52 = vld [vmem:[#allocation16 + $0x908] ss:$16 sps:$4 sm:$0xff]  }
 0x6a7   : > { %v10792_v43 = vpop.f32.mrb[25].mxu1  ;;  %6151 = vmatprep.subr.bf16.mxu0 %v9369_v56  ;;  %v9426_v56 = vld [vmem:[#allocation16 + $0x94c] ss:$16 sps:$4 sm:$0xff]  }
 0x6a8   : > { %v5252_v3 = vpop.f32.mrb[26].mxu1 }
 0x6a9   : > { %v5253_v63 = vpop.f32.mrb[27].mxu1  ;;  %v9427_v3 = vld [vmem:[#allocation16 + $0x968] ss:$16 sps:$4 sm:$0xff]  }
 0x6aa   : > { %6152 = vmatpush1.bf16.msra.mxu0 %v9367_v58  ;;  %v9424_v58 = vld [vmem:[#allocation16 + $0x948] ss:$16 sps:$4 sm:$0xff]   ;;  %v9432_v63 = vld [vmem:[#allocation16 + $0x98c] ss:$16 sps:$4 sm:$0xff]  }
 0x6ab   : > { %6153 = vmatprep.subr.bf16.mxu0 %v9372_v57  ;;  %v9429_v57 = vld [vmem:[#allocation16 + $0x96c] ss:$16 sps:$4 sm:$0xff]  }
 0x6ae   : > { %6154 = vmatpush1.bf16.msra.mxu0 %v9370_v6  ;;  %v9430_v6 = vld [vmem:[#allocation16 + $0x988] ss:$16 sps:$4 sm:$0xff]  }
 0x6af   : > { %6155 = vmatprep.subr.bf16.mxu0 %v9375_v28  ;;  %v9435_v28 = vld [vmem:[#allocation16 + $0x9ac] ss:$16 sps:$4 sm:$0xff]  }
 0x6b2   : > { %6156 = vmatpush1.bf16.msra.mxu0 %v9373_v10  ;;  %v9433_v10 = vld [vmem:[#allocation16 + $0x9a8] ss:$16 sps:$4 sm:$0xff]  }
 0x6b3   : > { %6157 = vmatprep.subr.bf16.mxu0 %v9378_v29  ;;  %v9438_v29 = vld [vmem:[#allocation16 + $0x9cc] ss:$16 sps:$4 sm:$0xff]  }
 0x6b6   : > { %6158 = vmatpush1.bf16.msra.mxu0 %v9376_v48  ;;  %v9436_v48 = vld [vmem:[#allocation16 + $0x9c8] ss:$16 sps:$4 sm:$0xff]  }
 0x6b7   : > { %6159 = vmatprep.subr.bf16.mxu0 %v9381_v59  ;;  %v9441_v59 = vld [vmem:[#allocation16 + $0x9ec] ss:$16 sps:$4 sm:$0xff]  }
 0x6ba   : > { %6160 = vmatpush1.bf16.msra.mxu0 %v9379_v19  ;;  %v9439_v19 = vld [vmem:[#allocation16 + $0x9e8] ss:$16 sps:$4 sm:$0xff]  }
 0x6bb   : > { %6161 = vmatprep.subr.bf16.mxu0 %v9384_v60  ;;  %v9444_v60 = vld [vmem:[#allocation19 + $0x4] ss:$8 sps:$4 sm:$0xff]  }
 0x6be   : > { %6162 = vmatpush1.bf16.msra.mxu0 %v9382_v61  ;;  %v9442_v61 = vld [vmem:[#allocation19] ss:$8 sps:$4 sm:$0xff]  }
 0x6bf   : > { %6163 = vmatprep.subr.bf16.mxu0 %v9387_v62  ;;  %v9447_v62 = vld [vmem:[#allocation19 + $0x14] ss:$8 sps:$4 sm:$0xff]  }
 0x6c2   : > { %6164 = vmatpush1.bf16.msra.mxu0 %v9385_v1  ;;  %v9445_v1 = vld [vmem:[#allocation19 + $0x10] ss:$8 sps:$4 sm:$0xff]  }
 0x6c3   : > { %6165 = vmatprep.subr.bf16.mxu0 %v9390_v2  ;;  %v9450_v2 = vld [vmem:[#allocation19 + $0x24] ss:$8 sps:$4 sm:$0xff]  }
 0x6c6   : > { %6166 = vmatpush1.bf16.msra.mxu0 %v9388_v18  ;;  %v9448_v18 = vld [vmem:[#allocation19 + $0x20] ss:$8 sps:$4 sm:$0xff]  }
 0x6c7   : > { %6167 = vmatprep.subr.bf16.mxu0 %v9393_v7  ;;  %v9453_v7 = vld [vmem:[#allocation19 + $0x34] ss:$8 sps:$4 sm:$0xff]  }
 0x6ca   : > { %6168 = vmatpush1.bf16.msra.mxu0 %v9391_v9  ;;  %v9456_v9 = vld [vmem:[#allocation19 + $0x44] ss:$8 sps:$4 sm:$0xff]  }
 0x6cb   : > { %6219 = vmatprep.subr.bf16.mxu0 %v9396_v14  ;;  %v9459_v14 = vld [vmem:[#allocation19 + $0x54] ss:$8 sps:$4 sm:$0xff]  }
 0x6cd   : > { %6170 = vmatmul.mubr.bf16.vlgmr.msra.gmra.mrb[32].mxu0 %v10796_v35 }
 0x6ce   : > { %6220 = vmatpush1.bf16.msra.mxu0 %v9394_v11  ;;  %6251 = vmatprep.mubr.bf16.mxu0 %v10779_v24  ;;  %v9462_v11 = vld [vmem:[#allocation19 + $0x64] ss:$8 sps:$4 sm:$0xff]  }
 0x6cf   : > { %6221 = vmatprep.subr.bf16.mxu0 %v9399_v12 }
 0x6d2   : > { %6222 = vmatpush1.bf16.msra.mxu0 %v9397_v13 }
 0x6d3   : > { %6223 = vmatprep.subr.bf16.mxu0 %v9402_v15 }
 0x6d6   : > { %6224 = vmatpush1.bf16.msra.mxu0 %v9400_v17 }
 0x6d7   : > { %6225 = vmatprep.subr.bf16.mxu0 %v9405_v20  ;;  %v9460_v20 = vld [vmem:[#allocation19 + $0x60] ss:$8 sps:$4 sm:$0xff]  }
 0x6da   : > { %6226 = vmatpush1.bf16.msra.mxu0 %v9403_v5 }
 0x6db   : > { %6227 = vmatprep.subr.bf16.mxu0 %v9408_v21 }
 0x6de   : > { %6228 = vmatpush1.bf16.msra.mxu0 %v9406_v23  ;;  %v9465_v23 = vld [vmem:[#allocation19 + $0x74] ss:$8 sps:$4 sm:$0xff]  }
 0x6df   : > { %6229 = vmatprep.subr.bf16.mxu0 %v9411_v49 }
 0x6e0   : > { %v4439_v24 = vpop.f32.mrb[20].mxu0 }
 0x6e1   : > { %v10801_v27 = vadd.f32 %v10773_v39, %v4439_v24  ;;  %v4441_v33 = vpop.f32.mrb[21].mxu0 }
 0x6e2   : > { %v10804_v4 = vadd.f32 %v10775_v54, %v4441_v33  ;;  %v4443_v22 = vpop.f32.mrb[22].mxu0  ;;  %6230 = vmatpush1.bf16.msra.mxu0 %v9409_v25  ;;  %v9423_v54 = vld [vmem:[#allocation16 + $0x92c] ss:$16 sps:$4 sm:$0xff]  }
 0x6e3   : > { %v4444_v30 = vpop.f32.mrb[23].mxu0  ;;  %6231 = vmatprep.subr.bf16.mxu0 %v9414_v26  ;;  %v9463_v26 = vld [vmem:[#allocation19 + $0x70] ss:$8 sps:$4 sm:$0xff]   ;;  %v9466_v22 = vld [vmem:[#allocation19 + $0x80] ss:$8 sps:$4 sm:$0xff]  }
 0x6e4   : > { %v9474_v30 = vld [vmem:[#allocation19 + $0xa4] ss:$8 sps:$4 sm:$0xff]  }
 0x6e6   : > { %v10806_v41 = vpop.f32.mrb[28].mxu1  ;;  %6232 = vmatpush1.bf16.msra.mxu0 %v9412_v40  ;;  %v9469_v40 = vld [vmem:[#allocation19 + $0x90] ss:$8 sps:$4 sm:$0xff]  }
 0x6e7   : > { %v10808_v46 = vpop.f32.mrb[29].mxu1  ;;  %6233 = vmatprep.subr.bf16.mxu0 %v9417_v45  ;;  %v9477_v45 = vld [vmem:[#allocation19 + $0xb4] ss:$8 sps:$4 sm:$0xff]  }
 0x6e8   : > { %v5334_v39 = vpop.f32.mrb[30].mxu1 }
 0x6e9   : > { %v5335_v51 = vpop.f32.mrb[31].mxu1  ;;  %v9478_v39 = vld [vmem:[#allocation19 + $0xc0] ss:$8 sps:$4 sm:$0xff]  }
 0x6ea   : > { %6234 = vmatpush1.bf16.msra.mxu0 %v9415_v42  ;;  %v9475_v42 = vld [vmem:[#allocation19 + $0xb0] ss:$8 sps:$4 sm:$0xff]   ;;  %v9483_v51 = vld [vmem:[#allocation19 + $0xd4] ss:$8 sps:$4 sm:$0xff]  }
 0x6eb   : > { %6235 = vmatprep.subr.bf16.mxu0 %v9420_v50  ;;  %v9480_v50 = vld [vmem:[#allocation19 + $0xc4] ss:$8 sps:$4 sm:$0xff]  }
 0x6ee   : > { %6236 = vmatpush1.bf16.msra.mxu0 %v9418_v52  ;;  %v9481_v52 = vld [vmem:[#allocation19 + $0xd0] ss:$8 sps:$4 sm:$0xff]  }
 0x6ef   : > { %6237 = vmatprep.subr.bf16.mxu0 %v9423_v54  ;;  %v9486_v54 = vld [vmem:[#allocation19 + $0xe4] ss:$8 sps:$4 sm:$0xff]  }
 0x6f2   : > { %6238 = vmatpush1.bf16.msra.mxu0 %v9421_v53  ;;  %v9484_v53 = vld [vmem:[#allocation19 + $0xe0] ss:$8 sps:$4 sm:$0xff]  }
 0x6f3   : > { %6239 = vmatprep.subr.bf16.mxu0 %v9426_v56  ;;  %v9489_v56 = vld [vmem:[#allocation19 + $0xf4] ss:$8 sps:$4 sm:$0xff]  }
 0x6f6   : > { %6240 = vmatpush1.bf16.msra.mxu0 %v9424_v58  ;;  %v9487_v58 = vld [vmem:[#allocation19 + $0xf0] ss:$8 sps:$4 sm:$0xff]  }
 0x6f7   : > { %6241 = vmatprep.subr.bf16.mxu0 %v9429_v57  ;;  %v9492_v57 = vld [vmem:[#allocation19 + $0x104] ss:$8 sps:$4 sm:$0xff]  }
 0x6fa   : > { %6242 = vmatpush1.bf16.msra.mxu0 %v9427_v3 }
 0x6fb   : > { %6243 = vmatprep.subr.bf16.mxu0 %v9432_v63 }
 0x6fe   : > { %6244 = vmatpush1.bf16.msra.mxu0 %v9430_v6 }
 0x6ff   : > { %6245 = vmatprep.subr.bf16.mxu0 %v9435_v28 }
 0x702   : > { %6246 = vmatpush1.bf16.msra.mxu0 %v9433_v10 }
 0x703   : > { %6247 = vmatprep.subr.bf16.mxu0 %v9438_v29 }
 0x706   : > { %6248 = vmatpush1.bf16.msra.mxu0 %v9436_v48 }
 0x707   : > { %6249 = vmatprep.subr.bf16.mxu0 %v9441_v59 }
 0x70a   : > { %6250 = vmatpush1.bf16.msra.mxu0 %v9439_v19 }
 0x70b   : > { %6768 = vmatprep.subr.bf16.mxu0 %v9444_v60 }
 0x70d   : > { %6252 = vmatmul.mubr.bf16.vlgmr.msra.gmra.mrb[36].mxu0 %v10796_v35 }
 0x70e   : > { %6769 = vmatpush1.bf16.msra.mxu0 %v9442_v61 }
 0x70f   : > { %6770 = vmatprep.subr.bf16.mxu0 %v9447_v62 }
 0x712   : > { %6771 = vmatpush1.bf16.msra.mxu0 %v9445_v1  ;;  %v9538_v1 = vld [vmem:[#allocation22 + $0x40] sm:$0xff]  }
 0x713   : > { %6772 = vmatprep.subr.bf16.mxu0 %v9450_v2  ;;  %v9539_v2 = vld [vmem:[#allocation22] sm:$0xff]   ;;  %8176 = vmatprep.subr.bf16.mxu1 %v9538_v1  ;;  %v9507_v1 = vld [vmem:[#allocation19 + $0x154] ss:$8 sps:$4 sm:$0xff]  }
 0x714   : > { %8177 = vmatpush3.bf16.msra.mxu1 %v9539_v2  ;;  %v9505_v2 = vld [vmem:[#allocation19 + $0x150] ss:$8 sps:$4 sm:$0xff]  }
 0x716   : > { %6773 = vmatpush1.bf16.msra.mxu0 %v9448_v18  ;;  %v9542_v18 = vld [vmem:[#allocation22 + $0x50] sm:$0xff]  }
 0x717   : > { %6774 = vmatprep.subr.bf16.mxu0 %v9453_v7  ;;  %v9544_v7 = vld [vmem:[#allocation22 + $0x58] sm:$0xff]  }
 0x71a   : > { %6775 = vmatpush1.bf16.msra.mxu0 %v9451_v8  ;;  %v9546_v8 = vld [vmem:[#allocation22 + $0x60] sm:$0xff]  }
 0x71b   : > { %6776 = vmatprep.subr.bf16.mxu0 %v9456_v9  ;;  %v9547_v9 = vld [vmem:[#allocation22 + $0x20] sm:$0xff]  }
 0x71e   : > { %6777 = vmatpush1.bf16.msra.mxu0 %v9454_v47  ;;  %v9548_v47 = vld [vmem:[#allocation22 + $0x68] sm:$0xff]  }
 0x71f   : > { %6778 = vmatprep.subr.bf16.mxu0 %v9459_v14  ;;  %v9549_v14 = vld [vmem:[#allocation22 + $0x28] sm:$0xff]  }
 0x720   : > { %v5207_v35 = vpop.f32.mrb[24].mxu0 }
 0x721   : > { %v5208_v12 = vadd.f32 %v5207_v35, %v10785_v32  ;;  %v5209_v13 = vpop.f32.mrb[25].mxu0 }
 0x722   : > { %v5210_v15 = vadd.f32 %v5209_v13, %v10788_v16  ;;  %v5211_v17 = vpop.f32.mrb[26].mxu0  ;;  %6779 = vmatpush1.bf16.msra.mxu0 %v9457_v37  ;;  %v9468_v16 = vld [vmem:[#allocation19 + $0x84] ss:$8 sps:$4 sm:$0xff]   ;;  %v10835_v37 = vld [vmem:[#allocation17] sm:$0xf] }
 0x723   : > { %v10814_v5 = vadd.f32 %v10790_v31, %v5208_v12  ;;  %v5212_v21 = vpop.f32.mrb[27].mxu0  ;;  %6780 = vmatprep.subr.bf16.mxu0 %v9462_v11  ;;  %v9471_v31 = vld [vmem:[#allocation19 + $0x94] ss:$8 sps:$4 sm:$0xff]   ;;  %v6310_v12 = vrot.slane %v10835_v37, %v10579_v34  ;;  %v6314_v17 = vrot.slane %v10835_v37, %v10582_v36 }
 0x724   : > { %v10817_v49 = vadd.f32 %v10792_v43, %v5210_v15  ;;  %v9472_v43 = vld [vmem:[#allocation19 + $0xa0] ss:$8 sps:$4 sm:$0xff]  }
 0x726   : > { %v10819_v25 = vpop.f32.mrb[32].mxu1  ;;  %6781 = vmatpush1.bf16.msra.mxu0 %v9460_v20 }
 0x727   : > { %v10821_v32 = vpop.f32.mrb[33].mxu1  ;;  %6782 = vmatprep.subr.bf16.mxu0 %v9465_v23 }
 0x728   : > { %v6216_v24 = vpop.f32.mrb[34].mxu1 }
 0x729   : > { %v6217_v33 = vpop.f32.mrb[35].mxu1 }
 0x72a   : > { %6783 = vmatpush1.bf16.msra.mxu0 %v9463_v26 }
 0x72b   : > { %6784 = vmatprep.subr.bf16.mxu0 %v9468_v16 }
 0x72e   : > { %6785 = vmatpush1.bf16.msra.mxu0 %v9466_v22 }
 0x72f   : > { %6786 = vmatprep.subr.bf16.mxu0 %v9471_v31 }
 0x732   : > { %6787 = vmatpush1.bf16.msra.mxu0 %v9469_v40 }
 0x733   : > { %6788 = vmatprep.subr.bf16.mxu0 %v9474_v30 }
 0x736   : > { %6789 = vmatpush1.bf16.msra.mxu0 %v9472_v43 }
 0x737   : > { %6790 = vmatprep.subr.bf16.mxu0 %v9477_v45 }
 0x73a   : > { %6791 = vmatpush1.bf16.msra.mxu0 %v9475_v42 }
 0x73b   : > { %6792 = vmatprep.subr.bf16.mxu0 %v9480_v50 }
 0x73e   : > { %6793 = vmatpush1.bf16.msra.mxu0 %v9478_v39 }
 0x73f   : > { %6794 = vmatprep.subr.bf16.mxu0 %v9483_v51 }
 0x742   : > { %6795 = vmatpush1.bf16.msra.mxu0 %v9481_v52 }
 0x743   : > { %6796 = vmatprep.subr.bf16.mxu0 %v9486_v54 }
 0x746   : > { %6797 = vmatpush1.bf16.msra.mxu0 %v9484_v53 }
 0x747   : > { %6798 = vmatprep.subr.bf16.mxu0 %v9489_v56 }
 0x74a   : > { %6799 = vmatpush1.bf16.msra.mxu0 %v9487_v58  ;;  %v9490_v58 = vld [vmem:[#allocation19 + $0x100] ss:$8 sps:$4 sm:$0xff]  }
 0x74b   : > { %6809 = vmatprep.subr.bf16.mxu0 %v9492_v57 }
 0x760   : > { %v5289_v3 = vpop.f32.mrb[28].mxu0 }
 0x761   : > { %v5290_v63 = vadd.f32 %v5289_v3, %v10801_v27  ;;  %v5291_v6 = vpop.f32.mrb[29].mxu0  ;;  %v9540_v27 = vld [vmem:[#allocation22 + $0x48] sm:$0xff]   ;;  %v9495_v3 = vld [vmem:[#allocation19 + $0x114] ss:$8 sps:$4 sm:$0xff]  }
 0x762   : > { %v5292_v28 = vadd.f32 %v5291_v6, %v10804_v4  ;;  %v5293_v10 = vpop.f32.mrb[30].mxu0  ;;  %v9541_v4 = vld [vmem:[#allocation22 + $0x8] sm:$0xff]   ;;  %8178 = vmatprep.subr.bf16.mxu1 %v9540_v27 }
 0x763   : > { %v10826_v29 = vadd.f32 %v10806_v41, %v5290_v63  ;;  %v5294_v48 = vpop.f32.mrb[31].mxu0  ;;  %8179 = vmatpush3.bf16.msra.mxu1 %v9541_v4  ;;  %v9543_v41 = vld [vmem:[#allocation22 + $0x10] sm:$0xff]   ;;  %v9498_v6 = vld [vmem:[#allocation19 + $0x124] ss:$8 sps:$4 sm:$0xff]   ;;  %v9508_v4 = vld [vmem:[#allocation19 + $0x160] ss:$8 sps:$4 sm:$0xff]  }
 0x764   : > { %v10829_v59 = vadd.f32 %v10808_v46, %v5292_v28  ;;  %8180 = vmatprep.subr.bf16.mxu1 %v9542_v18  ;;  %v9545_v46 = vld [vmem:[#allocation22 + $0x18] sm:$0xff]   ;;  %v9510_v27 = vld [vmem:[#allocation19 + $0x164] ss:$8 sps:$4 sm:$0xff]  }
 0x765   : > { %v9493_v63 = vld [vmem:[#allocation19 + $0x110] ss:$8 sps:$4 sm:$0xff]   ;;  %v9496_v28 = vld [vmem:[#allocation19 + $0x120] ss:$8 sps:$4 sm:$0xff]   ;;  %v9501_v10 = vld [vmem:[#allocation19 + $0x134] ss:$8 sps:$4 sm:$0xff]  }
 0x766   : > { %v10831_v19 = vpop.f32.mrb[36].mxu1  ;;  %v9499_v48 = vld [vmem:[#allocation19 + $0x130] ss:$8 sps:$4 sm:$0xff]   ;;  %v9513_v18 = vld [vmem:[#allocation19 + $0x174] ss:$8 sps:$4 sm:$0xff]  }
 0x767   : > { %v10833_v60 = vpop.f32.mrb[37].mxu1  ;;  %8181 = vmatpush3.bf16.msra.mxu1 %v9543_v41  ;;  %v9511_v41 = vld [vmem:[#allocation19 + $0x170] ss:$8 sps:$4 sm:$0xff]  }
 0x768   : > { %v6298_v61 = vpop.f32.mrb[38].mxu1  ;;  %8182 = vmatprep.subr.bf16.mxu1 %v9544_v7  ;;  %v9516_v7 = vld [vmem:[#allocation19 + $0x184] ss:$8 sps:$4 sm:$0xff]  }
 0x769   : > { %v6299_v62 = vpop.f32.mrb[39].mxu1  ;;  %v9504_v61 = vld [vmem:[#allocation19 + $0x144] ss:$8 sps:$4 sm:$0xff]  }
 0x76a   : > { %v9502_v62 = vld [vmem:[#allocation19 + $0x140] ss:$8 sps:$4 sm:$0xff]  }
 0x76b   : > { %8183 = vmatpush3.bf16.msra.mxu1 %v9545_v46  ;;  %v9514_v46 = vld [vmem:[#allocation19 + $0x180] ss:$8 sps:$4 sm:$0xff]  }
 0x76c   : > { %8184 = vmatprep.subr.bf16.mxu1 %v9546_v8  ;;  %v9519_v8 = vld [vmem:[#allocation19 + $0x194] ss:$8 sps:$4 sm:$0xff]  }
 0x76f   : > { %8185 = vmatpush3.bf16.msra.mxu1 %v9547_v9  ;;  %v9517_v9 = vld [vmem:[#allocation19 + $0x190] ss:$8 sps:$4 sm:$0xff]  }
 0x770   : > { %8186 = vmatprep.subr.bf16.mxu1 %v9548_v47  ;;  %v9522_v47 = vld [vmem:[#allocation19 + $0x1a4] ss:$8 sps:$4 sm:$0xff]  }
 0x773   : > { %8187 = vmatpush3.bf16.msra.mxu1 %v9549_v14 }
 0x7a0   : > { %v6171_v11 = vpop.f32.mrb[32].mxu0 }
 0x7a1   : > { %v6213_v35 = vadd.f32 %v10819_v25, %v6171_v11  ;;  %v6173_v13 = vpop.f32.mrb[33].mxu0 }
 0x7a2   : > { %v6215_v15 = vadd.f32 %v10821_v32, %v6173_v13  ;;  %v6175_v20 = vpop.f32.mrb[34].mxu0  ;;  %v9520_v13 = vld [vmem:[#allocation19 + $0x1a0] ss:$8 sps:$4 sm:$0xff]  }
 0x7a3   : > { %v6301_v21 = vadd.f32 %v6213_v35, %v10814_v5  ;;  %v6176_v23 = vpop.f32.mrb[35].mxu0  ;;  %v6318_v35 = vrot.slane %v10835_v37, %v3210_v55  ;;  %v9523_v55 = vld [vmem:[#allocation19 + $0x1b0] ss:$8 sps:$4 sm:$0xff]  }
 0x7a4   : > { %v6302_v26 = vadd.f32 %v6215_v15, %v10817_v49 }
 0x7a5   : > { %v6327_v16 = vadd.f32 %v6310_v12, %v6301_v21  ;;  %v9525_v21 = vld [vmem:[#allocation19 + $0x1b4] ss:$8 sps:$4 sm:$0xff]  }
 0x7a6   : > { %v6328_v24 = vadd.f32 %v6314_v17, %v6302_v26  ;;  %v6322_v17 = vrot.slane %v10835_v37, %v3214_v38  ;;  %v9526_v38 = vld [vmem:[#allocation19 + $0x1c0] ss:$8 sps:$4 sm:$0xff]  }
 0x7a7   : > { %v6331_v33 = vmax.f32 %v6327_v16, 0.0 }
 0x7a8   : > { %v6332_v22 = vmax.f32 %v6328_v24, 0.0 }
 0x7a9   : > { %v6335_v25 = vsel %vm804_vm3, %v6331_v33, 0.0  ;;  %v9528_v33 = vld [vmem:[#allocation19 + $0x1c4] ss:$8 sps:$4 sm:$0xff]  }
 0x7aa   : > { %v6336_v31 = vrot.slane %v6335_v25, 4  ;;  %v6342_v40 = vsel %vm804_vm3, %v6332_v22, 0.0 }
 0x7ab   : > { %v6343_v30 = vrot.slane %v6342_v40, 4 }
 0x7ac   : > { %v6337_v32 = vadd.f32 %v6336_v31, %v6335_v25 }
 0x7ad   : > { %v6344_v43 = vadd.f32 %v6343_v30, %v6342_v40  ;;  %v9529_v30 = vld [vmem:[#allocation19 + $0x1d0] ss:$8 sps:$4 sm:$0xff]  }
 0x7ae   : > { %v6338_v45 = vrot.slane %v6337_v32, 2 }
 0x7af   : > { %v6345_v42 = vrot.slane %v6344_v43, 2 }
 0x7b0   : > { %v6339_v50 = vadd.f32 %v6338_v45, %v6337_v32 }
 0x7b1   : > { %v6346_v39 = vadd.f32 %v6345_v42, %v6344_v43  ;;  %v9534_v43 = vld [vmem:[#allocation19 + $0x1e4] ss:$8 sps:$4 sm:$0xff]  }
 0x7b2   : > { %v6340_v5 = vrot.slane %v6339_v50, 1 }
 0x7b3   : > { %v6347_v51 = vrot.slane %v6346_v39, 1 }
 0x7b4   : > { %v6341_v52 = vadd.f32 %v6340_v5, %v6339_v50  ;;  %v9532_v50 = vld [vmem:[#allocation19 + $0x1e0] ss:$8 sps:$4 sm:$0xff]   ;;  %v9537_v5 = vld [vmem:[#allocation19 + $0x1f4] ss:$8 sps:$4 sm:$0xff]  }
 0x7b5   : > { %v6348_v49 = vadd.f32 %v6347_v51, %v6346_v39 }
 0x7b6   : > { %v6364_v54 = vmul.f32 0.5, %v6341_v52 }
 0x7b7   : > { %v6365_v53 = vmul.f32 0.5, %v6348_v49 }
 0x7b8   : > { %v6368_v57 = vpack.c.bf16 %v6364_v54, %v6364_v54  ;;  %v9535_v54 = vld [vmem:[#allocation19 + $0x1f0] ss:$8 sps:$4 sm:$0xff]  }
 0x7b9   : > { %v6369_v56 = vpack.c.bf16 %v6365_v53, %v6365_v53 }
 0x7bb   : > { %6800 = vmatprep.mubr.bf16.mxu0 %v6369_v56 }
 0x7bc   : > { %6801 = vmatmul.mubr.bf16.vlgmr.msra.gmra.mrb[40].mxu0 %v6368_v57 }
 0x7bd   : > { %6810 = vmatpush1.bf16.msra.mxu0 %v9490_v58 }
 0x7be   : > { %6811 = vmatprep.subr.bf16.mxu0 %v9495_v3 }
 0x7c1   : > { %6812 = vmatpush1.bf16.msra.mxu0 %v9493_v63  ;;  %v9550_v63 = vld [vmem:[#allocation22 + $0x70] sm:$0xff]  }
 0x7c2   : > { %6813 = vmatprep.subr.bf16.mxu0 %v9498_v6  ;;  %v9551_v6 = vld [vmem:[#allocation22 + $0x30] sm:$0xff]   ;;  %8188 = vmatprep.subr.bf16.mxu1 %v9550_v63 }
 0x7c3   : > { %8189 = vmatpush3.bf16.msra.mxu1 %v9551_v6 }
 0x7c5   : > { %6814 = vmatpush1.bf16.msra.mxu0 %v9496_v28  ;;  %v9552_v28 = vld [vmem:[#allocation22 + $0x78] sm:$0xff]  }
 0x7c6   : > { %6815 = vmatprep.subr.bf16.mxu0 %v9501_v10  ;;  %v9553_v10 = vld [vmem:[#allocation22 + $0x38] sm:$0xff]   ;;  %8190 = vmatprep.subr.bf16.mxu1 %v9552_v28 }
 0x7c7   : > { %8191 = vmatpush3.bf16.msra.mxu1 %v9553_v10 }
 0x7c8   : > { %8215 = vmatprep.subr.bf16.mxu1 %v10071_v0 }
 0x7c9   : > { %6816 = vmatpush1.bf16.msra.mxu0 %v9499_v48  ;;  %v6436_v48 = vld [vmem:[#allocation20] sm:$0x3] }
 0x7ca   : > { %6817 = vmatprep.subr.bf16.mxu0 %v9504_v61  ;;  %v6761_v61 = vrot.slane %v6436_v48, %v10579_v34  ;;  %v9556_v34 = vld [vmem:[#allocation25 + $0x10] sm:$0xff]  }
 0x7cd   : > { %6818 = vmatpush1.bf16.msra.mxu0 %v9502_v62  ;;  %v6765_v62 = vrot.slane %v6436_v48, %v10582_v36  ;;  %v9557_v36 = vld [vmem:[#allocation25 + $0x18] sm:$0xff]  }
 0x7ce   : > { %6819 = vmatprep.subr.bf16.mxu0 %v9507_v1 }
 0x7d1   : > { %6820 = vmatpush1.bf16.msra.mxu0 %v9505_v2 }
 0x7d2   : > { %6821 = vmatprep.subr.bf16.mxu0 %v9510_v27 }
 0x7d5   : > { %6822 = vmatpush1.bf16.msra.mxu0 %v9508_v4 }
 0x7d6   : > { %6823 = vmatprep.subr.bf16.mxu0 %v9513_v18 }
 0x7d9   : > { %6824 = vmatpush1.bf16.msra.mxu0 %v9511_v41 }
 0x7da   : > { %6825 = vmatprep.subr.bf16.mxu0 %v9516_v7 }
 0x7dd   : > { %6826 = vmatpush1.bf16.msra.mxu0 %v9514_v46 }
 0x7de   : > { %6827 = vmatprep.subr.bf16.mxu0 %v9519_v8 }
 0x7e0   : > { %v6253_v14 = vpop.f32.mrb[36].mxu0 }
 0x7e1   : > { %v6295_v11 = vadd.f32 %v10831_v19, %v6253_v14  ;;  %v6255_v12 = vpop.f32.mrb[37].mxu0  ;;  %6828 = vmatpush1.bf16.msra.mxu0 %v9517_v9  ;;  %v9554_v9 = vld [vmem:[#allocation25] sm:$0xff]   ;;  %v9555_v14 = vld [vmem:[#allocation25 + $0x8] sm:$0xff]  }
 0x7e2   : > { %v6297_v15 = vadd.f32 %v10833_v60, %v6255_v12  ;;  %v6257_v20 = vpop.f32.mrb[38].mxu0  ;;  %6829 = vmatprep.subr.bf16.mxu0 %v9522_v47  ;;  %v9560_v12 = vld [vmem:[#allocation25 + $0x30] sm:$0xff]  }
 0x7e3   : > { %v6303_v23 = vadd.f32 %v6295_v11, %v10826_v29  ;;  %v6258_v26 = vpop.f32.mrb[39].mxu0  ;;  %v9531_v29 = vld [vmem:[#allocation19 + $0x1d4] ss:$8 sps:$4 sm:$0xff]   ;;  %v9558_v11 = vld [vmem:[#allocation25 + $0x20] sm:$0xff]  }
 0x7e4   : > { %v6304_v19 = vadd.f32 %v6297_v15, %v10829_v59 }
 0x7e5   : > { %v6329_v16 = vadd.f32 %v6318_v35, %v6303_v23  ;;  %6830 = vmatpush1.bf16.msra.mxu0 %v9520_v13  ;;  %v9559_v35 = vld [vmem:[#allocation25 + $0x28] sm:$0xff]   ;;  %v9561_v13 = vld [vmem:[#allocation25 + $0x38] sm:$0xff]  }
 0x7e6   : > { %v6330_v24 = vadd.f32 %v6322_v17, %v6304_v19  ;;  %6831 = vmatprep.subr.bf16.mxu0 %v9525_v21  ;;  %v6886_v17 = vld [vmem:[#allocation23] sm:$0x1] }
 0x7e7   : > { %v6333_v22 = vmax.f32 %v6329_v16, 0.0 }
 0x7e8   : > { %v6334_v60 = vmax.f32 %v6330_v24, 0.0  ;;  %v7041_v24 = vld [vmem:[#allocation26] sm:$0x1] }
 0x7e9   : > { %v6349_v44 = vsel %vm804_vm3, %v6333_v22, 0.0  ;;  %6832 = vmatpush1.bf16.msra.mxu0 %v9523_v55 }
 0x7ea   : > { %v6350_v37 = vrot.slane %v6349_v44, 4  ;;  %v6356_v25 = vsel %vm804_vm3, %v6334_v60, 0.0  ;;  %6833 = vmatprep.subr.bf16.mxu0 %v9528_v33 }
 0x7eb   : > { %v6357_v31 = vrot.slane %v6356_v25, 4 }
 0x7ec   : > { %v6351_v40 = vadd.f32 %v6350_v37, %v6349_v44 }
 0x7ed   : > { %v6358_v59 = vadd.f32 %v6357_v31, %v6356_v25  ;;  %6834 = vmatpush1.bf16.msra.mxu0 %v9526_v38 }
 0x7ee   : > { %v6352_v32 = vrot.slane %v6351_v40, 2  ;;  %6835 = vmatprep.subr.bf16.mxu0 %v9531_v29 }
 0x7ef   : > { %v6359_v45 = vrot.slane %v6358_v59, 2 }
 0x7f0   : > { %v6353_v42 = vadd.f32 %v6352_v32, %v6351_v40 }
 0x7f1   : > { %6836 = vmatpush1.bf16.msra.mxu0 %v9529_v30  ;;  %v6360_v39 = vadd.f32 %v6359_v45, %v6358_v59 }
 0x7f2   : > { %6837 = vmatprep.subr.bf16.mxu0 %v9534_v43  ;;  %v6354_v51 = vrot.slane %v6353_v42, 1 }
 0x7f3   : > { %v6361_v52 = vrot.slane %v6360_v39, 1 }
 0x7f4   : > { %v6355_v49 = vadd.f32 %v6354_v51, %v6353_v42 }
 0x7f5   : > { %6838 = vmatpush1.bf16.msra.mxu0 %v9532_v50  ;;  %v6362_v53 = vadd.f32 %v6361_v52, %v6360_v39 }
 0x7f6   : > { %6839 = vmatprep.subr.bf16.mxu0 %v9537_v5  ;;  %v6366_v56 = vmul.f32 0.5, %v6355_v49 }
 0x7f7   : > { %v6367_v58 = vmul.f32 0.5, %v6362_v53 }
 0x7f8   : > { %v6370_v3 = vpack.c.bf16 %v6366_v56, %v6366_v56 }
 0x7f9   : > { %6840 = vmatpush1.bf16.msra.mxu0 %v9535_v54  ;;  %v6371_v57 = vpack.c.bf16 %v6367_v58, %v6367_v58 }
 0x7fb   : > { %6841 = vmatprep.mubr.bf16.mxu0 %v6371_v57 }
 0x7fc   : > { %6842 = vmatmul.mubr.bf16.vlgmr.msra.gmra.mrb[40].mxu0 %v6370_v3 }
 0x8cf   : > { %v6843_v1 = vpop.f32.mrb[40].mxu0 }
 0x8d0   : > { %v8237_v2 = vadd.f32 %v6843_v1, %v6761_v61  ;;  %v6845_v27 = vpop.f32.mrb[41].mxu0 }
 0x8d1   : > { %v8238_v4 = vadd.f32 %v6845_v27, %v6765_v62  ;;  %v6847_v18 = vpop.f32.mrb[42].mxu0 }
 0x8d2   : > { %v6850_v41 = vmax.f32 %v8237_v2, 0.0  ;;  %v6848_v7 = vpop.f32.mrb[43].mxu0 }
 0x8d3   : > { %v6851_v46 = vmax.f32 %v8238_v4, 0.0 }
 0x8d4   : > { %v6852_v47 = vpack.c.bf16 %v6850_v41, %v6850_v41 }
 0x8d5   : > { %v6853_v8 = vpack.c.bf16 %v6851_v46, %v6851_v46 }
 0x8d7   : > { %7015 = vmatprep.mubr.bf16.mxu1 %v6853_v8 }
 0x8d8   : > { %7016 = vmatmul.mubr.bf16.vlgmr.msra.gmra.mrb[40].mxu1 %v6852_v47 }
 0x8d9   : > { %8216 = vmatpush3.bf16.msra.mxu1 %v9554_v9  ;;  %8231 = vmatprep.mubr.msk.bf16.mxu1 %vm10072_vm0, %v10071_v0 }
 0x8da   : > { %8217 = vmatprep.subr.bf16.mxu1 %v10071_v0 }
 0x8dd   : > { %8218 = vmatpush3.bf16.msra.mxu1 %v9555_v14 }
 0x8de   : > { %8219 = vmatprep.subr.bf16.mxu1 %v10071_v0 }
 0x8e1   : > { %8220 = vmatpush3.bf16.msra.mxu1 %v9556_v34 }
 0x8e2   : > { %8221 = vmatprep.subr.bf16.mxu1 %v10071_v0 }
 0x8e5   : > { %8222 = vmatpush3.bf16.msra.mxu1 %v9557_v36 }
 0x8e6   : > { %8223 = vmatprep.subr.bf16.mxu1 %v10071_v0 }
 0x8e9   : > { %8224 = vmatpush3.bf16.msra.mxu1 %v9558_v11 }
 0x8ea   : > { %8225 = vmatprep.subr.bf16.mxu1 %v10071_v0 }
 0x8ed   : > { %8226 = vmatpush3.bf16.msra.mxu1 %v9559_v35 }
 0x8ee   : > { %8227 = vmatprep.subr.bf16.mxu1 %v10071_v0 }
 0x8f1   : > { %8228 = vmatpush3.bf16.msra.mxu1 %v9560_v12 }
 0x8f2   : > { %8229 = vmatprep.subr.bf16.mxu1 %v10071_v0 }
 0x8f5   : > { %8230 = vmatpush3.bf16.msra.mxu1 %v9561_v13 }
 0x9ab   : > { %v8192_v15 = vpop.f32.mrb[40].mxu1 }
 0x9ac   : > { %v8193_v20 = vpop.f32.mrb[41].mxu1 }
 0x9ad   : > { %v8194_v21 = vadd.f32 %v8193_v20, %v8192_v15  ;;  %v8195_v23 = vpop.f32.mrb[42].mxu1 }
 0x9ae   : > { %v8196_v26 = vpop.f32.mrb[43].mxu1 }
 0x9af   : > { %v7018_v19 = vadd.f32 %v8194_v21, %v6886_v17 }
 0x9b1   : > { %v7023_v16 = vmax.f32 %v7018_v19, 0.0 }
 0x9b3   : > { %v7024_v55 = vpack.c.bf16 %v7023_v16, %v7023_v16 }
 0x9b5   : > { %8232 = vmatmul.mubr.bf16.vlgmr.msra.gmra.mrb[44].mxu1 %v7024_v55 }
 0xa88   : > { %v7124_v33 = vpop.f32.mrb[44].mxu1 }
 0xa89   : > { %v7125_v0 = vadd.f32 %v7124_v33, %v7041_v24  ;;  %v8233_v22 = vpop.f32.mrb[45].mxu1 }
 0xa8a   : > { %v7127_v60 = vpop.f32.mrb[46].mxu1 }
 0xa8b   : > { %7130 = vst [vmem:[%s676_s18] sm:$0x1] %v7125_v0  ;;  %v8234_v44 = vpop.f32.mrb[47].mxu1 }
 0xa8c   : > { %9968 = shalt.err (!%p9965_p7)
}
 0xa8d   : > { %s9969_s26 = scalar_lea.hbm %s10876_s1, 16  ;;  %s9973_s19 = scalar_lea.hbm %s11002_s24, 32 }
 0xa8e   : > { %p9970_p8 = scmp.ne.s32.totalorder %s10876_s1, %s9969_s26  ;;  %p9974_p1 = scmp.lt.u32.totalorder %s10876_s1, %s11002_s24 }
 0xa8f   : > { %p9975_p0 = scmp.lt.u32.totalorder %s9973_s19, %s9969_s26  ;;  %p9977_p5 = scmp.lt.u32.totalorder %s9969_s26, %s10876_s1 }
 0xa90   : > { %p9971_p11 = pnand %p9970_p8, %p11003_p9 }
 0xa91   : > { %p9976_p6 = por %p9975_p0, %p9974_p1 }
 0xa92   : > { %p9972_p13 = pneg %p9971_p11 }
 0xa93   : > { %p9978_p12 = por %p9977_p5, %p9976_p6 }
 0xa95   : > { %p9979_p10 = pnand %p9978_p12, %p9972_p13 }
 0xa97   : > { %9982 = shalt.err (!%p9979_p10)
}
 0xa98   : > { %8307 = dma.vmem_to_hbm [thread:$0]  (%p11003_p9), %s10878_s2, 16, %s10876_s1, %s7132_s4  }
 0xa99 PF: > { %s11004_s27 = sld [smem:[#allocation41_spill]]  ;;  %s11005_s18 = sld [smem:[#allocation38_spill]] }
 0xa9a   : > { %s11006_s3 = sld [smem:[#allocation45_spill]] }
 0xa9f   : > { %p8384_p2 = scmp.ge.s32.totalorder %s11004_s27, 2  ;;  %s7156_s28 = sand.u32 1, %s11005_s18  }
 0xaa0   : > { %p11007_p3 = scmp.ne.s32.totalorder %s11006_s3, 0  ;;  %s7157_s20 = scalar_lea.sflag [#allocation7], %s7156_s28 }
 0xaa2   : > { %p8353_p4 = pnand %p8384_p2, %p11007_p3 }
 0xaa4   : > { %10032 = dma.done.wait (!%p8353_p4), %s7157_s20, 16  }
 0xaa5   : > { %10034 = vsyncadd (!%p8353_p4), %s7157_s20, 4294967280  ;;  %s11008_s21 = sld [smem:[#allocation42_spill]]  ;;  %s11009_s18 = sld [smem:[#allocation39_spill]] }
 0xaa6   : > { %s11010_s19 = sld [smem:[#allocation40_spill]]  ;;  %s11011_s20 = sld [smem:[#allocation43_spill]] }
 0xaab   : > { %p33_p7 = scmp.ge.s32.totalorder %s11008_s21, 4  }
 0xaad   :  { %35 = sbr.rel (!%p33_p7) target bundleno = 17 (0x11), region = 172 }
 0xab4   :  { %7161 = vsyncpa [#allocation6], 1 }
 0xab5   :  { %7163 = vsyncpa [#allocation6 + $0x1], 1 }
 0xab6   :  { %7164 = vsyncpa [#allocation9], 1 }
 0xab7   :  { %7165 = vsyncpa [#allocation12], 1 }
 0xab8   :  { %7166 = vsyncpa [#allocation15], 1 }
 0xab9   :  { %7167 = vsyncpa [#allocation18], 1 }
 0xaba   :  { %7168 = vsyncpa [#allocation21], 1 }
 0xabb   :  { %7169 = vsyncpa [#allocation24], 1 }
 0xabc   :  { %7170 = vsyncpa [#allocation27], 1 }
 0xabd   :  { %7171 = vsyncpa [#allocation7], 1 }
 0xabe   :  { %7173 = vsyncpa [#allocation7 + $0x1], 1 }

</bundles_post_ra>
